<compile_context>
chip_gen: v7x
topology: tpu7x:2x2x1
jax: 0.10.0
libtpu: 0.0.40
codegen_flags: <defaults>
</compile_context>

<pallas_src>
import functools

import jax
import jax.numpy as jnp
from jax.experimental import pallas as pl
from jax.experimental.pallas import tpu as pltpu

DIM = 200           # self.dim
DIM_PAD = 256       # lane-padded hidden width (multiple of 128)
N_OUT = 128         # n_outputs
EPS = 1e-5          # BatchNorm2d default eps
PATCH = 5           # patch_size
HW = PATCH * PATCH  # pixels per sample
MAX_TB = 256        # samples per grid step (well inside 48 MiB VMEM budget)
VPU_LAYER1_MAX_C = 16  # below this, layer 1 runs on the VPU instead of MXU


def _round_up(n, m):
    return ((n + m - 1) // m) * m


def _choose_tb(batch):
    """Batch-tile size: multiple of 16 (bf16 sublane tiles); >=2 tiles for B>16
    so the 'parallel' grid axis can use both TensorCores on v7x / megacore."""
    if batch <= 16:
        return _round_up(max(batch, 1), 16)
    n_tiles = max(2, -(-batch // MAX_TB))
    return min(MAX_TB, _round_up(-(-batch // n_tiles), 16))


def _embed_kernel(x_ref, w1_ref, b1_ref, w2_ref, b2_ref, w3_ref, b3_ref,
                  w4_ref, b4_ref, wf_ref, bf_ref, out_ref, *, vpu_layer1):
    """One batch tile: 4x (BN-folded 1x1 conv -> +shift -> ReLU) -> avgpool -> fc."""
    hw, tb, c_in = x_ref.shape
    m = hw * tb
    x2 = x_ref[...].reshape(m, c_in)              # pixel-major rows, channels-last (bf16)

    # ---- layer 1 ----
    if vpu_layer1:
        # K = c_in is tiny: an MXU matmul would still stream all M rows, so do an
        # unrolled broadcast-multiply-add on the VPU with f32 accumulation.
        w1 = w1_ref[...]                          # [c_in, DIM_PAD] f32
        xf = x2.astype(jnp.float32)
        h = b1_ref[...] + xf[:, 0:1] * w1[0:1, :]
        for c in range(1, c_in):
            h = h + xf[:, c:c + 1] * w1[c:c + 1, :]
        h = jnp.maximum(h, 0.0).astype(jnp.bfloat16)
    else:
        # Wide (e.g. hyperspectral) inputs: keep layer 1 on the MXU.
        y = jnp.dot(x2, w1_ref[...], preferred_element_type=jnp.float32)
        h = jnp.maximum(y + b1_ref[...], 0.0).astype(jnp.bfloat16)

    # ---- layers 2-4: bf16 MXU matmul (f32 acc) + packed bf16 epilogue ----
    def block(h, w_ref, b_ref):
        y = jnp.dot(h, w_ref[...], preferred_element_type=jnp.float32)   # MXU
        yb = y.astype(jnp.bfloat16) + b_ref[...]                         # packed bf16
        return jnp.maximum(yb, 0.0).astype(jnp.bfloat16)

    h = block(h, w2_ref, b2_ref)
    h = block(h, w3_ref, b3_ref)
    h = block(h, w4_ref, b4_ref)                  # [m, DIM_PAD] bf16

    # ---- AvgPool2d(patch): sum over the leading pixel axis (pure VPU adds).
    #      The 1/HW scale is folded into wf host-side. ----
    h32 = h.astype(jnp.float32)
    pooled = jnp.sum(h32.reshape(hw, tb, h.shape[-1]), axis=0)           # [tb, DIM_PAD]

    # ---- fc (kept in f32 for accuracy; tiny matmul) ----
    out_ref[...] = (jnp.dot(pooled, wf_ref[...],
                            preferred_element_type=jnp.float32)
                    + bf_ref[...])                                       # [tb, N_OUT]


def embedding_net_forward(x, params):
    """x: [B, C_in, P, P] float32 (NCHW, like the PyTorch module). Returns [B, 128]."""
    B, C, H, W = x.shape
    assert H == PATCH and W == PATCH, "Linear(200,128) implies spatial == patch_size"

    TB = _choose_tb(B)
    n_tiles = pl.cdiv(B, TB)
    B_pad = n_tiles * TB
    vpu_layer1 = C <= VPU_LAYER1_MAX_C

    # NCHW -> pixel-major [HW, B, C]; pooling becomes a leading-axis sum in-kernel.
    x_pix = jnp.transpose(x, (2, 3, 0, 1)).reshape(HW, B, C)
    if B_pad != B:
        x_pix = jnp.pad(x_pix, ((0, 0), (0, B_pad - B), (0, 0)))
    x_pix = x_pix.astype(jnp.bfloat16)

    ins = [x_pix]
    in_specs = [pl.BlockSpec((HW, TB, C), lambda b: (0, b, 0))]   # pipelined over batch

    in_c = C
    for li, layer in enumerate(params["layers"]):
        scale = layer["gamma"] / jnp.sqrt(layer["var"] + EPS)               # [DIM]
        shift = layer["beta"] + scale * (layer["conv_b"] - layer["mean"])   # [DIM]
        w = layer["conv_w"].T * scale[None, :]        # fold BN scale into conv weights
        shift = jnp.pad(shift, (0, DIM_PAD - DIM)).reshape(1, DIM_PAD)
        if li == 0:
            # Keep K = in_c (no K padding) -> consistent with x even if in_c == DIM.
            w = jnp.pad(w, ((0, 0), (0, DIM_PAD - DIM)))
            w = w.astype(jnp.float32 if vpu_layer1 else jnp.bfloat16)
            shift = shift.astype(jnp.float32)
        else:
            w = jnp.pad(w, ((0, DIM_PAD - in_c), (0, DIM_PAD - DIM))).astype(jnp.bfloat16)
            shift = shift.astype(jnp.bfloat16)
        ins += [w, shift]
        in_specs += [pl.BlockSpec(w.shape, lambda b: (0, 0)),     # weights stay resident
                     pl.BlockSpec(shift.shape, lambda b: (0, 0))]
        in_c = DIM

    # fc: fold the 1/HW avg-pool scale into the weights; keep f32 for accuracy.
    wf = jnp.pad(params["fc_w"].T / HW, ((0, DIM_PAD - DIM), (0, 0))).astype(jnp.float32)
    bf = params["fc_b"].reshape(1, N_OUT).astype(jnp.float32)
    ins += [wf, bf]
    in_specs += [pl.BlockSpec((DIM_PAD, N_OUT), lambda b: (0, 0)),
                 pl.BlockSpec((1, N_OUT), lambda b: (0, 0))]

    flops = (2 * B_pad * HW * (C * DIM + 3 * DIM * DIM)   # 1x1 convs
             + B_pad * HW * DIM                            # pooling adds
             + 2 * B_pad * DIM * N_OUT)                    # fc
    bytes_accessed = (int(x_pix.size) * 2
                      + sum(int(a.size) * a.dtype.itemsize for a in ins[1:])
                      + B_pad * N_OUT * 4)

    out = pl.pallas_call(
        functools.partial(_embed_kernel, vpu_layer1=vpu_layer1),
        out_shape=jax.ShapeDtypeStruct((B_pad, N_OUT), jnp.float32),
        grid=(n_tiles,),
        in_specs=in_specs,
        out_specs=pl.BlockSpec((TB, N_OUT), lambda b: (b, 0)),
        compiler_params=pltpu.CompilerParams(
            dimension_semantics=("parallel",),             # megacore / v7x dual TC
            vmem_limit_bytes=48 * 1024 * 1024),
        cost_estimate=pl.CostEstimate(flops=flops, transcendentals=0,
                                      bytes_accessed=bytes_accessed),
    )(*ins)
    return out[:B]


def init_params(key, c_in):
    """Deterministic synthetic parameters matching EmbeddingNetHyperX.__init__ shapes."""
    keys = jax.random.split(key, 26)
    ki = 0
    layers = []
    in_c = c_in
    for _ in range(4):
        conv_w = 0.1 * jax.random.normal(keys[ki], (DIM, in_c), jnp.float32); ki += 1
        conv_b = 0.1 * jax.random.normal(keys[ki], (DIM,), jnp.float32); ki += 1
        gamma = 1.0 + 0.1 * jax.random.normal(keys[ki], (DIM,), jnp.float32); ki += 1
        beta = 0.1 * jax.random.normal(keys[ki], (DIM,), jnp.float32); ki += 1
        mean = 0.1 * jax.random.normal(keys[ki], (DIM,), jnp.float32); ki += 1
        var = 1.0 + 0.1 * jnp.abs(jax.random.normal(keys[ki], (DIM,), jnp.float32)); ki += 1
        layers.append(dict(conv_w=conv_w, conv_b=conv_b, gamma=gamma, beta=beta,
                           mean=mean, var=var))
        in_c = DIM
    fc_w = 0.1 * jax.random.normal(keys[ki], (N_OUT, DIM), jnp.float32); ki += 1
    fc_b = 0.1 * jax.random.normal(keys[ki], (N_OUT,), jnp.float32); ki += 1
    return dict(layers=layers, fc_w=fc_w, fc_b=fc_b)


def reference_forward(x, params):
    """Pure-JAX f32 reference mirroring the PyTorch forward (NCHW, eval-mode BN)."""
    h = x.astype(jnp.float32)
    for layer in params["layers"]:
        h = jnp.einsum("oc,bchw->bohw", layer["conv_w"], h) \
            + layer["conv_b"][None, :, None, None]
        inv = 1.0 / jnp.sqrt(layer["var"] + EPS)
        h = (h - layer["mean"][None, :, None, None]) \
            * (layer["gamma"] * inv)[None, :, None, None] \
            + layer["beta"][None, :, None, None]
        h = jnp.maximum(h, 0.0)
    pooled = jnp.mean(h, axis=(2, 3))                          # AvgPool2d(P) -> [B, DIM]
    return pooled @ params["fc_w"].T + params["fc_b"]          # Linear(200, 128)


if __name__ == "__main__":
    key = jax.random.PRNGKey(0)
    k_x, k_p = jax.random.split(key)

    B, C_in = 2, 4
    x = jax.random.normal(k_x, (B, C_in, PATCH, PATCH), jnp.float32)
    params = init_params(k_p, C_in)

    fwd = jax.jit(embedding_net_forward)
    out = jax.block_until_ready(fwd(x, params))

    ref = reference_forward(x, params)
    assert out.shape == (B, N_OUT)
    # bf16 operands with f32 accumulation -> relaxed tolerance vs the f32 reference.
    max_err = float(jnp.max(jnp.abs(out - ref)))
    assert jnp.allclose(out, ref, atol=3e-2, rtol=3e-2), \
        f"mismatch vs reference (max abs err {max_err})"

    print("KERNEL_OK")
</pallas_src>

<mosaic_0001>
module attributes {stable_mosaic.version = 11 : i64} {
  func.func @_embed_kernel(%arg0: i32, %arg1: memref<25x16x4xbf16, #tpu.memory_space<vmem>>, %arg2: memref<4x256xf32, #tpu.memory_space<vmem>>, %arg3: memref<1x256xf32, #tpu.memory_space<vmem>>, %arg4: memref<256x256xbf16, #tpu.memory_space<vmem>>, %arg5: memref<1x256xbf16, #tpu.memory_space<vmem>>, %arg6: memref<256x256xbf16, #tpu.memory_space<vmem>>, %arg7: memref<1x256xbf16, #tpu.memory_space<vmem>>, %arg8: memref<256x256xbf16, #tpu.memory_space<vmem>>, %arg9: memref<1x256xbf16, #tpu.memory_space<vmem>>, %arg10: memref<256x128xf32, #tpu.memory_space<vmem>>, %arg11: memref<1x128xf32, #tpu.memory_space<vmem>>, %arg12: memref<16x128xf32, #tpu.memory_space<vmem>>) attributes {dimension_semantics = [#tpu.dimension_semantics<parallel>], iteration_bounds = array<i64: 1>, scalar_prefetch = 0 : i64, scratch_operands = 0 : i64, tpu.core_type = #tpu.core_type<tc>, window_params = [{transform_indices = @transform_0, window_bounds = array<i64: 25, 16, 4>}, {pipeline_mode = #tpu.pipeline_mode<synchronous>, transform_indices = @transform_1, window_bounds = array<i64: 4, 256>}, {pipeline_mode = #tpu.pipeline_mode<synchronous>, transform_indices = @transform_2, window_bounds = array<i64: 1, 256>}, {pipeline_mode = #tpu.pipeline_mode<synchronous>, transform_indices = @transform_3, window_bounds = array<i64: 256, 256>}, {pipeline_mode = #tpu.pipeline_mode<synchronous>, transform_indices = @transform_4, window_bounds = array<i64: 1, 256>}, {pipeline_mode = #tpu.pipeline_mode<synchronous>, transform_indices = @transform_5, window_bounds = array<i64: 256, 256>}, {pipeline_mode = #tpu.pipeline_mode<synchronous>, transform_indices = @transform_6, window_bounds = array<i64: 1, 256>}, {pipeline_mode = #tpu.pipeline_mode<synchronous>, transform_indices = @transform_7, window_bounds = array<i64: 256, 256>}, {pipeline_mode = #tpu.pipeline_mode<synchronous>, transform_indices = @transform_8, window_bounds = array<i64: 1, 256>}, {pipeline_mode = #tpu.pipeline_mode<synchronous>, transform_indices = @transform_9, window_bounds = array<i64: 256, 128>}, {pipeline_mode = #tpu.pipeline_mode<synchronous>, transform_indices = @transform_10, window_bounds = array<i64: 1, 128>}, {transform_indices = @transform_11, window_bounds = array<i64: 16, 128>}]} {
    %c0 = arith.constant 0 : index
    %c0_0 = arith.constant 0 : index
    %c0_1 = arith.constant 0 : index
    %0 = vector.load %arg1[%c0, %c0_0, %c0_1] : memref<25x16x4xbf16, #tpu.memory_space<vmem>>, vector<25x16x4xbf16>
    %1 = vector.shape_cast %0 : vector<25x16x4xbf16> to vector<400x4xbf16>
    %c0_2 = arith.constant 0 : index
    %c0_3 = arith.constant 0 : index
    %2 = vector.load %arg2[%c0_2, %c0_3] : memref<4x256xf32, #tpu.memory_space<vmem>>, vector<4x256xf32>
    %3 = arith.extf %1 : vector<400x4xbf16> to vector<400x4xf32>
    %c0_4 = arith.constant 0 : index
    %c0_5 = arith.constant 0 : index
    %4 = vector.load %arg3[%c0_4, %c0_5] : memref<1x256xf32, #tpu.memory_space<vmem>>, vector<1x256xf32>
    %5 = vector.extract_strided_slice %3 {offsets = [0, 0], sizes = [400, 1], strides = [1, 1]} : vector<400x4xf32> to vector<400x1xf32>
    %6 = vector.extract_strided_slice %2 {offsets = [0, 0], sizes = [1, 256], strides = [1, 1]} : vector<4x256xf32> to vector<1x256xf32>
    %7 = vector.broadcast %5 : vector<400x1xf32> to vector<400x256xf32>
    %8 = vector.broadcast %6 : vector<1x256xf32> to vector<400x256xf32>
    %9 = arith.mulf %7, %8 : vector<400x256xf32>
    %10 = vector.broadcast %4 : vector<1x256xf32> to vector<400x256xf32>
    %11 = arith.addf %10, %9 : vector<400x256xf32>
    %12 = vector.extract_strided_slice %3 {offsets = [0, 1], sizes = [400, 1], strides = [1, 1]} : vector<400x4xf32> to vector<400x1xf32>
    %13 = vector.extract_strided_slice %2 {offsets = [1, 0], sizes = [1, 256], strides = [1, 1]} : vector<4x256xf32> to vector<1x256xf32>
    %14 = vector.broadcast %12 : vector<400x1xf32> to vector<400x256xf32>
    %15 = vector.broadcast %13 : vector<1x256xf32> to vector<400x256xf32>
    %16 = arith.mulf %14, %15 : vector<400x256xf32>
    %17 = arith.addf %11, %16 : vector<400x256xf32>
    %18 = vector.extract_strided_slice %3 {offsets = [0, 2], sizes = [400, 1], strides = [1, 1]} : vector<400x4xf32> to vector<400x1xf32>
    %19 = vector.extract_strided_slice %2 {offsets = [2, 0], sizes = [1, 256], strides = [1, 1]} : vector<4x256xf32> to vector<1x256xf32>
    %20 = vector.broadcast %18 : vector<400x1xf32> to vector<400x256xf32>
    %21 = vector.broadcast %19 : vector<1x256xf32> to vector<400x256xf32>
    %22 = arith.mulf %20, %21 : vector<400x256xf32>
    %23 = arith.addf %17, %22 : vector<400x256xf32>
    %24 = vector.extract_strided_slice %3 {offsets = [0, 3], sizes = [400, 1], strides = [1, 1]} : vector<400x4xf32> to vector<400x1xf32>
    %25 = vector.extract_strided_slice %2 {offsets = [3, 0], sizes = [1, 256], strides = [1, 1]} : vector<4x256xf32> to vector<1x256xf32>
    %26 = vector.broadcast %24 : vector<400x1xf32> to vector<400x256xf32>
    %27 = vector.broadcast %25 : vector<1x256xf32> to vector<400x256xf32>
    %28 = arith.mulf %26, %27 : vector<400x256xf32>
    %29 = arith.addf %23, %28 : vector<400x256xf32>
    %cst = arith.constant 0.000000e+00 : f32
    %30 = vector.broadcast %cst : f32 to vector<400x256xf32>
    %31 = arith.maximumf %29, %30 : vector<400x256xf32>
    %32 = arith.truncf %31 : vector<400x256xf32> to vector<400x256xbf16>
    %c0_6 = arith.constant 0 : index
    %c0_7 = arith.constant 0 : index
    %33 = vector.load %arg4[%c0_6, %c0_7] : memref<256x256xbf16, #tpu.memory_space<vmem>>, vector<256x256xbf16>
    %cst_8 = arith.constant dense<0.000000e+00> : vector<400x256xf32>
    %34 = tpu.matmul %32, %33, %cst_8 {dimension_numbers = #tpu.dot_dimension_numbers<[1], [0], [0], [1], [0, 0, 1, 1], [], []>} : vector<400x256xbf16>, vector<256x256xbf16>, vector<400x256xf32> -> vector<400x256xf32>
    %35 = arith.truncf %34 : vector<400x256xf32> to vector<400x256xbf16>
    %c0_9 = arith.constant 0 : index
    %c0_10 = arith.constant 0 : index
    %36 = vector.load %arg5[%c0_9, %c0_10] : memref<1x256xbf16, #tpu.memory_space<vmem>>, vector<1x256xbf16>
    %37 = vector.broadcast %36 : vector<1x256xbf16> to vector<400x256xbf16>
    %38 = arith.addf %35, %37 : vector<400x256xbf16>
    %cst_11 = arith.constant 0.000000e+00 : bf16
    %39 = vector.broadcast %cst_11 : bf16 to vector<400x256xbf16>
    %40 = arith.maximumf %38, %39 : vector<400x256xbf16>
    %c0_12 = arith.constant 0 : index
    %c0_13 = arith.constant 0 : index
    %41 = vector.load %arg6[%c0_12, %c0_13] : memref<256x256xbf16, #tpu.memory_space<vmem>>, vector<256x256xbf16>
    %cst_14 = arith.constant dense<0.000000e+00> : vector<400x256xf32>
    %42 = tpu.matmul %40, %41, %cst_14 {dimension_numbers = #tpu.dot_dimension_numbers<[1], [0], [0], [1], [0, 0, 1, 1], [], []>} : vector<400x256xbf16>, vector<256x256xbf16>, vector<400x256xf32> -> vector<400x256xf32>
    %43 = arith.truncf %42 : vector<400x256xf32> to vector<400x256xbf16>
    %c0_15 = arith.constant 0 : index
    %c0_16 = arith.constant 0 : index
    %44 = vector.load %arg7[%c0_15, %c0_16] : memref<1x256xbf16, #tpu.memory_space<vmem>>, vector<1x256xbf16>
    %45 = vector.broadcast %44 : vector<1x256xbf16> to vector<400x256xbf16>
    %46 = arith.addf %43, %45 : vector<400x256xbf16>
    %cst_17 = arith.constant 0.000000e+00 : bf16
    %47 = vector.broadcast %cst_17 : bf16 to vector<400x256xbf16>
    %48 = arith.maximumf %46, %47 : vector<400x256xbf16>
    %c0_18 = arith.constant 0 : index
    %c0_19 = arith.constant 0 : index
    %49 = vector.load %arg8[%c0_18, %c0_19] : memref<256x256xbf16, #tpu.memory_space<vmem>>, vector<256x256xbf16>
    %cst_20 = arith.constant dense<0.000000e+00> : vector<400x256xf32>
    %50 = tpu.matmul %48, %49, %cst_20 {dimension_numbers = #tpu.dot_dimension_numbers<[1], [0], [0], [1], [0, 0, 1, 1], [], []>} : vector<400x256xbf16>, vector<256x256xbf16>, vector<400x256xf32> -> vector<400x256xf32>
    %51 = arith.truncf %50 : vector<400x256xf32> to vector<400x256xbf16>
    %c0_21 = arith.constant 0 : index
    %c0_22 = arith.constant 0 : index
    %52 = vector.load %arg9[%c0_21, %c0_22] : memref<1x256xbf16, #tpu.memory_space<vmem>>, vector<1x256xbf16>
    %53 = vector.broadcast %52 : vector<1x256xbf16> to vector<400x256xbf16>
    %54 = arith.addf %51, %53 : vector<400x256xbf16>
    %cst_23 = arith.constant 0.000000e+00 : bf16
    %55 = vector.broadcast %cst_23 : bf16 to vector<400x256xbf16>
    %56 = arith.maximumf %54, %55 : vector<400x256xbf16>
    %57 = arith.extf %56 : vector<400x256xbf16> to vector<400x256xf32>
    %58 = vector.shape_cast %57 : vector<400x256xf32> to vector<25x16x256xf32>
    %cst_24 = arith.constant dense<0.000000e+00> : vector<16x256xf32>
    %59 = vector.multi_reduction <add>, %58, %cst_24 [0] : vector<25x16x256xf32> to vector<16x256xf32>
    %c0_25 = arith.constant 0 : index
    %c0_26 = arith.constant 0 : index
    %60 = vector.load %arg10[%c0_25, %c0_26] : memref<256x128xf32, #tpu.memory_space<vmem>>, vector<256x128xf32>
    %cst_27 = arith.constant dense<0.000000e+00> : vector<16x128xf32>
    %61 = tpu.matmul %59, %60, %cst_27 {dimension_numbers = #tpu.dot_dimension_numbers<[1], [0], [0], [1], [0, 0, 1, 1], [], []>} : vector<16x256xf32>, vector<256x128xf32>, vector<16x128xf32> -> vector<16x128xf32>
    %c0_28 = arith.constant 0 : index
    %c0_29 = arith.constant 0 : index
    %62 = vector.load %arg11[%c0_28, %c0_29] : memref<1x128xf32, #tpu.memory_space<vmem>>, vector<1x128xf32>
    %63 = vector.broadcast %62 : vector<1x128xf32> to vector<16x128xf32>
    %64 = arith.addf %61, %63 : vector<16x128xf32>
    %c0_30 = arith.constant 0 : index
    %c0_31 = arith.constant 0 : index
    %65 = vector.load %arg12[%c0_30, %c0_31] : memref<16x128xf32, #tpu.memory_space<vmem>>, vector<16x128xf32>
    tpu.vector_store %arg12[%c0_30, %c0_31], %64 {strides = array<i32>} : memref<16x128xf32, #tpu.memory_space<vmem>>, vector<16x128xf32>,
    return
  }
  func.func @transform_0(%arg0: i32) -> (i32, i32, i32) {
    %c0_i32 = arith.constant 0 : i32
    %c0_i32_0 = arith.constant 0 : i32
    %c0_i32_1 = arith.constant 0 : i32
    return %c0_i32, %arg0, %c0_i32_0 : i32, i32, i32
  }
  func.func @transform_1(%arg0: i32) -> (i32, i32) {
    %c0_i32 = arith.constant 0 : i32
    %c0_i32_0 = arith.constant 0 : i32
    %c0_i32_1 = arith.constant 0 : i32
    return %c0_i32, %c0_i32_0 : i32, i32
  }
  func.func @transform_2(%arg0: i32) -> (i32, i32) {
    %c0_i32 = arith.constant 0 : i32
    %c0_i32_0 = arith.constant 0 : i32
    %c0_i32_1 = arith.constant 0 : i32
    return %c0_i32, %c0_i32_0 : i32, i32
  }
  func.func @transform_3(%arg0: i32) -> (i32, i32) {
    %c0_i32 = arith.constant 0 : i32
    %c0_i32_0 = arith.constant 0 : i32
    %c0_i32_1 = arith.constant 0 : i32
    return %c0_i32, %c0_i32_0 : i32, i32
  }
  func.func @transform_4(%arg0: i32) -> (i32, i32) {
    %c0_i32 = arith.constant 0 : i32
    %c0_i32_0 = arith.constant 0 : i32
    %c0_i32_1 = arith.constant 0 : i32
    return %c0_i32, %c0_i32_0 : i32, i32
  }
  func.func @transform_5(%arg0: i32) -> (i32, i32) {
    %c0_i32 = arith.constant 0 : i32
    %c0_i32_0 = arith.constant 0 : i32
    %c0_i32_1 = arith.constant 0 : i32
    return %c0_i32, %c0_i32_0 : i32, i32
  }
  func.func @transform_6(%arg0: i32) -> (i32, i32) {
    %c0_i32 = arith.constant 0 : i32
    %c0_i32_0 = arith.constant 0 : i32
    %c0_i32_1 = arith.constant 0 : i32
    return %c0_i32, %c0_i32_0 : i32, i32
  }
  func.func @transform_7(%arg0: i32) -> (i32, i32) {
    %c0_i32 = arith.constant 0 : i32
    %c0_i32_0 = arith.constant 0 : i32
    %c0_i32_1 = arith.constant 0 : i32
    return %c0_i32, %c0_i32_0 : i32, i32
  }
  func.func @transform_8(%arg0: i32) -> (i32, i32) {
    %c0_i32 = arith.constant 0 : i32
    %c0_i32_0 = arith.constant 0 : i32
    %c0_i32_1 = arith.constant 0 : i32
    return %c0_i32, %c0_i32_0 : i32, i32
  }
  func.func @transform_9(%arg0: i32) -> (i32, i32) {
    %c0_i32 = arith.constant 0 : i32
    %c0_i32_0 = arith.constant 0 : i32
    %c0_i32_1 = arith.constant 0 : i32
    return %c0_i32, %c0_i32_0 : i32, i32
  }
  func.func @transform_10(%arg0: i32) -> (i32, i32) {
    %c0_i32 = arith.constant 0 : i32
    %c0_i32_0 = arith.constant 0 : i32
    %c0_i32_1 = arith.constant 0 : i32
    return %c0_i32, %c0_i32_0 : i32, i32
  }
  func.func @transform_11(%arg0: i32) -> (i32, i32) {
    %c0_i32 = arith.constant 0 : i32
    %c0_i32_0 = arith.constant 0 : i32
    return %arg0, %c0_i32 : i32, i32
  }
}

</mosaic_0001>

<bundles_post_ra>
// kernel: embedding_net_forward.1
= control target key start
LH: loop header
LB: loop body
LE: loop exit
PB: predicated region body
PF: predicated region fallthrough
CT: control target
= control target key end

     0   :  { %v7418_v0 = vmov 2   ;;  %v7420_v1 = vmov 0   ;;  %v7424_v18 = vmov 3   ;;  %v7422_v28 = vmov 1   ;;  %s7406_s0 = inlined_call_operand.vmem [shape: bf16[25,16,4], index: 0, kind: input, shape index: {}]   ;;  %s7407_s3 = inlined_call_operand.vmem [shape: bf16[256,256], index: 3, kind: input, shape index: {}]   ;;  %s7408_s1 = inlined_call_operand.vmem [shape: f32[4,256], index: 1, kind: input, shape index: {}]   ;;  %s7409_s2 = inlined_call_operand.vmem [shape: f32[1,256], index: 2, kind: input, shape index: {}]   ;;  %s7410_s5 = inlined_call_operand.vmem [shape: bf16[256,256], index: 5, kind: input, shape index: {}]   ;;  %s7411_s4 = inlined_call_operand.vmem [shape: bf16[1,256], index: 4, kind: input, shape index: {}]   ;;  %s7412_s7 = inlined_call_operand.vmem [shape: bf16[256,256], index: 7, kind: input, shape index: {}]   ;;  %s7413_s6 = inlined_call_operand.vmem [shape: bf16[1,256], index: 6, kind: input, shape index: {}]   ;;  %s7414_s9 = inlined_call_operand.vmem [shape: f32[256,128], index: 9, kind: input, shape index: {}]   ;;  %s7415_s8 = inlined_call_operand.vmem [shape: bf16[1,256], index: 8, kind: input, shape index: {}]   ;;  %s7416_s10 = inlined_call_operand.vmem [shape: f32[1,128], index: 10, kind: input, shape index: {}]   ;;  %s7417_s11 = inlined_call_operand.vmem [shape: f32[16,128], index: 11, kind: output, shape index: {}]  }
   0x1   :  { %4667 = vset.pattern.permute.xlu1 %v7418_v0  ;;  %4661 = vset.pattern.permute.xlu0 %v7420_v1  ;;  %v4431_v2 = vld [vmem:[%s7406_s0] sm:$0xff]   ;;  %v4531_v3 = vld [vmem:[%s7406_s0 + $0x10] sm:$0xff]   ;;  %v4530_v9 = vld [vmem:[%s7406_s0 + $0x8] sm:$0xff]  }
   0x2   :  { %v4432_v4 = vunpack.c.l.bf16 %v4431_v2  ;;  %v4433_v5 = vunpack.c.h.bf16 %v4431_v2  ;;  %v4440_v6 = vunpack.c.l.bf16 %v4531_v3  ;;  %v4441_v7 = vunpack.c.h.bf16 %v4531_v3  ;;  %v5251_v10 = vld [vmem:[%s7407_s3 + $0x4] ss:$8 sps:$4 sm:$0xff]   ;;  %v5253_v11 = vld [vmem:[%s7407_s3] ss:$8 sps:$4 sm:$0xff]   ;;  %v5254_v12 = vld [vmem:[%s7407_s3 + $0x14] ss:$8 sps:$4 sm:$0xff]  }
   0x3   :  { %2217 = vmatprep.subr.bf16.mxu0 %v5251_v10  ;;  %v4436_v14 = vunpack.c.l.bf16 %v4530_v9  ;;  %v4437_v15 = vunpack.c.h.bf16 %v4530_v9  ;;  %v5256_v16 = vld [vmem:[%s7407_s3 + $0x10] ss:$8 sps:$4 sm:$0xff]   ;;  %v5257_v17 = vld [vmem:[%s7407_s3 + $0x24] ss:$8 sps:$4 sm:$0xff]   ;;  %4624 = vmatprep.subr.bf16.mxu1 %v5251_v10  ;;  %v5259_v26 = vld [vmem:[%s7407_s3 + $0x20] ss:$8 sps:$4 sm:$0xff]  }
   0x4   :  { %v4668_v8 = vpack.i.bf16 %v4433_v5, %v4432_v4  ;;  %v5480_v13 = vpack.i.bf16 %v4441_v7, %v4440_v6  ;;  %2218 = vmatpush1.bf16.msra.mxu0 %v5253_v11  ;;  %v4537_v19 = vld [vmem:[%s7406_s0 + $0x40] sm:$0xff]   ;;  %v4532_v21 = vld [vmem:[%s7406_s0 + $0x18] sm:$0xff]   ;;  %v4538_v22 = vld [vmem:[%s7406_s0 + $0x48] sm:$0xff]   ;;  %4640 = vmatpush1.bf16.msra.mxu1 %v5253_v11 }
   0x5   :  { %2219 = vmatprep.subr.bf16.mxu0 %v5254_v12  ;;  %v5494_v20 = vpack.i.bf16 %v4437_v15, %v4436_v14  ;;  %v4464_v23 = vunpack.c.l.bf16 %v4537_v19  ;;  %v4465_v24 = vunpack.c.h.bf16 %v4537_v19  ;;  %v4539_v25 = vld [vmem:[%s7406_s0 + $0x50] sm:$0xff]   ;;  %4625 = vmatprep.subr.bf16.mxu1 %v5254_v12  ;;  %v4468_v29 = vunpack.c.l.bf16 %v4538_v22  ;;  %v4533_v34 = vld [vmem:[%s7406_s0 + $0x20] sm:$0xff]   ;;  %v4540_v46 = vld [vmem:[%s7406_s0 + $0x58] sm:$0xff]  }
   0x6   :  { %4669 = vperm.xlu1 %4667, %v4668_v8   ;;  %4663 = vperm.xlu0 %4661, %v4668_v8   ;;  %v5260_v27 = vld [vmem:[%s7407_s3 + $0x34] ss:$8 sps:$4 sm:$0xff]   ;;  %v4469_v30 = vunpack.c.h.bf16 %v4538_v22  ;;  %v4444_v32 = vunpack.c.l.bf16 %v4532_v21  ;;  %v4445_v33 = vunpack.c.h.bf16 %v4532_v21  ;;  %v4472_v35 = vunpack.c.l.bf16 %v4539_v25  ;;  %v5262_v37 = vld [vmem:[%s7407_s3 + $0x30] ss:$8 sps:$4 sm:$0xff]   ;;  %v5263_v39 = vld [vmem:[%s7407_s3 + $0x44] ss:$8 sps:$4 sm:$0xff]  }
   0x7   :  { %v5513_v31 = vpack.i.bf16 %v4465_v24, %v4464_v23  ;;  %v4473_v36 = vunpack.c.h.bf16 %v4539_v25  ;;  %v4448_v42 = vunpack.c.l.bf16 %v4533_v34  ;;  %v4449_v43 = vunpack.c.h.bf16 %v4533_v34  ;;  %v5265_v44 = vld [vmem:[%s7407_s3 + $0x40] ss:$8 sps:$4 sm:$0xff]   ;;  %v5266_v45 = vld [vmem:[%s7407_s3 + $0x54] ss:$8 sps:$4 sm:$0xff]   ;;  %v5268_v50 = vld [vmem:[%s7407_s3 + $0x50] ss:$8 sps:$4 sm:$0xff]  }
   0x8   :  { %2220 = vmatpush1.bf16.msra.mxu0 %v5256_v16  ;;  %v5522_v38 = vpack.i.bf16 %v4469_v30, %v4468_v29  ;;  %4641 = vmatpush1.bf16.msra.mxu1 %v5256_v16  ;;  %v5531_v41 = vpack.i.bf16 %v4445_v33, %v4444_v32  ;;  %v4476_v47 = vunpack.c.l.bf16 %v4540_v46  ;;  %v4477_v48 = vunpack.c.h.bf16 %v4540_v46  ;;  %v5269_v51 = vld [vmem:[%s7407_s3 + $0x64] ss:$8 sps:$4 sm:$0xff]   ;;  %v5271_v53 = vld [vmem:[%s7407_s3 + $0x60] ss:$8 sps:$4 sm:$0xff]   ;;  %v5272_v54 = vld [vmem:[%s7407_s3 + $0x74] ss:$8 sps:$4 sm:$0xff]  }
   0x9   :  { %2221 = vmatprep.subr.bf16.mxu0 %v5257_v17  ;;  %v5527_v40 = vpack.i.bf16 %v4473_v36, %v4472_v35  ;;  %4626 = vmatprep.subr.bf16.mxu1 %v5257_v17  ;;  %v5545_v49 = vpack.i.bf16 %v4449_v43, %v4448_v42  ;;  %v5274_v55 = vld [vmem:[%s7407_s3 + $0x70] ss:$8 sps:$4 sm:$0xff]   ;;  %v4534_v56 = vld [vmem:[%s7406_s0 + $0x28] sm:$0xff]   ;;  %v5278_v61 = vld [vmem:[%s7407_s3 + $0x94] ss:$8 sps:$4 sm:$0xff]  }
   0xa   :  { %4673 = vset.pattern.permute.xlu1 %v7424_v18  ;;  %4703 = vset.pattern.permute.xlu0 %v7418_v0  ;;  %v5554_v52 = vpack.i.bf16 %v4477_v48, %v4476_v47  ;;  %v5275_v57 = vld [vmem:[%s7407_s3 + $0x84] ss:$8 sps:$4 sm:$0xff]   ;;  %v4452_v58 = vunpack.c.l.bf16 %v4534_v56  ;;  %v4453_v59 = vunpack.c.h.bf16 %v4534_v56  ;;  %v5277_v60 = vld [vmem:[%s7407_s3 + $0x80] ss:$8 sps:$4 sm:$0xff]   ;;  %v5280_v2 = vld [vmem:[%s7407_s3 + $0x90] ss:$8 sps:$4 sm:$0xff]   ;;  %v392_v56 = vlaneseq }
   0xb   :  { %4675 = vperm.xlu1 %4673, %v4668_v8   ;;  %4705 = vperm.xlu0 %4703, %v5480_v13   ;;  %v4541_v63 = vld [vmem:[%s7406_s0 + $0x60] sm:$0xff]   ;;  %v4535_v6 = vld [vmem:[%s7406_s0 + $0x30] sm:$0xff]   ;;  %v4536_v14 = vld [vmem:[%s7406_s0 + $0x38] sm:$0xff]  }
   0xc   :  { %2222 = vmatpush1.bf16.msra.mxu0 %v5259_v26  ;;  %4642 = vmatpush1.bf16.msra.mxu1 %v5259_v26  ;;  %v5586_v62 = vpack.i.bf16 %v4453_v59, %v4452_v58  ;;  %v4480_v3 = vunpack.c.l.bf16 %v4541_v63  ;;  %v4481_v4 = vunpack.c.h.bf16 %v4541_v63  ;;  %v5281_v5 = vld [vmem:[%s7407_s3 + $0xa4] ss:$8 sps:$4 sm:$0xff]   ;;  %v4456_v9 = vunpack.c.l.bf16 %v4535_v6  ;;  %v5284_v11 = vld [vmem:[%s7407_s3 + $0xb4] ss:$8 sps:$4 sm:$0xff]   ;;  %v5295_v33 = vld [vmem:[%s7407_s3 + $0xe0] ss:$8 sps:$4 sm:$0xff]  }
   0xd   :  { %2223 = vmatprep.subr.bf16.mxu0 %v5260_v27  ;;  %4627 = vmatprep.subr.bf16.mxu1 %v5260_v27  ;;  %v4457_v10 = vunpack.c.h.bf16 %v4535_v6  ;;  %v5287_v15 = vld [vmem:[%s7407_s3 + $0xc4] ss:$8 sps:$4 sm:$0xff]   ;;  %v4460_v17 = vunpack.c.l.bf16 %v4536_v14  ;;  %v4461_v19 = vunpack.c.h.bf16 %v4536_v14  ;;  %v5290_v23 = vld [vmem:[%s7407_s3 + $0xd4] ss:$8 sps:$4 sm:$0xff]   ;;  %v5292_v27 = vld [vmem:[%s7407_s3 + $0xd0] ss:$8 sps:$4 sm:$0xff]  }
   0xe   :  { %v5604_v7 = vpack.i.bf16 %v4481_v4, %v4480_v3  ;;  %v4542_v16 = vld [vmem:[%s7406_s0 + $0x68] sm:$0xff]   ;;  %v4543_v26 = vld [vmem:[%s7406_s0 + $0x70] sm:$0xff]   ;;  %v4545_v43 = vld [vmem:[%s7406_s0 + $0x80] sm:$0xff]  }
   0xf   :  { %4679 = vset.pattern.permute.xlu1 %v7420_v1  ;;  %4709 = vset.pattern.permute.xlu0 %v7422_v28  ;;  %v5615_v12 = vpack.i.bf16 %v4457_v10, %v4456_v9  ;;  %v4484_v21 = vunpack.c.l.bf16 %v4542_v16  ;;  %v4485_v22 = vunpack.c.h.bf16 %v4542_v16  ;;  %v5644_v25 = vpack.i.bf16 %v4461_v19, %v4460_v17  ;;  %v5293_v29 = vld [vmem:[%s7407_s3 + $0xe4] ss:$8 sps:$4 sm:$0xff]   ;;  %v5296_v35 = vld [vmem:[%s7407_s3 + $0xf4] ss:$8 sps:$4 sm:$0xff]   ;;  %v5298_v36 = vld [vmem:[%s7407_s3 + $0xf0] ss:$8 sps:$4 sm:$0xff]  }
  0x10   :  { %4681 = vperm.xlu1 %4679, %v5494_v20   ;;  %4711 = vperm.xlu0 %4709, %v4668_v8   ;;  %v5283_v8 = vld [vmem:[%s7407_s3 + $0xa0] ss:$8 sps:$4 sm:$0xff]   ;;  %v4488_v30 = vunpack.c.l.bf16 %v4543_v26  ;;  %v4489_v32 = vunpack.c.h.bf16 %v4543_v26  ;;  %v4548_v4 = vld [vmem:[%s7406_s0 + $0x98] sm:$0xff]  }
  0x11   :  { %2224 = vmatpush1.bf16.msra.mxu0 %v5262_v37  ;;  %4643 = vmatpush1.bf16.msra.mxu1 %v5262_v37  ;;  %v5640_v24 = vpack.i.bf16 %v4485_v22, %v4484_v21  ;;  %v4544_v37 = vld [vmem:[%s7406_s0 + $0x78] sm:$0xff]   ;;  %v4546_v47 = vld [vmem:[%s7406_s0 + $0x88] sm:$0xff]   ;;  %v4509_v9 = vunpack.c.h.bf16 %v4548_v4 }
  0x12   :  { %2225 = vmatprep.subr.bf16.mxu0 %v5263_v39  ;;  %4628 = vmatprep.subr.bf16.mxu1 %v5263_v39  ;;  %v5662_v34 = vpack.i.bf16 %v4489_v32, %v4488_v30  ;;  %v4492_v39 = vunpack.c.l.bf16 %v4544_v37  ;;  %v4500_v48 = vunpack.c.l.bf16 %v4546_v47 }
  0x14   :  { %4685 = vset.pattern.permute.xlu1 %v7418_v0  ;;  %4716 = vperm.xlu0 %4709, %v5494_v20  }
  0x15   :  { %4687 = vperm.xlu1 %4685, %v5494_v20   ;;  %2226 = vmatpush1.bf16.msra.mxu0 %v5265_v44 }
  0x16   :  { %2227 = vmatprep.subr.bf16.mxu0 %v5266_v45  ;;  %4644 = vmatpush1.bf16.msra.mxu1 %v5265_v44  ;;  %v4496_v44 = vunpack.c.l.bf16 %v4545_v43 }
  0x17   :  { %4629 = vmatprep.subr.bf16.mxu1 %v5266_v45  ;;  %v4497_v45 = vunpack.c.h.bf16 %v4545_v43 }
  0x18   :  { %4733 = vperm.xlu0 %4709, %v5531_v41  }
  0x19   :  { %4691 = vset.pattern.permute.xlu1 %v7420_v1  ;;  %2228 = vmatpush1.bf16.msra.mxu0 %v5268_v50  ;;  %v5699_v46 = vpack.i.bf16 %v4497_v45, %v4496_v44 }
  0x1a   :  { %4693 = vperm.xlu1 %4691, %v5480_v13   ;;  %2229 = vmatprep.subr.bf16.mxu0 %v5269_v51 }
  0x1b   :  { %4645 = vmatpush1.bf16.msra.mxu1 %v5268_v50 }
  0x1c   :  { %4749 = vset.pattern.permute.xlu0 %v7420_v1  ;;  %4630 = vmatprep.subr.bf16.mxu1 %v5269_v51  ;;  %v4547_v51 = vld [vmem:[%s7406_s0 + $0x90] sm:$0xff]  }
  0x1d   :  { %4751 = vperm.xlu0 %4749, %v5545_v49   ;;  %2230 = vmatpush1.bf16.msra.mxu0 %v5271_v53 }
  0x1e   :  { %4697 = vset.pattern.permute.xlu1 %v7422_v28  ;;  %2231 = vmatprep.subr.bf16.mxu0 %v5272_v54 }
  0x1f   :  { %4699 = vperm.xlu1 %4697, %v5480_v13   ;;  %4646 = vmatpush1.bf16.msra.mxu1 %v5271_v53  ;;  %v4504_v53 = vunpack.c.l.bf16 %v4547_v51 }
  0x20   :  { %4631 = vmatprep.subr.bf16.mxu1 %v5272_v54  ;;  %v4505_v54 = vunpack.c.h.bf16 %v4547_v51 }
  0x21   :  { %4755 = vset.pattern.permute.xlu0 %v7424_v18  ;;  %2232 = vmatpush1.bf16.msra.mxu0 %v5274_v55 }
  0x22   :  { %4757 = vperm.xlu0 %4755, %v5494_v20   ;;  %2233 = vmatprep.subr.bf16.mxu0 %v5275_v57  ;;  %v5289_v20 = vld [vmem:[%s7407_s3 + $0xc0] ss:$8 sps:$4 sm:$0xff]  }
  0x23   :  { %4720 = vset.pattern.permute.xlu1 %v7424_v18  ;;  %4647 = vmatpush1.bf16.msra.mxu1 %v5274_v55  ;;  %v5728_v55 = vpack.i.bf16 %v4505_v54, %v4504_v53 }
  0x24   :  { %4722 = vperm.xlu1 %4720, %v5480_v13   ;;  %4632 = vmatprep.subr.bf16.mxu1 %v5275_v57  ;;  %v5286_v13 = vld [vmem:[%s7407_s3 + $0xb0] ss:$8 sps:$4 sm:$0xff]   ;;  %v5734_v57 = vshrl.u32 %v392_v56, 7 }
  0x25   :  { %2234 = vmatpush1.bf16.msra.mxu0 %v5277_v60 }
  0x26   :  { %4774 = vperm.xlu0 %4755, %v5545_v49   ;;  %2235 = vmatprep.subr.bf16.mxu0 %v5278_v61  ;;  %v398_v58 = vsub.s32 4, %v5734_v57  ;;  %v1241_v59 = vsub.s32 2, %v5734_v57  ;;  %v517_v3 = vsub.s32 1, %v5734_v57  ;;  %v1663_v6 = vsub.s32 7, %v5734_v57 }
  0x27   :  { %4648 = vmatpush1.bf16.msra.mxu1 %v5277_v60  ;;  %v89_v60 = vld [vmem:[%s7408_s1] sm:$0xff] }
  0x28   :  { %4726 = vset.pattern.permute.xlu1 %v7420_v1  ;;  %4633 = vmatprep.subr.bf16.mxu1 %v5278_v61  ;;  %v1245_v61 = vsub.s32 6, %v5734_v57  ;;  %v1242_v10 = vrot.slane %v89_v60, %v1241_v59  ;;  %v824_v21 = vrot.slane %v89_v60, %v517_v3 }
  0x29   :  { %4728 = vperm.xlu1 %4726, %v5531_v41   ;;  %2236 = vmatpush1.bf16.msra.mxu0 %v5280_v2 }
  0x2a   :  { %4790 = vset.pattern.permute.xlu0 %v7418_v0  ;;  %2237 = vmatprep.subr.bf16.mxu0 %v5281_v5  ;;  %v5787_v44 = vrot.slane %v824_v21, %v517_v3 }
  0x2b   :  { %4792 = vperm.xlu0 %4790, %v5586_v62   ;;  %4649 = vmatpush1.bf16.msra.mxu1 %v5280_v2  ;;  %v399_v2 = vrot.slane %v89_v60, %v398_v58 }
  0x2c   :  { %4634 = vmatprep.subr.bf16.mxu1 %v5281_v5  ;;  %v827_v5 = vsub.s32 5, %v5734_v57 }
  0x2d   :  { %4737 = vset.pattern.permute.xlu1 %v7418_v0  ;;  %2238 = vmatpush1.bf16.msra.mxu0 %v5283_v8 }
  0x2e   :  { %4739 = vperm.xlu1 %4737, %v5531_v41   ;;  %2239 = vmatprep.subr.bf16.mxu0 %v5284_v11  ;;  %v828_v22 = vrot.slane %v89_v60, %v827_v5 }
  0x2f   :  { %4845 = vperm.xlu0 %4790, %v5513_v31   ;;  %4650 = vmatpush1.bf16.msra.mxu1 %v5283_v8  ;;  %v4508_v8 = vunpack.c.l.bf16 %v4548_v4 }
  0x30   :  { %4635 = vmatprep.subr.bf16.mxu1 %v5284_v11  ;;  %v1246_v11 = vrot.slane %v89_v60, %v1245_v61  ;;  %v5789_v45 = vrot.slane %v828_v22, %v517_v3 }
  0x31   :  { %2240 = vmatpush1.bf16.msra.mxu0 %v5286_v13  ;;  %v5761_v16 = vpack.i.bf16 %v4509_v9, %v4508_v8 }
  0x32   :  { %4743 = vset.pattern.permute.xlu1 %v7424_v18  ;;  %2241 = vmatprep.subr.bf16.mxu0 %v5287_v15 }
  0x33   :  { %4745 = vperm.xlu1 %4743, %v5531_v41   ;;  %4849 = vset.pattern.permute.xlu0 %v7422_v28  ;;  %v4493_v41 = vunpack.c.h.bf16 %v4544_v37 }
  0x34   :  { %4851 = vperm.xlu0 %4849, %v5615_v12   ;;  %4651 = vmatpush1.bf16.msra.mxu1 %v5286_v13  ;;  %v140_v13 = vld [vmem:[%s7409_s2] sm:$0x3] }
  0x35   :  { %2242 = vmatpush1.bf16.msra.mxu0 %v5289_v20  ;;  %4636 = vmatprep.subr.bf16.mxu1 %v5287_v15  ;;  %v5683_v42 = vpack.i.bf16 %v4493_v41, %v4492_v39  ;;  %v5779_v32 = vrot.slane %v140_v13, %v517_v3 }
  0x36   :  { %2243 = vmatprep.subr.bf16.mxu0 %v5290_v23 }
  0x37   :  { %4761 = vset.pattern.permute.xlu1 %v7422_v28 }
  0x38   :  { %4763 = vperm.xlu1 %4761, %v5545_v49   ;;  %4868 = vperm.xlu0 %4849, %v5522_v38  }
  0x39   :  { %2244 = vmatpush1.bf16.msra.mxu0 %v5292_v27  ;;  %4652 = vmatpush1.bf16.msra.mxu1 %v5289_v20 }
  0x3a   :  { %2245 = vmatprep.subr.bf16.mxu0 %v5293_v29  ;;  %4637 = vmatprep.subr.bf16.mxu1 %v5290_v23  ;;  %v1664_v23 = vrot.slane %v89_v60, %v1663_v6 }
  0x3c   :  { %4767 = vset.pattern.permute.xlu1 %v7418_v0  ;;  %4872 = vset.pattern.permute.xlu0 %v7420_v1 }
  0x3d   :  { %4769 = vperm.xlu1 %4767, %v5545_v49   ;;  %4874 = vperm.xlu0 %4872, %v5644_v25   ;;  %v4501_v49 = vunpack.c.h.bf16 %v4546_v47 }
  0x3e   :  { %2246 = vmatpush1.bf16.msra.mxu0 %v5295_v33  ;;  %4653 = vmatpush1.bf16.msra.mxu1 %v5292_v27 }
  0x3f   :  { %2247 = vmatprep.subr.bf16.mxu0 %v5296_v35  ;;  %4638 = vmatprep.subr.bf16.mxu1 %v5293_v29  ;;  %v5712_v50 = vpack.i.bf16 %v4501_v49, %v4500_v48  ;;  %v5777_v29 = vrot.slane %v1246_v11, %v1241_v59 }
  0x41   :  { %4778 = vset.pattern.permute.xlu1 %v7420_v1  ;;  %4891 = vperm.xlu0 %4872, %v5527_v40  }
  0x42   :  { %4780 = vperm.xlu1 %4778, %v5586_v62   ;;  %2248 = vmatpush1.bf16.msra.mxu0 %v5298_v36 }
  0x43   :  { %4654 = vmatpush1.bf16.msra.mxu1 %v5295_v33 }
  0x44   :  { %4639 = vmatprep.subr.bf16.mxu1 %v5296_v35 }
  0x45   :  { %4895 = vset.pattern.permute.xlu0 %v7424_v18 }
  0x46   :  { %4784 = vset.pattern.permute.xlu1 %v7422_v28  ;;  %4897 = vperm.xlu0 %4895, %v5644_v25  }
  0x47   :  { %4786 = vperm.xlu1 %4784, %v5586_v62   ;;  %4655 = vmatpush1.bf16.msra.mxu1 %v5298_v36 }
  0x4a   :  { %4914 = vperm.xlu0 %4895, %v5527_v40  }
  0x4b   :  { %4796 = vset.pattern.permute.xlu1 %v7424_v18 }
  0x4c   :  { %4798 = vperm.xlu1 %4796, %v5586_v62   ;;  %v1659_v62 = vsub.s32 3, %v5734_v57 }
  0x4e   :  { %4930 = vset.pattern.permute.xlu0 %v7418_v0  ;;  %v1660_v15 = vrot.slane %v89_v60, %v1659_v62  ;;  %v5791_v47 = vrot.slane %v1664_v23, %v1659_v62 }
  0x4f   :  { %4932 = vperm.xlu0 %4930, %v5554_v52  }
  0x50   :  { %4802 = vset.pattern.permute.xlu1 %v7420_v1  ;;  %v5781_v33 = vrot.slane %v1660_v15, %v1659_v62 }
  0x51   :  { %4804 = vperm.xlu1 %4802, %v5615_v12  }
  0x53   :  { %4985 = vperm.xlu0 %4930, %v5662_v34  }
  0x55   :  { %4808 = vset.pattern.permute.xlu1 %v7418_v0 }
  0x56   :  { %4810 = vperm.xlu1 %4808, %v5615_v12  }
  0x57   :  { %4989 = vset.pattern.permute.xlu0 %v7422_v28 }
  0x58   :  { %4991 = vperm.xlu0 %4989, %v5604_v7  }
  0x5a   :  { %4814 = vset.pattern.permute.xlu1 %v7424_v18 }
  0x5b   :  { %4816 = vperm.xlu1 %4814, %v5615_v12  }
  0x5c   :  { %5008 = vperm.xlu0 %4989, %v5683_v42  }
  0x5f   :  { %4820 = vset.pattern.permute.xlu1 %v7422_v28 }
  0x60   :  { %4822 = vperm.xlu1 %4820, %v5644_v25   ;;  %5012 = vset.pattern.permute.xlu0 %v7420_v1 }
  0x61   :  { %5014 = vperm.xlu0 %5012, %v5640_v24  }
  0x64   :  { %4826 = vset.pattern.permute.xlu1 %v7418_v0 }
  0x65   :  { %4828 = vperm.xlu1 %4826, %v5644_v25   ;;  %5031 = vperm.xlu0 %5012, %v5699_v46   ;;  %v5771_v25 = vrot.slane %v1242_v10, %v1241_v59 }
  0x69   :  { %4832 = vset.pattern.permute.xlu1 %v7420_v1  ;;  %5035 = vset.pattern.permute.xlu0 %v7424_v18 }
  0x6a   :  { %4834 = vperm.xlu1 %4832, %v5513_v31   ;;  %5037 = vperm.xlu0 %5035, %v5640_v24  }
  0x6e   :  { %4838 = vset.pattern.permute.xlu1 %v7422_v28  ;;  %5054 = vperm.xlu0 %5035, %v5699_v46  }
  0x6f   :  { %4840 = vperm.xlu1 %4838, %v5513_v31  }
  0x72   :  { %5070 = vset.pattern.permute.xlu0 %v7418_v0 }
  0x73   :  { %4855 = vset.pattern.permute.xlu1 %v7424_v18  ;;  %5072 = vperm.xlu0 %5070, %v5712_v50  }
  0x74   :  { %4857 = vperm.xlu1 %4855, %v5513_v31   ;;  %v5739_v31 = vsub.s32 0, %v5734_v57 }
  0x76   :  { %v395_v63 = vrot.slane %v89_v60, %v5739_v31  ;;  %v5774_v27 = vrot.slane %v140_v13, %v5739_v31 }
  0x77   :  { %5088 = vset.pattern.permute.xlu0 %v7422_v28 }
  0x78   :  { %4861 = vset.pattern.permute.xlu1 %v7420_v1  ;;  %5090 = vperm.xlu0 %5088, %v5728_v55   ;;  %v5764_v17 = vrot.slane %v395_v63, %v5739_v31 }
  0x79   :  { %4863 = vperm.xlu1 %4861, %v5522_v38  }
  0x7c   :  { %5106 = vset.pattern.permute.xlu0 %v7420_v1 }
  0x7d   :  { %4878 = vset.pattern.permute.xlu1 %v7418_v0  ;;  %5108 = vperm.xlu0 %5106, %v5761_v16  }
  0x7e   :  { %4880 = vperm.xlu1 %4878, %v5522_v38  }
  0x81   :  { %5124 = vset.pattern.permute.xlu0 %v7424_v18 }
  0x82   :  { %4884 = vset.pattern.permute.xlu1 %v7424_v18  ;;  %5126 = vperm.xlu0 %5124, %v5761_v16  }
  0x83   :  { %4886 = vperm.xlu1 %4884, %v5522_v38   ;;  %v5767_v38 = vrot.slane %v399_v2, %v5739_v31 }
  0x85   :  { %v4670_v12 = vpop.permute.xlu1 %4669  ;;  %v4664_v14 = vpop.permute.xlu0 %4663 }
  0x86   :  { %v4666_v19 = vunpack.i.h.bf16 %v4664_v14  ;;  %v4665_v20 = vunpack.i.l.bf16 %v4664_v14  ;;  %v4672_v26 = vunpack.i.h.bf16 %v4670_v12  ;;  %v4671_v30 = vunpack.i.l.bf16 %v4670_v12  ;;  %5142 = vset.pattern.permute.xlu0 %v7418_v0 }
  0x87   :  { %4901 = vset.pattern.permute.xlu1 %v7422_v28 }
  0x88   :  { %4903 = vperm.xlu1 %4901, %v5527_v40   ;;  %v412_v35 = vmul.f32 %v4666_v19, %v5764_v17  ;;  %v413_v36 = vmul.f32 %v4666_v19, %v5767_v38  ;;  %v410_v37 = vmul.f32 %v4665_v20, %v5764_v17  ;;  %v411_v43 = vmul.f32 %v4665_v20, %v5767_v38 }
  0x89   :  { %v1259_v48 = vmul.f32 %v4672_v26, %v5771_v25  ;;  %v5797_v54 = vmul.f32 %v4672_v26, %v5777_v29  ;;  %v1257_v56 = vmul.f32 %v4671_v30, %v5771_v25  ;;  %v1258_v59 = vmul.f32 %v4671_v30, %v5777_v29 }
  0x8a   :  { %v4676_v39 = vpop.permute.xlu1 %4675  ;;  %v4706_v41 = vpop.permute.xlu0 %4705  ;;  %v523_v60 = vadd.f32 %v5774_v27, %v412_v35  ;;  %v524_v61 = vadd.f32 %v5779_v32, %v413_v36  ;;  %v521_v62 = vadd.f32 %v5774_v27, %v410_v37  ;;  %v522_v63 = vadd.f32 %v5779_v32, %v411_v43 }
  0x8b   :  { %v4678_v49 = vunpack.i.h.bf16 %v4676_v39  ;;  %v4677_v51 = vunpack.i.l.bf16 %v4676_v39  ;;  %v4708_v53 = vunpack.i.h.bf16 %v4706_v41  ;;  %v4707_v58 = vunpack.i.l.bf16 %v4706_v41 }
  0x8c   :  { %4907 = vset.pattern.permute.xlu1 %v7418_v0 }
  0x8d   :  { %4909 = vperm.xlu1 %4907, %v5527_v40   ;;  %v5807_v2 = vmul.f32 %v4678_v49, %v5781_v33  ;;  %v5810_v3 = vmul.f32 %v4677_v51, %v5781_v33  ;;  %v5813_v4 = vmul.f32 %v4708_v53, %v5771_v25  ;;  %v5817_v11 = vmul.f32 %v4708_v53, %v5777_v29 }
  0x8e   :  { %v5820_v12 = vmul.f32 %v4707_v58, %v5771_v25  ;;  %v5823_v13 = vmul.f32 %v4707_v58, %v5777_v29  ;;  %v5827_v14 = vmul.f32 %v4677_v51, %v5791_v47  ;;  %v1678_v43 = vmul.f32 %v4678_v49, %v5791_v47 }
  0x8f   :  { %v4682_v40 = vpop.permute.xlu1 %4681  ;;  %v4712_v5 = vpop.permute.xlu0 %4711 }
  0x90   :  { %v4684_v6 = vunpack.i.h.bf16 %v4682_v40  ;;  %v4683_v8 = vunpack.i.l.bf16 %v4682_v40  ;;  %v4714_v9 = vunpack.i.h.bf16 %v4712_v5  ;;  %v4713_v10 = vunpack.i.l.bf16 %v4712_v5 }
  0x91   :  { %4918 = vset.pattern.permute.xlu1 %v7420_v1 }
  0x92   :  { %v416_v15 = vmul.f32 %v4684_v6, %v5764_v17  ;;  %v417_v19 = vmul.f32 %v4684_v6, %v5767_v38  ;;  %v414_v20 = vmul.f32 %v4683_v8, %v5764_v17  ;;  %v415_v21 = vmul.f32 %v4683_v8, %v5767_v38  ;;  %4920 = vperm.xlu1 %4918, %v5554_v52  }
  0x93   :  { %v841_v22 = vmul.f32 %v4714_v9, %v5787_v44  ;;  %v842_v23 = vmul.f32 %v4714_v9, %v5789_v45  ;;  %v839_v26 = vmul.f32 %v4713_v10, %v5787_v44  ;;  %v840_v30 = vmul.f32 %v4713_v10, %v5789_v45  ;;  %v4717_v35 = vpop.permute.xlu0 %4716 }
  0x94   :  { %v527_v36 = vadd.f32 %v5774_v27, %v416_v15  ;;  %v528_v37 = vadd.f32 %v5779_v32, %v417_v19  ;;  %v525_v39 = vadd.f32 %v5774_v27, %v414_v20  ;;  %v4688_v41 = vpop.permute.xlu1 %4687  ;;  %v526_v51 = vadd.f32 %v5779_v32, %v415_v21 }
  0x95   :  { %v939_v53 = vadd.f32 %v839_v26, %v521_v62  ;;  %v940_v58 = vadd.f32 %v840_v30, %v522_v63  ;;  %v941_v40 = vadd.f32 %v841_v22, %v523_v60  ;;  %v4719_v5 = vunpack.i.h.bf16 %v4717_v35 }
  0x96   :  { %v4718_v6 = vunpack.i.l.bf16 %v4717_v35  ;;  %v4690_v8 = vunpack.i.h.bf16 %v4688_v41  ;;  %v4689_v9 = vunpack.i.l.bf16 %v4688_v41  ;;  %4924 = vset.pattern.permute.xlu1 %v7422_v28  ;;  %v942_v10 = vadd.f32 %v842_v23, %v524_v61 }
  0x97   :  { %v1357_v15 = vadd.f32 %v1257_v56, %v939_v53  ;;  %v1359_v0 = vadd.f32 %v1259_v48, %v941_v40  ;;  %4926 = vperm.xlu1 %4924, %v5554_v52   ;;  %v1358_v19 = vadd.f32 %v1258_v59, %v940_v58  ;;  %v845_v20 = vmul.f32 %v4719_v5, %v5787_v44  ;;  %v4734_v63 = vpop.permute.xlu0 %4733 }
  0x98   :  { %v846_v49 = vmul.f32 %v4719_v5, %v5789_v45  ;;  %v843_v62 = vmul.f32 %v4718_v6, %v5787_v44  ;;  %v844_v60 = vmul.f32 %v4718_v6, %v5789_v45  ;;  %v1263_v21 = vmul.f32 %v4690_v8, %v5771_v25 }
  0x99   :  { %v1264_v22 = vmul.f32 %v4690_v8, %v5777_v29  ;;  %v1261_v61 = vmul.f32 %v4689_v9, %v5771_v25  ;;  %v1262_v48 = vmul.f32 %v4689_v9, %v5777_v29  ;;  %v4694_v56 = vpop.permute.xlu1 %4693  ;;  %v945_v23 = vadd.f32 %v845_v20, %v527_v36 }
  0x9a   :  { %v946_v59 = vadd.f32 %v846_v49, %v528_v37  ;;  %v943_v26 = vadd.f32 %v843_v62, %v525_v39  ;;  %v944_v30 = vadd.f32 %v844_v60, %v526_v51  ;;  %v4696_v35 = vunpack.i.h.bf16 %v4694_v56 }
  0x9b   :  { %v4695_v41 = vunpack.i.l.bf16 %v4694_v56  ;;  %v4736_v53 = vunpack.i.h.bf16 %v4734_v63  ;;  %v4735_v58 = vunpack.i.l.bf16 %v4734_v63  ;;  %4936 = vset.pattern.permute.xlu1 %v7424_v18  ;;  %v5859_v6 = vadd.f32 %v1263_v21, %v945_v23 }
  0x9c   :  { %v5855_v40 = vadd.f32 %v1261_v61, %v943_v26  ;;  %v5857_v5 = vadd.f32 %v1262_v48, %v944_v30  ;;  %4938 = vperm.xlu1 %4936, %v5554_v52   ;;  %v1360_v8 = vadd.f32 %v5797_v54, %v942_v10  ;;  %v5863_v36 = vadd.f32 %v1264_v22, %v946_v59  ;;  %v4752_v54 = vpop.permute.xlu0 %4751 }
  0x9d   :  { %v420_v37 = vmul.f32 %v4696_v35, %v5764_v17  ;;  %v421_v39 = vmul.f32 %v4696_v35, %v5767_v38  ;;  %v418_v51 = vmul.f32 %v4695_v41, %v5764_v17  ;;  %v419_v9 = vmul.f32 %v4695_v41, %v5767_v38 }
  0x9e   :  { %v5870_v20 = vmul.f32 %v4736_v53, %v5787_v44  ;;  %v5873_v49 = vmul.f32 %v4736_v53, %v5789_v45  ;;  %v5876_v52 = vmul.f32 %v4735_v58, %v5787_v44  ;;  %v4700_v10 = vpop.permute.xlu1 %4699  ;;  %v5882_v21 = vmul.f32 %v4735_v58, %v5789_v45 }
  0x9f   :  { %v531_v62 = vadd.f32 %v5774_v27, %v420_v37  ;;  %v532_v60 = vadd.f32 %v5779_v32, %v421_v39  ;;  %v529_v63 = vadd.f32 %v5774_v27, %v418_v51  ;;  %v4754_v22 = vunpack.i.h.bf16 %v4752_v54 }
  0xa0   :  { %v4753_v61 = vunpack.i.l.bf16 %v4752_v54  ;;  %v4702_v48 = vunpack.i.h.bf16 %v4700_v10  ;;  %v4701_v56 = vunpack.i.l.bf16 %v4700_v10  ;;  %4942 = vset.pattern.permute.xlu1 %v7420_v1  ;;  %v1776_v23 = vadd.f32 %v5827_v14, %v1358_v19 }
  0xa1   :  { %v1778_v59 = vadd.f32 %v1678_v43, %v1360_v8  ;;  %v1775_v26 = vadd.f32 %v5810_v3, %v1357_v15  ;;  %v1777_v30 = vadd.f32 %v5807_v2, %v1359_v0  ;;  %4944 = vperm.xlu1 %4942, %v5604_v7   ;;  %v428_v35 = vmul.f32 %v4754_v22, %v5764_v17  ;;  %v4758_v8 = vpop.permute.xlu0 %4757 }
  0xa2   :  { %v429_v41 = vmul.f32 %v4754_v22, %v5767_v38  ;;  %v426_v53 = vmul.f32 %v4753_v61, %v5764_v17  ;;  %v427_v58 = vmul.f32 %v4753_v61, %v5767_v38  ;;  %v530_v37 = vadd.f32 %v5779_v32, %v419_v9 }
  0xa3   :  { %v850_v39 = vmul.f32 %v4702_v48, %v5789_v45  ;;  %v847_v14 = vmul.f32 %v4701_v56, %v5787_v44  ;;  %v848_v3 = vmul.f32 %v4701_v56, %v5789_v45  ;;  %v5897_v43 = vpop.permute.xlu1 %4722  ;;  %v5900_v0 = vadd.f32 %v5774_v27, %v428_v35 }
  0xa4   :  { %v5903_v2 = vadd.f32 %v5779_v32, %v429_v41  ;;  %v5906_v15 = vadd.f32 %v5774_v27, %v426_v53  ;;  %v849_v19 = vmul.f32 %v4702_v48, %v5787_v44  ;;  %v5910_v51 = vadd.f32 %v5779_v32, %v427_v58 }
  0xa5   :  { %v5912_v9 = vadd.f32 %v847_v14, %v529_v63  ;;  %v948_v54 = vadd.f32 %v848_v3, %v530_v37  ;;  %v950_v10 = vadd.f32 %v850_v39, %v532_v60  ;;  %v7432_v22 = vmov 2  }
  0xa6   :  { %4948 = vset.pattern.permute.xlu1 %v7432_v22  ;;  %v1876_v61 = vmax.f32 %v1776_v23, 0.0  ;;  %v1878_v56 = vmax.f32 %v1778_v59, 0.0  ;;  %v1875_v35 = vmax.f32 %v1775_v26, 0.0  ;;  %v1877_v41 = vmax.f32 %v1777_v30, 0.0 }
  0xa7   :  { %4950 = vperm.xlu1 %4948, %v5604_v7   ;;  %v4760_v53 = vunpack.i.h.bf16 %v4758_v8  ;;  %v4759_v1 = vunpack.i.l.bf16 %v4758_v8  ;;  %v4725_v48 = vunpack.i.h.bf16 %v5897_v43  ;;  %v4724_v28 = vunpack.i.l.bf16 %v5897_v43 }
  0xa8   :  { %v1976_v58 = vpack.c.bf16 %v1878_v56, %v1876_v61  ;;  %v1975_v18 = vpack.c.bf16 %v1877_v41, %v1875_v35  ;;  %v4729_v63 = vpop.permute.xlu1 %4728  ;;  %v1366_v37 = vadd.f32 %v5823_v13, %v948_v54  ;;  %v1368_v60 = vadd.f32 %v5817_v11, %v950_v10 }
  0xa9   :  { %v1681_v23 = vmul.f32 %v4760_v53, %v5781_v33  ;;  %v1682_v59 = vmul.f32 %v4760_v53, %v5791_v47  ;;  %v1679_v26 = vmul.f32 %v4759_v1, %v5781_v33  ;;  %v1680_v30 = vmul.f32 %v4759_v1, %v5791_v47 }
  0xaa   :  { %v949_v39 = vadd.f32 %v849_v19, %v531_v62  ;;  %2249 = vmatprep.mubr.bf16.mxu0 %v1976_v58  ;;  %v5925_v14 = vmul.f32 %v4725_v48, %v5781_v33  ;;  %v1686_v3 = vmul.f32 %v4725_v48, %v5791_v47  ;;  %v1684_v43 = vmul.f32 %v4724_v28, %v5791_v47 }
  0xab   :  { %2250 = vmatmul.mubr.bf16.vlgmr.msra.gmra.mrb[0].mxu0 %v1975_v18  ;;  %v1779_v11 = vadd.f32 %v1679_v26, %v5855_v40  ;;  %v1780_v13 = vadd.f32 %v1680_v30, %v5857_v5  ;;  %v1781_v8 = vadd.f32 %v1681_v23, %v5859_v6  ;;  %v1782_v54 = vadd.f32 %v1682_v59, %v5863_v36 }
  0xac   :  { %v4731_v10 = vunpack.i.h.bf16 %v4729_v63  ;;  %v4730_v1 = vunpack.i.l.bf16 %v4729_v63  ;;  %v7433_v62 = vmov 3   ;;  %v1784_v19 = vadd.f32 %v1684_v43, %v1366_v37 }
  0xad   :  { %4954 = vset.pattern.permute.xlu1 %v7433_v62  ;;  %v1786_v61 = vadd.f32 %v1686_v3, %v1368_v60  ;;  %v1880_v56 = vmax.f32 %v1780_v13, 0.0  ;;  %v1882_v35 = vmax.f32 %v1782_v54, 0.0  ;;  %v4740_v41 = vpop.permute.xlu1 %4739  ;;  %v1879_v18 = vmax.f32 %v1779_v11, 0.0 }
  0xae   :  { %4956 = vperm.xlu1 %4954, %v5604_v7   ;;  %v1881_v53 = vmax.f32 %v1781_v8, 0.0  ;;  %v424_v40 = vmul.f32 %v4731_v10, %v5764_v17  ;;  %v425_v5 = vmul.f32 %v4731_v10, %v5767_v38  ;;  %v422_v6 = vmul.f32 %v4730_v1, %v5764_v17 }
  0xaf   :  { %v423_v36 = vmul.f32 %v4730_v1, %v5767_v38  ;;  %v1978_v48 = vpack.c.bf16 %v1882_v35, %v1880_v56  ;;  %v4742_v58 = vunpack.i.h.bf16 %v4740_v41  ;;  %v4741_v63 = vunpack.i.l.bf16 %v4740_v41 }
  0xb0   :  { %v1977_v37 = vpack.c.bf16 %v1881_v53, %v1879_v18  ;;  %v535_v60 = vadd.f32 %v5774_v27, %v424_v40  ;;  %v536_v7 = vadd.f32 %v5779_v32, %v425_v5  ;;  %v533_v23 = vadd.f32 %v5774_v27, %v422_v6  ;;  %v4775_v53 = vpop.permute.xlu0 %4774 }
  0xb1   :  { %v534_v59 = vadd.f32 %v5779_v32, %v423_v36  ;;  %2259 = vmatprep.mubr.bf16.mxu0 %v1978_v48  ;;  %v1271_v26 = vmul.f32 %v4742_v58, %v5771_v25  ;;  %v1272_v30 = vmul.f32 %v4742_v58, %v5777_v29  ;;  %v1269_v3 = vmul.f32 %v4741_v63, %v5771_v25 }
  0xb2   :  { %v1270_v43 = vmul.f32 %v4741_v63, %v5777_v29  ;;  %v951_v11 = vadd.f32 %v5876_v52, %v533_v23  ;;  %v953_v8 = vadd.f32 %v5870_v20, %v535_v60  ;;  %v954_v54 = vadd.f32 %v5873_v49, %v536_v7  ;;  %v4746_v1 = vpop.permute.xlu1 %4745 }
  0xb3   :  { %v952_v13 = vadd.f32 %v5882_v21, %v534_v59  ;;  %v7434_v10 = vmov 1   ;;  %2260 = vmatmul.mubr.bf16.gmra.mrb[4].mxu0 %v1977_v37  ;;  %v1884_v56 = vmax.f32 %v1784_v19, 0.0  ;;  %v1886_v35 = vmax.f32 %v1786_v61, 0.0 }
  0xb4   :  { %4960 = vset.pattern.permute.xlu1 %v7434_v10  ;;  %v4748_v41 = vunpack.i.h.bf16 %v4746_v1  ;;  %v4747_v18 = vunpack.i.l.bf16 %v4746_v1  ;;  %v1683_v40 = vmul.f32 %v4724_v28, %v5781_v33  ;;  %v1369_v52 = vadd.f32 %v1269_v3, %v951_v11 }
  0xb5   :  { %4962 = vperm.xlu1 %4960, %v5640_v24   ;;  %v1370_v5 = vadd.f32 %v1270_v43, %v952_v13  ;;  %v1372_v21 = vadd.f32 %v1272_v30, %v954_v54  ;;  %v1980_v6 = vpack.c.bf16 %v1886_v35, %v1884_v56  ;;  %v1365_v61 = vadd.f32 %v5820_v12, %v5912_v9 }
  0xb6   :  { %v1689_v20 = vmul.f32 %v4748_v41, %v5781_v33  ;;  %v1690_v49 = vmul.f32 %v4748_v41, %v5791_v47  ;;  %v1687_v36 = vmul.f32 %v4747_v18, %v5781_v33  ;;  %v1688_v19 = vmul.f32 %v4747_v18, %v5791_v47 }
  0xb7   :  { %v1367_v48 = vadd.f32 %v5813_v4, %v949_v39  ;;  %v4777_v58 = vunpack.i.h.bf16 %v4775_v53  ;;  %v1371_v63 = vadd.f32 %v1271_v26, %v953_v8  ;;  %2269 = vmatprep.mubr.bf16.mxu0 %v1980_v6  ;;  %v4764_v28 = vpop.permute.xlu1 %4763  ;;  %v4776_v60 = vunpack.i.l.bf16 %v4775_v53  ;;  %v4793_v6 = vpop.permute.xlu0 %4792 }
  0xb8   :  { %v1790_v37 = vadd.f32 %v1690_v49, %v1372_v21  ;;  %v1787_v7 = vadd.f32 %v1687_v36, %v1369_v52  ;;  %v1783_v23 = vadd.f32 %v1683_v40, %v1365_v61  ;;  %v4766_v30 = vunpack.i.h.bf16 %v4764_v28 }
  0xb9   :  { %4966 = vset.pattern.permute.xlu1 %v7432_v22  ;;  %v1785_v59 = vadd.f32 %v5925_v14, %v1367_v48  ;;  %v4765_v3 = vunpack.i.l.bf16 %v4764_v28  ;;  %v1788_v43 = vadd.f32 %v1688_v19, %v1370_v5  ;;  %v1693_v4 = vmul.f32 %v4777_v58, %v5781_v33 }
  0xba   :  { %4968 = vperm.xlu1 %4966, %v5640_v24   ;;  %v1890_v12 = vmax.f32 %v1790_v37, 0.0  ;;  %v1789_v9 = vadd.f32 %v1689_v20, %v1371_v63  ;;  %v1883_v39 = vmax.f32 %v1783_v23, 0.0  ;;  %v857_v11 = vmul.f32 %v4766_v30, %v5787_v44 }
  0xbb   :  { %v1885_v26 = vmax.f32 %v1785_v59, 0.0  ;;  %v858_v13 = vmul.f32 %v4766_v30, %v5789_v45  ;;  %v855_v8 = vmul.f32 %v4765_v3, %v5787_v44  ;;  %v856_v24 = vmul.f32 %v4765_v3, %v5789_v45 }
  0xbc   :  { %v1888_v54 = vmax.f32 %v1788_v43, 0.0  ;;  %v1694_v14 = vmul.f32 %v4777_v58, %v5791_v47  ;;  %v957_v56 = vadd.f32 %v857_v11, %v5900_v0  ;;  %v7435_v41 = vmov 0   ;;  %v4770_v18 = vpop.permute.xlu1 %4769 }
  0xbd   :  { %v1979_v1 = vpack.c.bf16 %v1885_v26, %v1883_v39  ;;  %v958_v35 = vadd.f32 %v858_v13, %v5903_v2  ;;  %v1691_v53 = vmul.f32 %v4776_v60, %v5781_v33  ;;  %v955_v40 = vadd.f32 %v855_v8, %v5906_v15  ;;  %v5988_v13 = vpop.permute.xlu0 %4845 }
  0xbe   :  { %4972 = vset.pattern.permute.xlu1 %v7435_v41  ;;  %v4772_v52 = vunpack.i.h.bf16 %v4770_v18  ;;  %v4771_v5 = vunpack.i.l.bf16 %v4770_v18  ;;  %v1692_v21 = vmul.f32 %v4776_v60, %v5791_v47  ;;  %v956_v20 = vadd.f32 %v856_v24, %v5910_v51 }
  0xbf   :  { %4974 = vperm.xlu1 %4972, %v5662_v34   ;;  %2270 = vmatmul.mubr.bf16.gmra.mrb[8].mxu0 %v1979_v1  ;;  %v1982_v0 = vpack.c.bf16 %v1890_v12, %v1888_v54  ;;  %v1887_v49 = vmax.f32 %v1787_v7, 0.0  ;;  %v1889_v2 = vmax.f32 %v1789_v9, 0.0  ;;  %v4795_v48 = vunpack.i.h.bf16 %v4793_v6 }
  0xc0   :  { %v1275_v36 = vmul.f32 %v4772_v52, %v5771_v25  ;;  %v1276_v19 = vmul.f32 %v4772_v52, %v5777_v29  ;;  %v1273_v61 = vmul.f32 %v4771_v5, %v5771_v25  ;;  %v1274_v15 = vmul.f32 %v4771_v5, %v5777_v29 }
  0xc1   :  { %2279 = vmatprep.mubr.bf16.mxu0 %v1982_v0  ;;  %v4781_v51 = vpop.permute.xlu1 %4780  ;;  %v1981_v60 = vpack.c.bf16 %v1889_v2, %v1887_v49  ;;  %v4794_v59 = vunpack.i.l.bf16 %v4793_v6  ;;  %v1279_v8 = vmul.f32 %v4795_v48, %v5771_v25 }
  0xc2   :  { %v1373_v58 = vadd.f32 %v1273_v61, %v955_v40  ;;  %v1374_v63 = vadd.f32 %v1274_v15, %v956_v20  ;;  %v1375_v28 = vadd.f32 %v1275_v36, %v957_v56  ;;  %v1376_v37 = vadd.f32 %v1276_v19, %v958_v35  ;;  %v4852_v61 = vpop.permute.xlu0 %4851 }
  0xc3   :  { %4978 = vset.pattern.permute.xlu1 %v7434_v10  ;;  %v4783_v7 = vunpack.i.h.bf16 %v4781_v51  ;;  %v4782_v23 = vunpack.i.l.bf16 %v4781_v51  ;;  %v1280_v56 = vmul.f32 %v4795_v48, %v5777_v29  ;;  %v1278_v40 = vmul.f32 %v4794_v59, %v5777_v29 }
  0xc4   :  { %4980 = vperm.xlu1 %4978, %v5662_v34   ;;  %v1791_v30 = vadd.f32 %v1691_v53, %v1373_v58  ;;  %v1792_v3 = vadd.f32 %v1692_v21, %v1374_v63  ;;  %v1793_v43 = vadd.f32 %v1693_v4, %v1375_v28  ;;  %v1794_v12 = vadd.f32 %v1694_v14, %v1376_v37 }
  0xc5   :  { %v432_v9 = vmul.f32 %v4783_v7, %v5764_v17  ;;  %v433_v39 = vmul.f32 %v4783_v7, %v5767_v38  ;;  %v430_v26 = vmul.f32 %v4782_v23, %v5764_v17  ;;  %v431_v11 = vmul.f32 %v4782_v23, %v5767_v38 }
  0xc6   :  { %v1892_v24 = vmax.f32 %v1792_v3, 0.0  ;;  %v1894_v54 = vmax.f32 %v1794_v12, 0.0  ;;  %v4787_v1 = vpop.permute.xlu1 %4786  ;;  %v1277_v4 = vmul.f32 %v4794_v59, %v5771_v25  ;;  %v1891_v14 = vmax.f32 %v1791_v30, 0.0  ;;  %v6010_v12 = vpop.permute.xlu0 %4868 }
  0xc7   :  { %2280 = vmatmul.mubr.bf16.gmra.mrb[12].mxu0 %v1981_v60  ;;  %v1893_v35 = vmax.f32 %v1793_v43, 0.0  ;;  %v4789_v18 = vunpack.i.h.bf16 %v4787_v1  ;;  %v4788_v53 = vunpack.i.l.bf16 %v4787_v1  ;;  %v543_v5 = vadd.f32 %v5774_v27, %v432_v9 }
  0xc8   :  { %4995 = vset.pattern.permute.xlu1 %v7433_v62  ;;  %v1984_v52 = vpack.c.bf16 %v1894_v54, %v1892_v24  ;;  %v544_v21 = vadd.f32 %v5779_v32, %v433_v39  ;;  %v541_v6 = vadd.f32 %v5774_v27, %v430_v26  ;;  %v542_v20 = vadd.f32 %v5779_v32, %v431_v11 }
  0xc9   :  { %4997 = vperm.xlu1 %4995, %v5662_v34   ;;  %v861_v0 = vmul.f32 %v4789_v18, %v5787_v44  ;;  %v862_v49 = vmul.f32 %v4789_v18, %v5789_v45  ;;  %v859_v2 = vmul.f32 %v4788_v53, %v5787_v44  ;;  %v860_v36 = vmul.f32 %v4788_v53, %v5789_v45 }
  0xca   :  { %2289 = vmatprep.mubr.bf16.mxu0 %v1984_v52  ;;  %v1983_v19 = vpack.c.bf16 %v1893_v35, %v1891_v14  ;;  %v4854_v9 = vunpack.i.h.bf16 %v4852_v61  ;;  %v4853_v39 = vunpack.i.l.bf16 %v4852_v61 }
  0xcb   :  { %v959_v15 = vadd.f32 %v859_v2, %v541_v6  ;;  %v960_v48 = vadd.f32 %v860_v36, %v542_v20  ;;  %v961_v58 = vadd.f32 %v861_v0, %v543_v5  ;;  %v962_v63 = vadd.f32 %v862_v49, %v544_v21  ;;  %v4799_v28 = vpop.permute.xlu1 %4798  ;;  %v4875_v49 = vpop.permute.xlu0 %4874 }
  0xcc   :  { %v4801_v37 = vunpack.i.h.bf16 %v4799_v28  ;;  %v4800_v34 = vunpack.i.l.bf16 %v4799_v28  ;;  %v866_v21 = vmul.f32 %v4854_v9, %v5789_v45  ;;  %v864_v6 = vmul.f32 %v4853_v39, %v5789_v45 }
  0xcd   :  { %5001 = vset.pattern.permute.xlu1 %v7435_v41  ;;  %v1379_v51 = vadd.f32 %v1279_v8, %v961_v58  ;;  %v1380_v60 = vadd.f32 %v1280_v56, %v962_v63  ;;  %v1377_v7 = vadd.f32 %v1277_v4, %v959_v15  ;;  %v1378_v23 = vadd.f32 %v1278_v40, %v960_v48 }
  0xce   :  { %5003 = vperm.xlu1 %5001, %v5683_v42   ;;  %v1697_v59 = vmul.f32 %v4801_v37, %v5781_v33  ;;  %v1698_v30 = vmul.f32 %v4801_v37, %v5791_v47  ;;  %v1695_v3 = vmul.f32 %v4800_v34, %v5781_v33  ;;  %v1696_v43 = vmul.f32 %v4800_v34, %v5791_v47 }
  0xcf   :  { %2290 = vmatmul.mubr.bf16.gmra.mrb[16].mxu0 %v1983_v19  ;;  %v865_v19 = vmul.f32 %v4854_v9, %v5787_v44  ;;  %v863_v61 = vmul.f32 %v4853_v39, %v5787_v44  ;;  %v4877_v37 = vunpack.i.h.bf16 %v4875_v49  ;;  %v4876_v34 = vunpack.i.l.bf16 %v4875_v49  ;;  %v6032_v39 = vpop.permute.xlu0 %4891 }
  0xd0   :  { %v4805_v26 = vpop.permute.xlu1 %4804  ;;  %v1796_v11 = vadd.f32 %v1696_v43, %v1378_v23  ;;  %v1798_v8 = vadd.f32 %v1698_v30, %v1380_v60  ;;  %v1795_v24 = vadd.f32 %v1695_v3, %v1377_v7  ;;  %v1797_v54 = vadd.f32 %v1697_v59, %v1379_v51 }
  0xd1   :  { %v4807_v1 = vunpack.i.h.bf16 %v4805_v26  ;;  %v4806_v56 = vunpack.i.l.bf16 %v4805_v26 }
  0xd2   :  { %5018 = vset.pattern.permute.xlu1 %v7432_v22  ;;  %v1896_v4 = vmax.f32 %v1796_v11, 0.0  ;;  %v1898_v14 = vmax.f32 %v1798_v8, 0.0  ;;  %v1895_v35 = vmax.f32 %v1795_v24, 0.0  ;;  %v1897_v18 = vmax.f32 %v1797_v54, 0.0 }
  0xd3   :  { %5020 = vperm.xlu1 %5018, %v5683_v42   ;;  %v436_v53 = vmul.f32 %v4807_v1, %v5764_v17  ;;  %v437_v40 = vmul.f32 %v4807_v1, %v5767_v38  ;;  %v434_v52 = vmul.f32 %v4806_v56, %v5764_v17  ;;  %v435_v5 = vmul.f32 %v4806_v56, %v5767_v38 }
  0xd4   :  { %v1986_v20 = vpack.c.bf16 %v1898_v14, %v1896_v4  ;;  %v1985_v0 = vpack.c.bf16 %v1897_v18, %v1895_v35  ;;  %v440_v11 = vmul.f32 %v4877_v37, %v5764_v17  ;;  %v438_v8 = vmul.f32 %v4876_v34, %v5764_v17 }
  0xd5   :  { %v548_v2 = vadd.f32 %v5779_v32, %v437_v40  ;;  %v546_v36 = vadd.f32 %v5779_v32, %v435_v5  ;;  %v4811_v15 = vpop.permute.xlu1 %4810  ;;  %v547_v48 = vadd.f32 %v5774_v27, %v436_v53  ;;  %v545_v58 = vadd.f32 %v5774_v27, %v434_v52 }
  0xd6   :  { %v4813_v63 = vunpack.i.h.bf16 %v4811_v15  ;;  %v4812_v28 = vunpack.i.l.bf16 %v4811_v15  ;;  %2299 = vmatprep.mubr.bf16.mxu0 %v1986_v20  ;;  %v441_v1 = vmul.f32 %v4877_v37, %v5767_v38  ;;  %v439_v56 = vmul.f32 %v4876_v34, %v5767_v38 }
  0xd7   :  { %5024 = vset.pattern.permute.xlu1 %v7433_v62  ;;  %v966_v51 = vadd.f32 %v866_v21, %v548_v2  ;;  %v964_v60 = vadd.f32 %v864_v6, %v546_v36  ;;  %2300 = vmatmul.mubr.bf16.gmra.mrb[20].mxu0 %v1985_v0  ;;  %v965_v59 = vadd.f32 %v865_v19, %v547_v48  ;;  %v4898_v19 = vpop.permute.xlu0 %4897 }
  0xd8   :  { %5026 = vperm.xlu1 %5024, %v5683_v42   ;;  %v1284_v7 = vmul.f32 %v4813_v63, %v5777_v29  ;;  %v1282_v23 = vmul.f32 %v4812_v28, %v5777_v29  ;;  %v963_v30 = vadd.f32 %v863_v61, %v545_v58  ;;  %v1283_v3 = vmul.f32 %v4813_v63, %v5771_v25 }
  0xd9   :  { %v1281_v43 = vmul.f32 %v4812_v28, %v5771_v25  ;;  %v551_v21 = vadd.f32 %v5774_v27, %v440_v11  ;;  %v549_v6 = vadd.f32 %v5774_v27, %v438_v8  ;;  %v550_v49 = vadd.f32 %v5779_v32, %v439_v56  ;;  %v4549_v8 = vld [vmem:[%s7406_s0 + $0xa0] sm:$0xff]  }
  0xda   :  { %v4817_v9 = vpop.permute.xlu1 %4816  ;;  %v1382_v24 = vadd.f32 %v1282_v23, %v964_v60  ;;  %v1384_v54 = vadd.f32 %v1284_v7, %v966_v51  ;;  %v1383_v40 = vadd.f32 %v1283_v3, %v965_v59  ;;  %v552_v15 = vadd.f32 %v5779_v32, %v441_v1 }
  0xdb   :  { %v4819_v42 = vunpack.i.h.bf16 %v4817_v9  ;;  %v4818_v26 = vunpack.i.l.bf16 %v4817_v9  ;;  %v1381_v53 = vadd.f32 %v1281_v43, %v963_v30  ;;  %v4848_v51 = vunpack.i.h.bf16 %v5988_v13 }
  0xdc   :  { %5041 = vset.pattern.permute.xlu1 %v7434_v10  ;;  %v4900_v7 = vunpack.i.h.bf16 %v4898_v19  ;;  %v4899_v23 = vunpack.i.l.bf16 %v4898_v19 }
  0xdd   :  { %5043 = vperm.xlu1 %5041, %v5699_v46   ;;  %v1701_v4 = vmul.f32 %v4819_v42, %v5781_v33  ;;  %v1702_v14 = vmul.f32 %v4819_v42, %v5791_v47  ;;  %v1699_v35 = vmul.f32 %v4818_v26, %v5781_v33  ;;  %v1700_v18 = vmul.f32 %v4818_v26, %v5791_v47 }
  0xde   :  { %v1705_v11 = vmul.f32 %v4900_v7, %v5781_v33  ;;  %v1704_v1 = vmul.f32 %v4899_v23, %v5791_v47 }
  0xdf   :  { %v1800_v52 = vadd.f32 %v1700_v18, %v1382_v24  ;;  %v1802_v5 = vadd.f32 %v1702_v14, %v1384_v54  ;;  %v4823_v20 = vpop.permute.xlu1 %4822  ;;  %v1799_v0 = vadd.f32 %v1699_v35, %v1381_v53  ;;  %v1801_v61 = vadd.f32 %v1701_v4, %v1383_v40 }
  0xe0   :  { %v4825_v2 = vunpack.i.h.bf16 %v4823_v20  ;;  %v4824_v36 = vunpack.i.l.bf16 %v4823_v20  ;;  %v1706_v24 = vmul.f32 %v4900_v7, %v5791_v47  ;;  %v1703_v54 = vmul.f32 %v4899_v23, %v5781_v33 }
  0xe1   :  { %5047 = vset.pattern.permute.xlu1 %v7432_v22  ;;  %v1900_v48 = vmax.f32 %v1800_v52, 0.0  ;;  %v1902_v58 = vmax.f32 %v1802_v5, 0.0  ;;  %v1899_v43 = vmax.f32 %v1799_v0, 0.0  ;;  %v1901_v56 = vmax.f32 %v1801_v61, 0.0 }
  0xe2   :  { %5049 = vperm.xlu1 %5047, %v5699_v46   ;;  %v869_v63 = vmul.f32 %v4825_v2, %v5787_v44  ;;  %v870_v28 = vmul.f32 %v4825_v2, %v5789_v45  ;;  %v867_v37 = vmul.f32 %v4824_v36, %v5787_v44  ;;  %v868_v34 = vmul.f32 %v4824_v36, %v5789_v45 }
  0xe3   :  { %v1988_v60 = vpack.c.bf16 %v1902_v58, %v1900_v48  ;;  %v1987_v53 = vpack.c.bf16 %v1901_v56, %v1899_v43  ;;  %v4512_v40 = vunpack.c.l.bf16 %v4549_v8  ;;  %v4513_v52 = vunpack.c.h.bf16 %v4549_v8 }
  0xe4   :  { %v967_v59 = vadd.f32 %v867_v37, %v549_v6  ;;  %v968_v30 = vadd.f32 %v868_v34, %v550_v49  ;;  %v969_v46 = vadd.f32 %v869_v63, %v551_v21  ;;  %v4829_v3 = vpop.permute.xlu1 %4828  ;;  %v970_v9 = vadd.f32 %v870_v28, %v552_v15 }
  0xe5   :  { %v4831_v42 = vunpack.i.h.bf16 %v4829_v3  ;;  %v4830_v26 = vunpack.i.l.bf16 %v4829_v3  ;;  %2309 = vmatprep.mubr.bf16.mxu0 %v1988_v60  ;;  %v1291_v49 = vmul.f32 %v4848_v51, %v5771_v25  ;;  %v4847_v2 = vunpack.i.l.bf16 %v5988_v13 }
  0xe6   :  { %5058 = vset.pattern.permute.xlu1 %v7435_v41  ;;  %2310 = vmatmul.mubr.bf16.gmra.mrb[24].mxu0 %v1987_v53  ;;  %v4870_v53 = vunpack.i.l.bf16 %v6010_v12 }
  0xe7   :  { %5060 = vperm.xlu1 %5058, %v5712_v50   ;;  %v1287_v4 = vmul.f32 %v4831_v42, %v5771_v25  ;;  %v1288_v14 = vmul.f32 %v4831_v42, %v5777_v29  ;;  %v1285_v35 = vmul.f32 %v4830_v26, %v5771_v25  ;;  %v1286_v18 = vmul.f32 %v4830_v26, %v5777_v29 }
  0xe9   :  { %v1385_v5 = vadd.f32 %v1285_v35, %v967_v59  ;;  %v1386_v21 = vadd.f32 %v1286_v18, %v968_v30  ;;  %v1387_v6 = vadd.f32 %v1287_v4, %v969_v46  ;;  %v1388_v20 = vadd.f32 %v1288_v14, %v970_v9  ;;  %v4835_v0 = vpop.permute.xlu1 %4834  ;;  %v4550_v35 = vld [vmem:[%s7406_s0 + $0xa8] sm:$0xff]  }
  0xea   :  { %v4837_v36 = vunpack.i.h.bf16 %v4835_v0  ;;  %v4836_v19 = vunpack.i.l.bf16 %v4835_v0  ;;  %v1292_v59 = vmul.f32 %v4848_v51, %v5777_v29  ;;  %v1289_v30 = vmul.f32 %v4847_v2, %v5771_v25 }
  0xeb   :  { %5064 = vset.pattern.permute.xlu1 %v7434_v10  ;;  %v1803_v61 = vadd.f32 %v1703_v54, %v1385_v5  ;;  %v1804_v15 = vadd.f32 %v1704_v1, %v1386_v21  ;;  %v1805_v48 = vadd.f32 %v1705_v11, %v1387_v6  ;;  %v1806_v58 = vadd.f32 %v1706_v24, %v1388_v20 }
  0xec   :  { %5066 = vperm.xlu1 %5064, %v5712_v50   ;;  %v444_v63 = vmul.f32 %v4837_v36, %v5764_v17  ;;  %v445_v28 = vmul.f32 %v4837_v36, %v5767_v38  ;;  %v442_v37 = vmul.f32 %v4836_v19, %v5764_v17  ;;  %v443_v34 = vmul.f32 %v4836_v19, %v5767_v38 }
  0xed   :  { %v1904_v13 = vmax.f32 %v1804_v15, 0.0  ;;  %v1906_v60 = vmax.f32 %v1806_v58, 0.0  ;;  %v1903_v7 = vmax.f32 %v1803_v61, 0.0  ;;  %v1905_v23 = vmax.f32 %v1805_v48, 0.0 }
  0xee   :  { %v1290_v46 = vmul.f32 %v4847_v2, %v5777_v29  ;;  %v555_v3 = vadd.f32 %v5774_v27, %v444_v63  ;;  %v4841_v43 = vpop.permute.xlu1 %4840  ;;  %v556_v8 = vadd.f32 %v5779_v32, %v445_v28  ;;  %v553_v24 = vadd.f32 %v5774_v27, %v442_v37 }
  0xef   :  { %v4843_v9 = vunpack.i.h.bf16 %v4841_v43  ;;  %v4842_v42 = vunpack.i.l.bf16 %v4841_v43  ;;  %v1990_v26 = vpack.c.bf16 %v1906_v60, %v1904_v13  ;;  %v1989_v11 = vpack.c.bf16 %v1905_v23, %v1903_v7 }
  0xf0   :  { %5076 = vset.pattern.permute.xlu1 %v7433_v62  ;;  %v554_v54 = vadd.f32 %v5779_v32, %v443_v34  ;;  %v6085_v51 = vpack.i.bf16 %v4513_v52, %v4512_v40  ;;  %v4871_v18 = vunpack.i.h.bf16 %v6010_v12  ;;  %v4516_v0 = vunpack.c.l.bf16 %v4550_v35 }
  0xf1   :  { %5078 = vperm.xlu1 %5076, %v5712_v50   ;;  %v873_v1 = vmul.f32 %v4843_v9, %v5787_v44  ;;  %v874_v56 = vmul.f32 %v4843_v9, %v5789_v45  ;;  %v871_v4 = vmul.f32 %v4842_v42, %v5787_v44  ;;  %v872_v14 = vmul.f32 %v4842_v42, %v5789_v45 }
  0xf2   :  { %2319 = vmatprep.mubr.bf16.mxu0 %v1990_v26  ;;  %5144 = vperm.xlu0 %5142, %v6085_v51   ;;  %v4517_v2 = vunpack.c.h.bf16 %v4550_v35  ;;  %v877_v28 = vmul.f32 %v4871_v18, %v5787_v44  ;;  %v878_v37 = vmul.f32 %v4871_v18, %v5789_v45  ;;  %v875_v34 = vmul.f32 %v4870_v53, %v5787_v44 }
  0xf3   :  { %2320 = vmatmul.mubr.bf16.gmra.mrb[28].mxu0 %v1989_v11  ;;  %v971_v50 = vadd.f32 %v871_v4, %v553_v24  ;;  %v972_v40 = vadd.f32 %v872_v14, %v554_v54  ;;  %v973_v52 = vadd.f32 %v873_v1, %v555_v3  ;;  %v974_v5 = vadd.f32 %v874_v56, %v556_v8  ;;  %v4858_v21 = vpop.permute.xlu1 %4857 }
  0xf4   :  { %v4860_v6 = vunpack.i.h.bf16 %v4858_v21  ;;  %v4859_v20 = vunpack.i.l.bf16 %v4858_v21  ;;  %v6107_v13 = vpack.i.bf16 %v4517_v2, %v4516_v0  ;;  %v4893_v56 = vunpack.i.l.bf16 %v6032_v39 }
  0xf5   :  { %5082 = vset.pattern.permute.xlu1 %v7435_v41  ;;  %v1389_v36 = vadd.f32 %v1289_v30, %v971_v50  ;;  %v1390_v19 = vadd.f32 %v1290_v46, %v972_v40  ;;  %v1391_v61 = vadd.f32 %v1291_v49, %v973_v52  ;;  %v1392_v12 = vadd.f32 %v1292_v59, %v974_v5 }
  0xf6   :  { %5084 = vperm.xlu1 %5082, %v5728_v55   ;;  %v1709_v15 = vmul.f32 %v4860_v6, %v5781_v33  ;;  %v1710_v48 = vmul.f32 %v4860_v6, %v5791_v47  ;;  %v1707_v58 = vmul.f32 %v4859_v20, %v5781_v33  ;;  %v1708_v63 = vmul.f32 %v4859_v20, %v5791_v47 }
  0xf7   :  { %5160 = vset.pattern.permute.xlu0 %v7434_v10  ;;  %v876_v30 = vmul.f32 %v4870_v53, %v5789_v45  ;;  %v4894_v46 = vunpack.i.h.bf16 %v6032_v39 }
  0xf8   :  { %v1807_v49 = vadd.f32 %v1707_v58, %v1389_v36  ;;  %v1808_v60 = vadd.f32 %v1708_v63, %v1390_v19  ;;  %v1809_v7 = vadd.f32 %v1709_v15, %v1391_v61  ;;  %v1810_v23 = vadd.f32 %v1710_v48, %v1392_v12  ;;  %v4864_v59 = vpop.permute.xlu1 %4863  ;;  %5162 = vperm.xlu0 %5160, %v6107_v13   ;;  %v4551_v15 = vld [vmem:[%s7406_s0 + $0xb0] sm:$0xff]  }
  0xf9   :  { %v4866_v3 = vunpack.i.h.bf16 %v4864_v59  ;;  %v4865_v43 = vunpack.i.l.bf16 %v4864_v59  ;;  %v452_v52 = vmul.f32 %v4894_v46, %v5764_v17  ;;  %v453_v5 = vmul.f32 %v4894_v46, %v5767_v38 }
  0xfa   :  { %5094 = vset.pattern.permute.xlu1 %v7432_v22  ;;  %v1908_v9 = vmax.f32 %v1808_v60, 0.0  ;;  %v1910_v42 = vmax.f32 %v1810_v23, 0.0  ;;  %v1907_v26 = vmax.f32 %v1807_v49, 0.0  ;;  %v1909_v11 = vmax.f32 %v1809_v7, 0.0 }
  0xfb   :  { %5096 = vperm.xlu1 %5094, %v5728_v55   ;;  %v448_v8 = vmul.f32 %v4866_v3, %v5764_v17  ;;  %v449_v24 = vmul.f32 %v4866_v3, %v5767_v38  ;;  %v446_v54 = vmul.f32 %v4865_v43, %v5764_v17  ;;  %v447_v1 = vmul.f32 %v4865_v43, %v5767_v38 }
  0xfc   :  { %v1992_v4 = vpack.c.bf16 %v1910_v42, %v1908_v9  ;;  %v1991_v14 = vpack.c.bf16 %v1909_v11, %v1907_v26  ;;  %5178 = vset.pattern.permute.xlu0 %v7435_v41  ;;  %v563_v48 = vadd.f32 %v5774_v27, %v452_v52  ;;  %v450_v58 = vmul.f32 %v4893_v56, %v5764_v17  ;;  %v4915_v42 = vpop.permute.xlu0 %4914 }
  0xfd   :  { %v559_v35 = vadd.f32 %v5774_v27, %v448_v8  ;;  %v560_v18 = vadd.f32 %v5779_v32, %v449_v24  ;;  %v557_v53 = vadd.f32 %v5774_v27, %v446_v54  ;;  %v558_v50 = vadd.f32 %v5779_v32, %v447_v1  ;;  %v4881_v40 = vpop.permute.xlu1 %4880 }
  0xfe   :  { %v4883_v39 = vunpack.i.h.bf16 %v4881_v40  ;;  %v4882_v21 = vunpack.i.l.bf16 %v4881_v40  ;;  %2329 = vmatprep.mubr.bf16.mxu0 %v1992_v4  ;;  %v451_v63 = vmul.f32 %v4893_v56, %v5767_v38  ;;  %v4520_v59 = vunpack.c.l.bf16 %v4551_v15 }
  0xff   :  { %5100 = vset.pattern.permute.xlu1 %v7433_v62  ;;  %v975_v6 = vadd.f32 %v875_v34, %v557_v53  ;;  %v976_v20 = vadd.f32 %v876_v30, %v558_v50  ;;  %v977_v0 = vadd.f32 %v877_v28, %v559_v35  ;;  %v978_v2 = vadd.f32 %v878_v37, %v560_v18 }
 0x100   :  { %5102 = vperm.xlu1 %5100, %v5728_v55   ;;  %v1295_v36 = vmul.f32 %v4883_v39, %v5771_v25  ;;  %v1296_v19 = vmul.f32 %v4883_v39, %v5777_v29  ;;  %v1293_v61 = vmul.f32 %v4882_v21, %v5771_v25  ;;  %v1294_v12 = vmul.f32 %v4882_v21, %v5777_v29 }
 0x101   :  { %2330 = vmatmul.mubr.bf16.gmra.mrb[32].mxu0 %v1991_v14  ;;  %v564_v55 = vadd.f32 %v5779_v32, %v453_v5  ;;  %v4521_v30 = vunpack.c.h.bf16 %v4551_v15  ;;  %v561_v26 = vadd.f32 %v5774_v27, %v450_v58  ;;  %v562_v11 = vadd.f32 %v5779_v32, %v451_v63 }
 0x102   :  { %v4887_v28 = vpop.permute.xlu1 %4886  ;;  %v1393_v37 = vadd.f32 %v1293_v61, %v975_v6  ;;  %v1394_v34 = vadd.f32 %v1294_v12, %v976_v20  ;;  %v1395_v7 = vadd.f32 %v1295_v36, %v977_v0  ;;  %v1396_v23 = vadd.f32 %v1296_v19, %v978_v2  ;;  %v4933_v36 = vpop.permute.xlu0 %4932 }
 0x103   :  { %v4889_v49 = vunpack.i.h.bf16 %v4887_v28  ;;  %v4888_v60 = vunpack.i.l.bf16 %v4887_v28  ;;  %v6147_v8 = vpack.i.bf16 %v4521_v30, %v4520_v59  ;;  %v4917_v18 = vunpack.i.h.bf16 %v4915_v42 }
 0x104   :  { %5112 = vset.pattern.permute.xlu1 %v7434_v10  ;;  %v4916_v53 = vunpack.i.l.bf16 %v4915_v42 }
 0x105   :  { %5114 = vperm.xlu1 %5112, %v5761_v16   ;;  %v1713_v46 = vmul.f32 %v4889_v49, %v5781_v33  ;;  %v1714_v3 = vmul.f32 %v4889_v49, %v5791_v47  ;;  %v1711_v43 = vmul.f32 %v4888_v60, %v5781_v33  ;;  %v1712_v9 = vmul.f32 %v4888_v60, %v5791_v47 }
 0x106   :  { %5180 = vperm.xlu0 %5178, %v6147_v8   ;;  %v1717_v61 = vmul.f32 %v4917_v18, %v5781_v33  ;;  %v1715_v12 = vmul.f32 %v4916_v53, %v5781_v33  ;;  %v1716_v15 = vmul.f32 %v4916_v53, %v5791_v47  ;;  %v4935_v60 = vunpack.i.h.bf16 %v4933_v36 }
 0x107   :  { %v1811_v24 = vadd.f32 %v1711_v43, %v1393_v37  ;;  %v1812_v54 = vadd.f32 %v1712_v9, %v1394_v34  ;;  %v1813_v1 = vadd.f32 %v1713_v46, %v1395_v7  ;;  %v1814_v56 = vadd.f32 %v1714_v3, %v1396_v23  ;;  %v4904_v4 = vpop.permute.xlu1 %4903 }
 0x108   :  { %v4906_v14 = vunpack.i.h.bf16 %v4904_v4  ;;  %v4905_v35 = vunpack.i.l.bf16 %v4904_v4 }
 0x109   :  { %5118 = vset.pattern.permute.xlu1 %v7432_v22  ;;  %v1912_v50 = vmax.f32 %v1812_v54, 0.0  ;;  %v1914_v40 = vmax.f32 %v1814_v56, 0.0  ;;  %v1911_v52 = vmax.f32 %v1811_v24, 0.0  ;;  %v1913_v5 = vmax.f32 %v1813_v1, 0.0 }
 0x10a   :  { %5120 = vperm.xlu1 %5118, %v5761_v16   ;;  %v881_v39 = vmul.f32 %v4906_v14, %v5787_v44  ;;  %v882_v21 = vmul.f32 %v4906_v14, %v5789_v45  ;;  %v879_v6 = vmul.f32 %v4905_v35, %v5787_v44  ;;  %v880_v20 = vmul.f32 %v4905_v35, %v5789_v45 }
 0x10b   :  { %v1994_v0 = vpack.c.bf16 %v1914_v40, %v1912_v50  ;;  %v1993_v2 = vpack.c.bf16 %v1913_v5, %v1911_v52  ;;  %v1718_v16 = vmul.f32 %v4917_v18, %v5791_v47  ;;  %5196 = vset.pattern.permute.xlu0 %v7433_v62  ;;  %v4934_v24 = vunpack.i.l.bf16 %v4933_v36 }
 0x10c   :  { %v4910_v19 = vpop.permute.xlu1 %4909  ;;  %v979_v58 = vadd.f32 %v879_v6, %v561_v26  ;;  %v980_v63 = vadd.f32 %v880_v20, %v562_v11  ;;  %v981_v34 = vadd.f32 %v881_v39, %v563_v48  ;;  %v982_v49 = vadd.f32 %v882_v21, %v564_v55  ;;  %5198 = vperm.xlu0 %5196, %v6147_v8   ;;  %v6168_v55 = vpop.permute.xlu0 %4985 }
 0x10d   :  { %v4912_v28 = vunpack.i.h.bf16 %v4910_v19  ;;  %v4911_v37 = vunpack.i.l.bf16 %v4910_v19  ;;  %2339 = vmatprep.mubr.bf16.mxu0 %v1994_v0  ;;  %v1303_v11 = vmul.f32 %v4935_v60, %v5771_v25  ;;  %v1304_v21 = vmul.f32 %v4935_v60, %v5777_v29 }
 0x10e   :  { %5130 = vset.pattern.permute.xlu1 %v7435_v41  ;;  %2340 = vmatmul.mubr.bf16.gmra.mrb[36].mxu0 %v1993_v2  ;;  %v1301_v6 = vmul.f32 %v4934_v24, %v5771_v25  ;;  %v1302_v20 = vmul.f32 %v4934_v24, %v5777_v29 }
 0x10f   :  { %5132 = vperm.xlu1 %5130, %v6085_v51   ;;  %v1299_v7 = vmul.f32 %v4912_v28, %v5771_v25  ;;  %v1300_v23 = vmul.f32 %v4912_v28, %v5777_v29  ;;  %v1297_v59 = vmul.f32 %v4911_v37, %v5771_v25  ;;  %v1298_v30 = vmul.f32 %v4911_v37, %v5777_v29 }
 0x110   :  { %5214 = vset.pattern.permute.xlu0 %v7432_v22 }
 0x111   :  { %v1397_v46 = vadd.f32 %v1297_v59, %v979_v58  ;;  %v1398_v3 = vadd.f32 %v1298_v30, %v980_v63  ;;  %v1399_v43 = vadd.f32 %v1299_v7, %v981_v34  ;;  %v1400_v9 = vadd.f32 %v1300_v23, %v982_v49  ;;  %v4921_v48 = vpop.permute.xlu1 %4920 }
 0x112   :  { %v4923_v42 = vunpack.i.h.bf16 %v4921_v48  ;;  %v4922_v26 = vunpack.i.l.bf16 %v4921_v48 }
 0x113   :  { %5136 = vset.pattern.permute.xlu1 %v7434_v10  ;;  %v1815_v54 = vadd.f32 %v1715_v12, %v1397_v46  ;;  %v1816_v1 = vadd.f32 %v1716_v15, %v1398_v3  ;;  %v1817_v56 = vadd.f32 %v1717_v61, %v1399_v43  ;;  %v1818_v4 = vadd.f32 %v1718_v16, %v1400_v9  ;;  %v4992_v61 = vpop.permute.xlu0 %4991  ;;  %v5301_v3 = vld [vmem:[%s7410_s5 + $0x4] ss:$8 sps:$4 sm:$0xff]  }
 0x114   :  { %5138 = vperm.xlu1 %5136, %v6085_v51   ;;  %v456_v14 = vmul.f32 %v4923_v42, %v5764_v17  ;;  %v457_v35 = vmul.f32 %v4923_v42, %v5767_v38  ;;  %v454_v18 = vmul.f32 %v4922_v26, %v5764_v17  ;;  %v455_v53 = vmul.f32 %v4922_v26, %v5767_v38 }
 0x115   :  { %v1916_v50 = vmax.f32 %v1816_v1, 0.0  ;;  %v1918_v40 = vmax.f32 %v1818_v4, 0.0  ;;  %v1915_v52 = vmax.f32 %v1815_v54, 0.0  ;;  %v1917_v5 = vmax.f32 %v1817_v56, 0.0  ;;  %2880 = vmatprep.subr.bf16.mxu1 %v5301_v3 }
 0x116   :  { %v4927_v39 = vpop.permute.xlu1 %4926  ;;  %v567_v16 = vadd.f32 %v5774_v27, %v456_v14  ;;  %v568_v12 = vadd.f32 %v5779_v32, %v457_v35  ;;  %v565_v15 = vadd.f32 %v5774_v27, %v454_v18  ;;  %v566_v58 = vadd.f32 %v5779_v32, %v455_v53 }
 0x117   :  { %v4929_v0 = vunpack.i.h.bf16 %v4927_v39  ;;  %v4928_v2 = vunpack.i.l.bf16 %v4927_v39  ;;  %v1996_v36 = vpack.c.bf16 %v1918_v40, %v1916_v50  ;;  %v1995_v19 = vpack.c.bf16 %v1917_v5, %v1915_v52  ;;  %v6196_v26 = vpop.permute.xlu0 %5008 }
 0x118   :  { %5148 = vset.pattern.permute.xlu1 %v7433_v62  ;;  %v4994_v49 = vunpack.i.h.bf16 %v4992_v61  ;;  %v4993_v14 = vunpack.i.l.bf16 %v4992_v61 }
 0x119   :  { %5150 = vperm.xlu1 %5148, %v6085_v51   ;;  %v885_v63 = vmul.f32 %v4929_v0, %v5787_v44  ;;  %v886_v28 = vmul.f32 %v4929_v0, %v5789_v45  ;;  %v883_v37 = vmul.f32 %v4928_v2, %v5787_v44  ;;  %v884_v34 = vmul.f32 %v4928_v2, %v5789_v45 }
 0x11a   :  { %2349 = vmatprep.mubr.bf16.mxu0 %v1996_v36  ;;  %v889_v4 = vmul.f32 %v4994_v49, %v5787_v44  ;;  %v890_v5 = vmul.f32 %v4994_v49, %v5789_v45 }
 0x11b   :  { %2350 = vmatmul.mubr.bf16.gmra.mrb[40].mxu0 %v1995_v19  ;;  %v983_v60 = vadd.f32 %v883_v37, %v565_v15  ;;  %v984_v7 = vadd.f32 %v884_v34, %v566_v58  ;;  %v985_v23 = vadd.f32 %v885_v63, %v567_v16  ;;  %v986_v59 = vadd.f32 %v886_v28, %v568_v12  ;;  %v4939_v30 = vpop.permute.xlu1 %4938  ;;  %v5015_v61 = vpop.permute.xlu0 %5014  ;;  %v4552_v16 = vld [vmem:[%s7406_s0 + $0xb8] sm:$0xff]  }
 0x11c   :  { %v4941_v46 = vunpack.i.h.bf16 %v4939_v30  ;;  %v4940_v51 = vunpack.i.l.bf16 %v4939_v30  ;;  %v887_v12 = vmul.f32 %v4993_v14, %v5787_v44  ;;  %v888_v15 = vmul.f32 %v4993_v14, %v5789_v45 }
 0x11d   :  { %5154 = vset.pattern.permute.xlu1 %v7435_v41  ;;  %v1403_v43 = vadd.f32 %v1303_v11, %v985_v23  ;;  %v1404_v9 = vadd.f32 %v1304_v21, %v986_v59  ;;  %v1401_v48 = vadd.f32 %v1301_v6, %v983_v60  ;;  %v1402_v42 = vadd.f32 %v1302_v20, %v984_v7 }
 0x11e   :  { %5156 = vperm.xlu1 %5154, %v6107_v13   ;;  %v1721_v24 = vmul.f32 %v4941_v46, %v5781_v33  ;;  %v1722_v54 = vmul.f32 %v4941_v46, %v5791_v47  ;;  %v1719_v1 = vmul.f32 %v4940_v51, %v5781_v33  ;;  %v1720_v56 = vmul.f32 %v4940_v51, %v5791_v47  ;;  %v4553_v51 = vld [vmem:[%s7406_s0 + $0xc0] sm:$0xff]  }
 0x11f   :  { %v5017_v59 = vunpack.i.h.bf16 %v5015_v61  ;;  %v4524_v30 = vunpack.c.l.bf16 %v4552_v16  ;;  %v4525_v46 = vunpack.c.h.bf16 %v4552_v16 }
 0x120   :  { %v1819_v11 = vadd.f32 %v1719_v1, %v1401_v48  ;;  %v1820_v35 = vadd.f32 %v1720_v56, %v1402_v42  ;;  %v1821_v18 = vadd.f32 %v1721_v24, %v1403_v43  ;;  %v1822_v53 = vadd.f32 %v1722_v54, %v1404_v9  ;;  %v4945_v50 = vpop.permute.xlu1 %4944  ;;  %v6226_v1 = vpop.permute.xlu0 %5031 }
 0x121   :  { %v4947_v40 = vunpack.i.h.bf16 %v4945_v50  ;;  %v4946_v52 = vunpack.i.l.bf16 %v4945_v50  ;;  %v5016_v48 = vunpack.i.l.bf16 %v5015_v61 }
 0x122   :  { %5166 = vset.pattern.permute.xlu1 %v7432_v22  ;;  %v1920_v39 = vmax.f32 %v1820_v35, 0.0  ;;  %v1922_v21 = vmax.f32 %v1822_v53, 0.0  ;;  %v1919_v6 = vmax.f32 %v1819_v11, 0.0  ;;  %v1921_v20 = vmax.f32 %v1821_v18, 0.0 }
 0x123   :  { %5168 = vperm.xlu1 %5166, %v6107_v13   ;;  %v460_v0 = vmul.f32 %v4947_v40, %v5764_v17  ;;  %v461_v2 = vmul.f32 %v4947_v40, %v5767_v38  ;;  %v458_v36 = vmul.f32 %v4946_v52, %v5764_v17  ;;  %v459_v19 = vmul.f32 %v4946_v52, %v5767_v38 }
 0x124   :  { %v1998_v58 = vpack.c.bf16 %v1922_v21, %v1920_v39  ;;  %v1997_v63 = vpack.c.bf16 %v1921_v20, %v1919_v6  ;;  %v4528_v11 = vunpack.c.l.bf16 %v4553_v51  ;;  %v4529_v35 = vunpack.c.h.bf16 %v4553_v51  ;;  %v5038_v61 = vpop.permute.xlu0 %5037 }
 0x125   :  { %v571_v28 = vadd.f32 %v5774_v27, %v460_v0  ;;  %v572_v37 = vadd.f32 %v5779_v32, %v461_v2  ;;  %v569_v34 = vadd.f32 %v5774_v27, %v458_v36  ;;  %v570_v49 = vadd.f32 %v5779_v32, %v459_v19 }
 0x126   :  { %v4951_v60 = vpop.permute.xlu1 %4950  ;;  %2359 = vmatprep.mubr.bf16.mxu0 %v1998_v58  ;;  %v464_v18 = vmul.f32 %v5017_v59, %v5764_v17  ;;  %v6236_v53 = vpack.i.bf16 %v4529_v35, %v4528_v11  ;;  %v465_v52 = vmul.f32 %v5017_v59, %v5767_v38  ;;  %v5039_v51 = vunpack.i.l.bf16 %v5038_v61 }
 0x127   :  { %5172 = vset.pattern.permute.xlu1 %v7433_v62  ;;  %v4953_v7 = vunpack.i.h.bf16 %v4951_v60  ;;  %v4952_v23 = vunpack.i.l.bf16 %v4951_v60  ;;  %v989_v3 = vadd.f32 %v889_v4, %v571_v28  ;;  %v990_v43 = vadd.f32 %v890_v5, %v572_v37  ;;  %2360 = vmatmul.mubr.bf16.gmra.mrb[44].mxu0 %v1997_v63 }
 0x128   :  { %5174 = vperm.xlu1 %5172, %v6107_v13   ;;  %v987_v9 = vadd.f32 %v887_v12, %v569_v34  ;;  %v988_v42 = vadd.f32 %v888_v15, %v570_v49  ;;  %v6228_v13 = vpack.i.bf16 %v4525_v46, %v4524_v30  ;;  %v462_v5 = vmul.f32 %v5016_v48, %v5764_v17 }
 0x129   :  { %v1307_v24 = vmul.f32 %v4953_v7, %v5771_v25  ;;  %v1308_v54 = vmul.f32 %v4953_v7, %v5777_v29  ;;  %v1305_v56 = vmul.f32 %v4952_v23, %v5771_v25  ;;  %v1306_v14 = vmul.f32 %v4952_v23, %v5777_v29 }
 0x12a   :  { %5216 = vperm.xlu0 %5214, %v6228_v13   ;;  %v575_v16 = vadd.f32 %v5774_v27, %v464_v18  ;;  %v463_v12 = vmul.f32 %v5016_v48, %v5767_v38  ;;  %v576_v37 = vadd.f32 %v5779_v32, %v465_v52  ;;  %v573_v34 = vadd.f32 %v5774_v27, %v462_v5 }
 0x12b   :  { %v1405_v39 = vadd.f32 %v1305_v56, %v987_v9  ;;  %v1406_v21 = vadd.f32 %v1306_v14, %v988_v42  ;;  %v1407_v6 = vadd.f32 %v1307_v24, %v989_v3  ;;  %v1408_v20 = vadd.f32 %v1308_v54, %v990_v43 }
 0x12c   :  { %5184 = vset.pattern.permute.xlu1 %v7434_v10  ;;  %v5040_v60 = vunpack.i.h.bf16 %v5038_v61  ;;  %v574_v46 = vadd.f32 %v5779_v32, %v463_v12  ;;  %v1727_v18 = vmul.f32 %v5039_v51, %v5781_v33 }
 0x12d   :  { %5186 = vperm.xlu1 %5184, %v6147_v8   ;;  %v4957_v4 = vpop.permute.xlu1 %4956 }
 0x12e   :  { %v4959_v50 = vunpack.i.h.bf16 %v4957_v4  ;;  %v4958_v40 = vunpack.i.l.bf16 %v4957_v4  ;;  %5232 = vset.pattern.permute.xlu0 %v7434_v10  ;;  %v1729_v14 = vmul.f32 %v5040_v60, %v5781_v33  ;;  %v1730_v11 = vmul.f32 %v5040_v60, %v5791_v47 }
 0x12f   :  { %5234 = vperm.xlu0 %5232, %v6236_v53  }
 0x130   :  { %v1725_v0 = vmul.f32 %v4959_v50, %v5781_v33  ;;  %v1726_v2 = vmul.f32 %v4959_v50, %v5791_v47  ;;  %v1723_v36 = vmul.f32 %v4958_v40, %v5781_v33  ;;  %v1724_v19 = vmul.f32 %v4958_v40, %v5791_v47 }
 0x131   :  { %5190 = vset.pattern.permute.xlu1 %v7432_v22  ;;  %v1728_v50 = vmul.f32 %v5039_v51, %v5791_v47  ;;  %v4988_v51 = vunpack.i.h.bf16 %v6168_v55 }
 0x132   :  { %v1823_v15 = vadd.f32 %v1723_v36, %v1405_v39  ;;  %v1824_v58 = vadd.f32 %v1724_v19, %v1406_v21  ;;  %v1825_v63 = vadd.f32 %v1725_v0, %v1407_v6  ;;  %v1826_v28 = vadd.f32 %v1726_v2, %v1408_v20  ;;  %5192 = vperm.xlu1 %5190, %v6147_v8  }
 0x133   :  { %5250 = vset.pattern.permute.xlu0 %v7433_v62 }
 0x134   :  { %v4963_v49 = vpop.permute.xlu1 %4962  ;;  %v1924_v59 = vmax.f32 %v1824_v58, 0.0  ;;  %v1926_v30 = vmax.f32 %v1826_v28, 0.0  ;;  %v1923_v3 = vmax.f32 %v1823_v15, 0.0  ;;  %v1925_v43 = vmax.f32 %v1825_v63, 0.0 }
 0x135   :  { %v4965_v7 = vunpack.i.h.bf16 %v4963_v49  ;;  %v4964_v23 = vunpack.i.l.bf16 %v4963_v49 }
 0x136   :  { %5202 = vset.pattern.permute.xlu1 %v7435_v41  ;;  %v2000_v24 = vpack.c.bf16 %v1926_v30, %v1924_v59  ;;  %v1999_v54 = vpack.c.bf16 %v1925_v43, %v1923_v3 }
 0x137   :  { %v893_v9 = vmul.f32 %v4965_v7, %v5787_v44  ;;  %v894_v8 = vmul.f32 %v4965_v7, %v5789_v45  ;;  %v891_v48 = vmul.f32 %v4964_v23, %v5787_v44  ;;  %v892_v42 = vmul.f32 %v4964_v23, %v5789_v45  ;;  %5204 = vperm.xlu1 %5202, %v6228_v13  }
 0x138   :  { %2369 = vmatprep.mubr.bf16.mxu0 %v2000_v24 }
 0x139   :  { %v4969_v56 = vpop.permute.xlu1 %4968  ;;  %v991_v40 = vadd.f32 %v891_v48, %v573_v34  ;;  %v992_v52 = vadd.f32 %v892_v42, %v574_v46  ;;  %v993_v5 = vadd.f32 %v893_v9, %v575_v16  ;;  %v994_v39 = vadd.f32 %v894_v8, %v576_v37  ;;  %2370 = vmatmul.mubr.bf16.gmra.mrb[48].mxu0 %v1999_v54 }
 0x13a   :  { %v4971_v35 = vunpack.i.h.bf16 %v4969_v56  ;;  %v4970_v4 = vunpack.i.l.bf16 %v4969_v56  ;;  %v4987_v16 = vunpack.i.l.bf16 %v6168_v55  ;;  %v5299_v55 = vld [vmem:[%s7410_s5] ss:$8 sps:$4 sm:$0xff]  }
 0x13b   :  { %5208 = vset.pattern.permute.xlu1 %v7434_v10 }
 0x13c   :  { %v1311_v21 = vmul.f32 %v4971_v35, %v5771_v25  ;;  %v1312_v6 = vmul.f32 %v4971_v35, %v5777_v29  ;;  %v1309_v20 = vmul.f32 %v4970_v4, %v5771_v25  ;;  %v1310_v0 = vmul.f32 %v4970_v4, %v5777_v29  ;;  %5210 = vperm.xlu1 %5208, %v6228_v13  }
 0x13d   :  { %v1313_v3 = vmul.f32 %v4987_v16, %v5771_v25  ;;  %v1314_v43 = vmul.f32 %v4987_v16, %v5777_v29  ;;  %v5307_v16 = vld [vmem:[%s7410_s5 + $0x24] ss:$8 sps:$4 sm:$0xff]  }
 0x13e   :  { %v1409_v2 = vadd.f32 %v1309_v20, %v991_v40  ;;  %v1411_v36 = vadd.f32 %v1311_v21, %v993_v5  ;;  %v4975_v19 = vpop.permute.xlu1 %4974  ;;  %v1410_v61 = vadd.f32 %v1310_v0, %v992_v52  ;;  %v1412_v12 = vadd.f32 %v1312_v6, %v994_v39 }
 0x13f   :  { %v4977_v15 = vunpack.i.h.bf16 %v4975_v19  ;;  %v4976_v58 = vunpack.i.l.bf16 %v4975_v19  ;;  %v1315_v40 = vmul.f32 %v4988_v51, %v5771_v25  ;;  %v1316_v52 = vmul.f32 %v4988_v51, %v5777_v29 }
 0x140   :  { %v1827_v63 = vadd.f32 %v1727_v18, %v1409_v2  ;;  %v1829_v28 = vadd.f32 %v1729_v14, %v1411_v36  ;;  %v1828_v37 = vadd.f32 %v1728_v50, %v1410_v61  ;;  %v1830_v34 = vadd.f32 %v1730_v11, %v1412_v12  ;;  %5220 = vset.pattern.permute.xlu1 %v7433_v62  ;;  %v5304_v50 = vld [vmem:[%s7410_s5 + $0x14] ss:$8 sps:$4 sm:$0xff]   ;;  %v5302_v2 = vld [vmem:[%s7410_s5 + $0x10] ss:$8 sps:$4 sm:$0xff]  }
 0x141   :  { %v468_v49 = vmul.f32 %v4977_v15, %v5764_v17  ;;  %v469_v60 = vmul.f32 %v4977_v15, %v5767_v38  ;;  %v466_v10 = vmul.f32 %v4976_v58, %v5764_v17  ;;  %v467_v7 = vmul.f32 %v4976_v58, %v5767_v38  ;;  %5222 = vperm.xlu1 %5220, %v6228_v13  }
 0x142   :  { %v1928_v23 = vmax.f32 %v1828_v37, 0.0  ;;  %v1930_v59 = vmax.f32 %v1830_v34, 0.0  ;;  %v1927_v30 = vmax.f32 %v1827_v63, 0.0  ;;  %v1929_v46 = vmax.f32 %v1829_v28, 0.0 }
 0x143   :  { %v4981_v9 = vpop.permute.xlu1 %4980  ;;  %v579_v54 = vadd.f32 %v5774_v27, %v468_v49  ;;  %v580_v56 = vadd.f32 %v5779_v32, %v469_v60  ;;  %v577_v13 = vadd.f32 %v5774_v27, %v466_v10  ;;  %v578_v14 = vadd.f32 %v5779_v32, %v467_v7 }
 0x144   :  { %v4983_v8 = vunpack.i.h.bf16 %v4981_v9  ;;  %v4982_v48 = vunpack.i.l.bf16 %v4981_v9  ;;  %v2002_v42 = vpack.c.bf16 %v1930_v59, %v1928_v23  ;;  %v2001_v24 = vpack.c.bf16 %v1929_v46, %v1927_v30  ;;  %v5305_v30 = vld [vmem:[%s7410_s5 + $0x20] ss:$8 sps:$4 sm:$0xff]   ;;  %v5310_v9 = vld [vmem:[%s7410_s5 + $0x34] ss:$8 sps:$4 sm:$0xff]  }
 0x145   :  { %5226 = vset.pattern.permute.xlu1 %v7435_v41  ;;  %v5011_v20 = vunpack.i.h.bf16 %v6196_v26  ;;  %v5010_v15 = vunpack.i.l.bf16 %v6196_v26 }
 0x146   :  { %v897_v11 = vmul.f32 %v4983_v8, %v5787_v44  ;;  %v898_v35 = vmul.f32 %v4983_v8, %v5789_v45  ;;  %v895_v4 = vmul.f32 %v4982_v48, %v5787_v44  ;;  %v896_v18 = vmul.f32 %v4982_v48, %v5789_v45  ;;  %5228 = vperm.xlu1 %5226, %v6236_v53  }
 0x147   :  { %2379 = vmatprep.mubr.bf16.mxu1 %v2002_v42  ;;  %v901_v60 = vmul.f32 %v5011_v20, %v5787_v44  ;;  %v902_v10 = vmul.f32 %v5011_v20, %v5789_v45  ;;  %v899_v46 = vmul.f32 %v5010_v15, %v5787_v44  ;;  %v900_v51 = vmul.f32 %v5010_v15, %v5789_v45 }
 0x148   :  { %v995_v5 = vadd.f32 %v895_v4, %v577_v13  ;;  %v996_v39 = vadd.f32 %v896_v18, %v578_v14  ;;  %v997_v21 = vadd.f32 %v897_v11, %v579_v54  ;;  %v998_v6 = vadd.f32 %v898_v35, %v580_v56  ;;  %2380 = vmatmul.mubr.bf16.vlgmr.msra.gmra.mrb[0].mxu1 %v2001_v24  ;;  %v4998_v0 = vpop.permute.xlu1 %4997 }
 0x149   :  { %2881 = vmatpush1.bf16.msra.mxu1 %v5299_v55  ;;  %v5000_v36 = vunpack.i.h.bf16 %v4998_v0  ;;  %v4999_v19 = vunpack.i.l.bf16 %v4998_v0 }
 0x14a   :  { %v1413_v61 = vadd.f32 %v1313_v3, %v995_v5  ;;  %v1414_v12 = vadd.f32 %v1314_v43, %v996_v39  ;;  %2882 = vmatprep.subr.bf16.mxu1 %v5304_v50  ;;  %v1415_v58 = vadd.f32 %v1315_v40, %v997_v21  ;;  %v1416_v63 = vadd.f32 %v1316_v52, %v998_v6 }
 0x14b   :  { %5238 = vset.pattern.permute.xlu1 %v7432_v22  ;;  %v1733_v28 = vmul.f32 %v5000_v36, %v5781_v33  ;;  %v1734_v37 = vmul.f32 %v5000_v36, %v5791_v47  ;;  %v1731_v34 = vmul.f32 %v4999_v19, %v5781_v33  ;;  %v1732_v49 = vmul.f32 %v4999_v19, %v5791_v47 }
 0x14c   :  { %5240 = vperm.xlu1 %5238, %v6236_v53   ;;  %v5034_v52 = vunpack.i.h.bf16 %v6226_v1  ;;  %v5033_v5 = vunpack.i.l.bf16 %v6226_v1  ;;  %v5311_v1 = vld [vmem:[%s7410_s5 + $0x40] ss:$8 sps:$4 sm:$0xff]  }
 0x14d   :  { %2883 = vmatpush1.bf16.msra.mxu1 %v5302_v2  ;;  %v1831_v26 = vadd.f32 %v1731_v34, %v1413_v61  ;;  %v1832_v7 = vadd.f32 %v1732_v49, %v1414_v12  ;;  %v1833_v23 = vadd.f32 %v1733_v28, %v1415_v58  ;;  %v1834_v59 = vadd.f32 %v1734_v37, %v1416_v63  ;;  %v5004_v22 = vpop.permute.xlu1 %5003 }
 0x14e   :  { %2884 = vmatprep.subr.bf16.mxu1 %v5307_v16  ;;  %v5006_v3 = vunpack.i.h.bf16 %v5004_v22  ;;  %v5005_v43 = vunpack.i.l.bf16 %v5004_v22  ;;  %v5316_v16 = vld [vmem:[%s7410_s5 + $0x54] ss:$8 sps:$4 sm:$0xff]   ;;  %v476_v15 = vmul.f32 %v5034_v52, %v5764_v17  ;;  %v477_v58 = vmul.f32 %v5034_v52, %v5767_v38 }
 0x14f   :  { %v1932_v8 = vmax.f32 %v1832_v7, 0.0  ;;  %v1934_v48 = vmax.f32 %v1834_v59, 0.0  ;;  %v1931_v42 = vmax.f32 %v1831_v26, 0.0  ;;  %v1933_v24 = vmax.f32 %v1833_v23, 0.0  ;;  %v5314_v23 = vld [vmem:[%s7410_s5 + $0x50] ss:$8 sps:$4 sm:$0xff]  }
 0x150   :  { %5244 = vset.pattern.permute.xlu1 %v7433_v62  ;;  %v472_v54 = vmul.f32 %v5006_v3, %v5764_v17  ;;  %v473_v56 = vmul.f32 %v5006_v3, %v5767_v38  ;;  %v470_v13 = vmul.f32 %v5005_v43, %v5764_v17  ;;  %v471_v14 = vmul.f32 %v5005_v43, %v5767_v38  ;;  %v5308_v62 = vld [vmem:[%s7410_s5 + $0x30] ss:$8 sps:$4 sm:$0xff]   ;;  %v5319_v3 = vld [vmem:[%s7410_s5 + $0x64] ss:$8 sps:$4 sm:$0xff]  }
 0x151   :  { %5246 = vperm.xlu1 %5244, %v6236_v53   ;;  %v2004_v55 = vpack.c.bf16 %v1934_v48, %v1932_v8  ;;  %v2003_v11 = vpack.c.bf16 %v1933_v24, %v1931_v42  ;;  %2885 = vmatpush1.bf16.msra.mxu1 %v5305_v30  ;;  %v5313_v53 = vld [vmem:[%s7410_s5 + $0x44] ss:$8 sps:$4 sm:$0xff]   ;;  %v474_v63 = vmul.f32 %v5033_v5, %v5764_v17 }
 0x152   :  { %v583_v35 = vadd.f32 %v5774_v27, %v472_v54  ;;  %v584_v4 = vadd.f32 %v5779_v32, %v473_v56  ;;  %v581_v18 = vadd.f32 %v5774_v27, %v470_v13  ;;  %v582_v50 = vadd.f32 %v5779_v32, %v471_v14  ;;  %v5021_v40 = vpop.permute.xlu1 %5020  ;;  %2886 = vmatprep.subr.bf16.mxu1 %v5310_v9 }
 0x153   :  { %v5023_v39 = vunpack.i.h.bf16 %v5021_v40  ;;  %v5022_v21 = vunpack.i.l.bf16 %v5021_v40  ;;  %2389 = vmatprep.mubr.bf16.mxu1 %v2004_v55  ;;  %v475_v28 = vmul.f32 %v5033_v5, %v5767_v38  ;;  %v587_v43 = vadd.f32 %v5774_v27, %v476_v15  ;;  %v5325_v15 = vld [vmem:[%s7410_s5 + $0x84] ss:$8 sps:$4 sm:$0xff]  }
 0x154   :  { %v999_v6 = vadd.f32 %v899_v46, %v581_v18  ;;  %v1000_v20 = vadd.f32 %v900_v51, %v582_v50  ;;  %v1001_v0 = vadd.f32 %v901_v60, %v583_v35  ;;  %v1002_v2 = vadd.f32 %v902_v10, %v584_v4  ;;  %2390 = vmatmul.mubr.bf16.gmra.mrb[4].mxu1 %v2003_v11  ;;  %v5055_v51 = vpop.permute.xlu0 %5054  ;;  %v5317_v35 = vld [vmem:[%s7410_s5 + $0x60] ss:$8 sps:$4 sm:$0xff]  }
 0x155   :  { %v1319_v36 = vmul.f32 %v5023_v39, %v5771_v25  ;;  %v1320_v19 = vmul.f32 %v5023_v39, %v5777_v29  ;;  %v1317_v61 = vmul.f32 %v5022_v21, %v5771_v25  ;;  %v1318_v12 = vmul.f32 %v5022_v21, %v5777_v29  ;;  %2887 = vmatpush1.bf16.msra.mxu1 %v5308_v62 }
 0x156   :  { %2888 = vmatprep.subr.bf16.mxu1 %v5313_v53  ;;  %v588_v9 = vadd.f32 %v5779_v32, %v477_v58  ;;  %v585_v8 = vadd.f32 %v5774_v27, %v474_v63  ;;  %v586_v48 = vadd.f32 %v5779_v32, %v475_v28  ;;  %v5057_v11 = vunpack.i.h.bf16 %v5055_v51  ;;  %v5322_v53 = vld [vmem:[%s7410_s5 + $0x74] ss:$8 sps:$4 sm:$0xff]  }
 0x157   :  { %v5027_v37 = vpop.permute.xlu1 %5026  ;;  %v1417_v60 = vadd.f32 %v1317_v61, %v999_v6  ;;  %v1418_v10 = vadd.f32 %v1318_v12, %v1000_v20  ;;  %v1419_v26 = vadd.f32 %v1319_v36, %v1001_v0  ;;  %v1420_v7 = vadd.f32 %v1320_v19, %v1002_v2  ;;  %v5320_v19 = vld [vmem:[%s7410_s5 + $0x70] ss:$8 sps:$4 sm:$0xff]  }
 0x158   :  { %v5029_v34 = vunpack.i.h.bf16 %v5027_v37  ;;  %v5028_v49 = vunpack.i.l.bf16 %v5027_v37  ;;  %v5056_v62 = vunpack.i.l.bf16 %v5055_v51  ;;  %v1741_v2 = vmul.f32 %v5057_v11, %v5781_v33  ;;  %v5328_v51 = vld [vmem:[%s7410_s5 + $0x94] ss:$8 sps:$4 sm:$0xff]  }
 0x159   :  { %2889 = vmatpush1.bf16.msra.mxu1 %v5311_v1  ;;  %v1742_v36 = vmul.f32 %v5057_v11, %v5791_v47  ;;  %v5326_v11 = vld [vmem:[%s7410_s5 + $0x90] ss:$8 sps:$4 sm:$0xff]  }
 0x15a   :  { %v1737_v59 = vmul.f32 %v5029_v34, %v5781_v33  ;;  %v1738_v22 = vmul.f32 %v5029_v34, %v5791_v47  ;;  %v1735_v30 = vmul.f32 %v5028_v49, %v5781_v33  ;;  %v1736_v46 = vmul.f32 %v5028_v49, %v5791_v47  ;;  %2890 = vmatprep.subr.bf16.mxu1 %v5316_v16 }
 0x15b   :  { %v1739_v1 = vmul.f32 %v5056_v62, %v5781_v33  ;;  %v1740_v16 = vmul.f32 %v5056_v62, %v5791_v47 }
 0x15c   :  { %v1835_v42 = vadd.f32 %v1735_v30, %v1417_v60  ;;  %v1836_v24 = vadd.f32 %v1736_v46, %v1418_v10  ;;  %v1837_v54 = vadd.f32 %v1737_v59, %v1419_v26  ;;  %v1838_v56 = vadd.f32 %v1738_v22, %v1420_v7  ;;  %v5044_v13 = vpop.permute.xlu1 %5043  ;;  %v5073_v26 = vpop.permute.xlu0 %5072  ;;  %v5323_v7 = vld [vmem:[%s7410_s5 + $0x80] ss:$8 sps:$4 sm:$0xff]  }
 0x15d   :  { %v5046_v14 = vunpack.i.h.bf16 %v5044_v13  ;;  %v5045_v55 = vunpack.i.l.bf16 %v5044_v13  ;;  %2891 = vmatpush1.bf16.msra.mxu1 %v5314_v23 }
 0x15e   :  { %v1936_v4 = vmax.f32 %v1836_v24, 0.0  ;;  %v1938_v18 = vmax.f32 %v1838_v56, 0.0  ;;  %v1935_v50 = vmax.f32 %v1835_v42, 0.0  ;;  %v1937_v40 = vmax.f32 %v1837_v54, 0.0  ;;  %2892 = vmatprep.subr.bf16.mxu1 %v5319_v3 }
 0x15f   :  { %v905_v52 = vmul.f32 %v5046_v14, %v5787_v44  ;;  %v906_v5 = vmul.f32 %v5046_v14, %v5789_v45  ;;  %v903_v39 = vmul.f32 %v5045_v55, %v5787_v44  ;;  %v904_v21 = vmul.f32 %v5045_v55, %v5789_v45 }
 0x160   :  { %v2006_v6 = vpack.c.bf16 %v1938_v18, %v1936_v4  ;;  %v2005_v20 = vpack.c.bf16 %v1937_v40, %v1935_v50 }
 0x161   :  { %v5050_v0 = vpop.permute.xlu1 %5049  ;;  %2893 = vmatpush1.bf16.msra.mxu1 %v5317_v35  ;;  %v1003_v58 = vadd.f32 %v903_v39, %v585_v8  ;;  %v1004_v63 = vadd.f32 %v904_v21, %v586_v48  ;;  %v1005_v28 = vadd.f32 %v905_v52, %v587_v43  ;;  %v1006_v37 = vadd.f32 %v906_v5, %v588_v9  ;;  %v5331_v39 = vld [vmem:[%s7410_s5 + $0xa4] ss:$8 sps:$4 sm:$0xff]  }
 0x162   :  { %v5052_v61 = vunpack.i.h.bf16 %v5050_v0  ;;  %v5051_v12 = vunpack.i.l.bf16 %v5050_v0  ;;  %2399 = vmatprep.mubr.bf16.mxu1 %v2006_v6  ;;  %2894 = vmatprep.subr.bf16.mxu1 %v5322_v53  ;;  %v5075_v9 = vunpack.i.h.bf16 %v5073_v26  ;;  %v5074_v8 = vunpack.i.l.bf16 %v5073_v26 }
 0x163   :  { %2400 = vmatmul.mubr.bf16.gmra.mrb[8].mxu1 %v2005_v20 }
 0x164   :  { %v1323_v34 = vmul.f32 %v5052_v61, %v5771_v25  ;;  %v1324_v49 = vmul.f32 %v5052_v61, %v5777_v29  ;;  %v1321_v60 = vmul.f32 %v5051_v12, %v5771_v25  ;;  %v1322_v10 = vmul.f32 %v5051_v12, %v5777_v29  ;;  %v5329_v12 = vld [vmem:[%s7410_s5 + $0xa0] ss:$8 sps:$4 sm:$0xff]  }
 0x165   :  { %2895 = vmatpush1.bf16.msra.mxu1 %v5320_v19  ;;  %v1327_v40 = vmul.f32 %v5075_v9, %v5771_v25  ;;  %v1328_v53 = vmul.f32 %v5075_v9, %v5777_v29  ;;  %v1325_v52 = vmul.f32 %v5074_v8, %v5771_v25  ;;  %v1326_v5 = vmul.f32 %v5074_v8, %v5777_v29 }
 0x166   :  { %v1421_v23 = vadd.f32 %v1321_v60, %v1003_v58  ;;  %v1422_v59 = vadd.f32 %v1322_v10, %v1004_v63  ;;  %v1423_v22 = vadd.f32 %v1323_v34, %v1005_v28  ;;  %v1424_v30 = vadd.f32 %v1324_v49, %v1006_v37  ;;  %v5061_v46 = vpop.permute.xlu1 %5060  ;;  %2896 = vmatprep.subr.bf16.mxu1 %v5325_v15  ;;  %v5091_v63 = vpop.permute.xlu0 %5090  ;;  %v5334_v28 = vld [vmem:[%s7410_s5 + $0xb4] ss:$8 sps:$4 sm:$0xff]  }
 0x167   :  { %v5063_v3 = vunpack.i.h.bf16 %v5061_v46  ;;  %v5062_v43 = vunpack.i.l.bf16 %v5061_v46 }
 0x168   :  { %v1839_v48 = vadd.f32 %v1739_v1, %v1421_v23  ;;  %v1840_v42 = vadd.f32 %v1740_v16, %v1422_v59  ;;  %v1841_v24 = vadd.f32 %v1741_v2, %v1423_v22  ;;  %v1842_v54 = vadd.f32 %v1742_v36, %v1424_v30  ;;  %v5332_v59 = vld [vmem:[%s7410_s5 + $0xb0] ss:$8 sps:$4 sm:$0xff]  }
 0x169   :  { %v480_v56 = vmul.f32 %v5063_v3, %v5764_v17  ;;  %v481_v13 = vmul.f32 %v5063_v3, %v5767_v38  ;;  %v478_v14 = vmul.f32 %v5062_v43, %v5764_v17  ;;  %v479_v55 = vmul.f32 %v5062_v43, %v5767_v38  ;;  %2897 = vmatpush1.bf16.msra.mxu1 %v5323_v7  ;;  %v5337_v3 = vld [vmem:[%s7410_s5 + $0xc4] ss:$8 sps:$4 sm:$0xff]  }
 0x16a   :  { %v1940_v62 = vmax.f32 %v1840_v42, 0.0  ;;  %v1942_v35 = vmax.f32 %v1842_v54, 0.0  ;;  %v1939_v4 = vmax.f32 %v1839_v48, 0.0  ;;  %v1941_v18 = vmax.f32 %v1841_v24, 0.0  ;;  %2898 = vmatprep.subr.bf16.mxu1 %v5328_v51 }
 0x16b   :  { %v5067_v50 = vpop.permute.xlu1 %5066  ;;  %v591_v2 = vadd.f32 %v5774_v27, %v480_v56  ;;  %v592_v36 = vadd.f32 %v5779_v32, %v481_v13  ;;  %v589_v19 = vadd.f32 %v5774_v27, %v478_v14  ;;  %v590_v61 = vadd.f32 %v5779_v32, %v479_v55  ;;  %v5335_v55 = vld [vmem:[%s7410_s5 + $0xc0] ss:$8 sps:$4 sm:$0xff]  }
 0x16c   :  { %v5069_v21 = vunpack.i.h.bf16 %v5067_v50  ;;  %v5068_v6 = vunpack.i.l.bf16 %v5067_v50  ;;  %v2008_v20 = vpack.c.bf16 %v1942_v35, %v1940_v62  ;;  %v2007_v0 = vpack.c.bf16 %v1941_v18, %v1939_v4  ;;  %v5340_v18 = vld [vmem:[%s7410_s5 + $0xd4] ss:$8 sps:$4 sm:$0xff]  }
 0x16d   :  { %2899 = vmatpush1.bf16.msra.mxu1 %v5326_v11  ;;  %v5093_v23 = vunpack.i.h.bf16 %v5091_v63  ;;  %v5092_v42 = vunpack.i.l.bf16 %v5091_v63 }
 0x16e   :  { %v909_v1 = vmul.f32 %v5069_v21, %v5787_v44  ;;  %v910_v16 = vmul.f32 %v5069_v21, %v5789_v45  ;;  %v907_v15 = vmul.f32 %v5068_v6, %v5787_v44  ;;  %v908_v58 = vmul.f32 %v5068_v6, %v5789_v45  ;;  %2409 = vmatprep.mubr.bf16.mxu1 %v2008_v20 }
 0x16f   :  { %2410 = vmatmul.mubr.bf16.gmra.mrb[12].mxu1 %v2007_v0  ;;  %2900 = vmatprep.subr.bf16.mxu1 %v5331_v39  ;;  %v913_v35 = vmul.f32 %v5093_v23, %v5787_v44  ;;  %v914_v4 = vmul.f32 %v5093_v23, %v5789_v45  ;;  %v911_v20 = vmul.f32 %v5092_v42, %v5787_v44 }
 0x170   :  { %v1007_v37 = vadd.f32 %v907_v15, %v589_v19  ;;  %v1008_v34 = vadd.f32 %v908_v58, %v590_v61  ;;  %v1009_v49 = vadd.f32 %v909_v1, %v591_v2  ;;  %v1010_v60 = vadd.f32 %v910_v16, %v592_v36  ;;  %v5079_v10 = vpop.permute.xlu1 %5078  ;;  %v5109_v36 = vpop.permute.xlu0 %5108  ;;  %v5338_v19 = vld [vmem:[%s7410_s5 + $0xd0] ss:$8 sps:$4 sm:$0xff]   ;;  %v5343_v15 = vld [vmem:[%s7410_s5 + $0xe4] ss:$8 sps:$4 sm:$0xff]  }
 0x171   :  { %v5081_v26 = vunpack.i.h.bf16 %v5079_v10  ;;  %v5080_v7 = vunpack.i.l.bf16 %v5079_v10  ;;  %2901 = vmatpush1.bf16.msra.mxu1 %v5329_v12  ;;  %v912_v63 = vmul.f32 %v5092_v42, %v5789_v45 }
 0x172   :  { %v1427_v22 = vadd.f32 %v1327_v40, %v1009_v49  ;;  %v1428_v30 = vadd.f32 %v1328_v53, %v1010_v60  ;;  %v1425_v46 = vadd.f32 %v1325_v52, %v1007_v37  ;;  %v1426_v51 = vadd.f32 %v1326_v5, %v1008_v34  ;;  %2902 = vmatprep.subr.bf16.mxu1 %v5334_v28 }
 0x173   :  { %v1745_v43 = vmul.f32 %v5081_v26, %v5781_v33  ;;  %v1746_v9 = vmul.f32 %v5081_v26, %v5791_v47  ;;  %v1743_v8 = vmul.f32 %v5080_v7, %v5781_v33  ;;  %v1744_v48 = vmul.f32 %v5080_v7, %v5791_v47 }
 0x174   :  { %v5111_v60 = vunpack.i.h.bf16 %v5109_v36 }
 0x175   :  { %v1843_v24 = vadd.f32 %v1743_v8, %v1425_v46  ;;  %v1844_v54 = vadd.f32 %v1744_v48, %v1426_v51  ;;  %v1845_v56 = vadd.f32 %v1745_v43, %v1427_v22  ;;  %v1846_v13 = vadd.f32 %v1746_v9, %v1428_v30  ;;  %v5085_v14 = vpop.permute.xlu1 %5084  ;;  %2903 = vmatpush1.bf16.msra.mxu1 %v5332_v59  ;;  %v5341_v59 = vld [vmem:[%s7410_s5 + $0xe0] ss:$8 sps:$4 sm:$0xff]   ;;  %v5346_v22 = vld [vmem:[%s7410_s5 + $0xf4] ss:$8 sps:$4 sm:$0xff]  }
 0x176   :  { %v5087_v11 = vunpack.i.h.bf16 %v5085_v14  ;;  %v5086_v62 = vunpack.i.l.bf16 %v5085_v14  ;;  %2904 = vmatprep.subr.bf16.mxu1 %v5337_v3  ;;  %v5110_v43 = vunpack.i.l.bf16 %v5109_v36  ;;  %v488_v42 = vmul.f32 %v5111_v60, %v5764_v17 }
 0x177   :  { %v1944_v50 = vmax.f32 %v1844_v54, 0.0  ;;  %v1946_v40 = vmax.f32 %v1846_v13, 0.0  ;;  %v1943_v53 = vmax.f32 %v1843_v24, 0.0  ;;  %v1945_v52 = vmax.f32 %v1845_v56, 0.0 }
 0x178   :  { %v484_v5 = vmul.f32 %v5087_v11, %v5764_v17  ;;  %v485_v39 = vmul.f32 %v5087_v11, %v5767_v38  ;;  %v482_v21 = vmul.f32 %v5086_v62, %v5764_v17  ;;  %v483_v6 = vmul.f32 %v5086_v62, %v5767_v38 }
 0x179   :  { %v2010_v0 = vpack.c.bf16 %v1946_v40, %v1944_v50  ;;  %v2009_v2 = vpack.c.bf16 %v1945_v52, %v1943_v53  ;;  %2905 = vmatpush1.bf16.msra.mxu1 %v5335_v55  ;;  %v489_v14 = vmul.f32 %v5111_v60, %v5767_v38  ;;  %v5344_v55 = vld [vmem:[%s7410_s5 + $0xf0] ss:$8 sps:$4 sm:$0xff]   ;;  %v5127_v50 = vpop.permute.xlu0 %5126 }
 0x17a   :  { %v595_v61 = vadd.f32 %v5774_v27, %v484_v5  ;;  %v596_v12 = vadd.f32 %v5779_v32, %v485_v39  ;;  %v593_v1 = vadd.f32 %v5774_v27, %v482_v21  ;;  %v5097_v16 = vpop.permute.xlu1 %5096  ;;  %2906 = vmatprep.subr.bf16.mxu1 %v5340_v18  ;;  %v594_v58 = vadd.f32 %v5779_v32, %v483_v6 }
 0x17b   :  { %v5099_v28 = vunpack.i.h.bf16 %v5097_v16  ;;  %v5098_v37 = vunpack.i.l.bf16 %v5097_v16  ;;  %2419 = vmatprep.mubr.bf16.mxu1 %v2010_v0  ;;  %v486_v5 = vmul.f32 %v5110_v43, %v5764_v17 }
 0x17c   :  { %v1013_v34 = vadd.f32 %v913_v35, %v595_v61  ;;  %v1014_v49 = vadd.f32 %v914_v4, %v596_v12  ;;  %2420 = vmatmul.mubr.bf16.gmra.mrb[16].mxu1 %v2009_v2  ;;  %v1011_v10 = vadd.f32 %v911_v20, %v593_v1  ;;  %v1012_v30 = vadd.f32 %v912_v63, %v594_v58 }
 0x17d   :  { %v1331_v26 = vmul.f32 %v5099_v28, %v5771_v25  ;;  %v1332_v7 = vmul.f32 %v5099_v28, %v5777_v29  ;;  %v1329_v23 = vmul.f32 %v5098_v37, %v5771_v25  ;;  %2907 = vmatpush1.bf16.msra.mxu1 %v5338_v19  ;;  %v1330_v51 = vmul.f32 %v5098_v37, %v5777_v29 }
 0x17e   :  { %2908 = vmatprep.subr.bf16.mxu1 %v5343_v15  ;;  %v6469_v46 = vpop.f32.mrb[0].mxu0  ;;  %v487_v20 = vmul.f32 %v5110_v43, %v5767_v38  ;;  %v5129_v61 = vunpack.i.h.bf16 %v5127_v50  ;;  %v5128_v1 = vunpack.i.l.bf16 %v5127_v50  ;;  %v599_v58 = vadd.f32 %v5774_v27, %v488_v42 }
 0x17f   :  { %v5103_v3 = vpop.permute.xlu1 %5102  ;;  %v6472_v9 = vpop.f32.mrb[1].mxu0  ;;  %v1429_v54 = vadd.f32 %v1329_v23, %v1011_v10  ;;  %v1431_v56 = vadd.f32 %v1331_v26, %v1013_v34  ;;  %v1432_v13 = vadd.f32 %v1332_v7, %v1014_v49  ;;  %v1430_v40 = vadd.f32 %v1330_v51, %v1012_v30 }
 0x180   :  { %v5105_v8 = vunpack.i.h.bf16 %v5103_v3  ;;  %v5104_v48 = vunpack.i.l.bf16 %v5103_v3  ;;  %v6475_v24 = vpop.f32.mrb[2].mxu0  ;;  %v597_v63 = vadd.f32 %v5774_v27, %v486_v5  ;;  %v600_v49 = vadd.f32 %v5779_v32, %v489_v14 }
 0x181   :  { %2909 = vmatpush1.bf16.msra.mxu1 %v5341_v59  ;;  %v6483_v62 = vpop.f32.mrb[3].mxu0  ;;  %v598_v60 = vadd.f32 %v5779_v32, %v487_v20  ;;  %v1753_v30 = vmul.f32 %v5129_v61, %v5781_v33  ;;  %v1754_v51 = vmul.f32 %v5129_v61, %v5791_v47 }
 0x182   :  { %v1749_v35 = vmul.f32 %v5105_v8, %v5781_v33  ;;  %v1750_v4 = vmul.f32 %v5105_v8, %v5791_v47  ;;  %v1747_v18 = vmul.f32 %v5104_v48, %v5781_v33  ;;  %2910 = vmatprep.subr.bf16.mxu1 %v5346_v22  ;;  %v1748_v52 = vmul.f32 %v5104_v48, %v5791_v47 }
 0x184   :  { %v1847_v39 = vadd.f32 %v1747_v18, %v1429_v54  ;;  %v1849_v21 = vadd.f32 %v1749_v35, %v1431_v56  ;;  %v1850_v6 = vadd.f32 %v1750_v4, %v1432_v13  ;;  %v5115_v0 = vpop.permute.xlu1 %5114  ;;  %v1848_v2 = vadd.f32 %v1748_v52, %v1430_v40  ;;  %v5145_v35 = vpop.permute.xlu0 %5144 }
 0x185   :  { %v5117_v36 = vunpack.i.h.bf16 %v5115_v0  ;;  %v5116_v19 = vunpack.i.l.bf16 %v5115_v0  ;;  %2911 = vmatpush1.bf16.msra.mxu1 %v5344_v55  ;;  %v1751_v55 = vmul.f32 %v5128_v1, %v5781_v33 }
 0x186   :  { %v1950_v12 = vmax.f32 %v1850_v6, 0.0  ;;  %v1947_v16 = vmax.f32 %v1847_v39, 0.0  ;;  %v1949_v15 = vmax.f32 %v1849_v21, 0.0  ;;  %v6497_v34 = vpop.f32.mrb[4].mxu0  ;;  %v1948_v7 = vmax.f32 %v1848_v2, 0.0 }
 0x187   :  { %v917_v28 = vmul.f32 %v5117_v36, %v5787_v44  ;;  %v915_v37 = vmul.f32 %v5116_v19, %v5787_v44  ;;  %v918_v10 = vmul.f32 %v5117_v36, %v5789_v45  ;;  %v6502_v26 = vpop.f32.mrb[5].mxu0  ;;  %v916_v23 = vmul.f32 %v5116_v19, %v5789_v45 }
 0x188   :  { %v6505_v59 = vpop.f32.mrb[6].mxu0  ;;  %v2011_v3 = vpack.c.bf16 %v1949_v15, %v1947_v16  ;;  %v2012_v54 = vpack.c.bf16 %v1950_v12, %v1948_v7  ;;  %v1752_v39 = vmul.f32 %v5128_v1, %v5791_v47  ;;  %v5147_v2 = vunpack.i.h.bf16 %v5145_v35 }
 0x189   :  { %v5121_v22 = vpop.permute.xlu1 %5120  ;;  %v6511_v8 = vpop.f32.mrb[7].mxu0  ;;  %v1015_v56 = vadd.f32 %v915_v37, %v597_v63  ;;  %v1017_v13 = vadd.f32 %v917_v28, %v599_v58  ;;  %v1018_v4 = vadd.f32 %v918_v10, %v600_v49  ;;  %v1016_v52 = vadd.f32 %v916_v23, %v598_v60 }
 0x18a   :  { %v5123_v48 = vunpack.i.h.bf16 %v5121_v22  ;;  %v5122_v42 = vunpack.i.l.bf16 %v5121_v22  ;;  %2429 = vmatprep.mubr.bf16.mxu1 %v2012_v54  ;;  %v5146_v12 = vunpack.i.l.bf16 %v5145_v35  ;;  %v1339_v60 = vmul.f32 %v5147_v2, %v5771_v25 }
 0x18b   :  { %2430 = vmatmul.mubr.bf16.gmra.mrb[20].mxu1 %v2011_v3 }
 0x18c   :  { %v1335_v18 = vmul.f32 %v5123_v48, %v5771_v25  ;;  %v1336_v50 = vmul.f32 %v5123_v48, %v5777_v29  ;;  %v1333_v40 = vmul.f32 %v5122_v42, %v5771_v25  ;;  %v1334_v5 = vmul.f32 %v5122_v42, %v5777_v29 }
 0x18d   :  { %v1337_v48 = vmul.f32 %v5146_v12, %v5771_v25 }
 0x18e   :  { %v1433_v21 = vadd.f32 %v1333_v40, %v1015_v56  ;;  %v1435_v6 = vadd.f32 %v1335_v18, %v1017_v13  ;;  %v1436_v20 = vadd.f32 %v1336_v50, %v1018_v4  ;;  %v5133_v0 = vpop.permute.xlu1 %5132  ;;  %v1434_v36 = vadd.f32 %v1334_v5, %v1016_v52  ;;  %v5163_v5 = vpop.permute.xlu0 %5162 }
 0x18f   :  { %v5135_v19 = vunpack.i.h.bf16 %v5133_v0  ;;  %v5134_v61 = vunpack.i.l.bf16 %v5133_v0 }
 0x190   :  { %v1851_v16 = vadd.f32 %v1751_v55, %v1433_v21  ;;  %v1853_v15 = vadd.f32 %v1753_v30, %v1435_v6  ;;  %v1854_v58 = vadd.f32 %v1754_v51, %v1436_v20  ;;  %v1852_v63 = vadd.f32 %v1752_v39, %v1434_v36 }
 0x191   :  { %v492_v28 = vmul.f32 %v5135_v19, %v5764_v17  ;;  %v493_v37 = vmul.f32 %v5135_v19, %v5767_v38  ;;  %v490_v1 = vmul.f32 %v5134_v61, %v5764_v17  ;;  %v491_v22 = vmul.f32 %v5134_v61, %v5767_v38 }
 0x192   :  { %v6524_v49 = vpop.f32.mrb[8].mxu0  ;;  %v1954_v10 = vmax.f32 %v1854_v58, 0.0  ;;  %v1951_v7 = vmax.f32 %v1851_v16, 0.0  ;;  %v1953_v23 = vmax.f32 %v1853_v15, 0.0  ;;  %v1340_v51 = vmul.f32 %v5147_v2, %v5777_v29 }
 0x193   :  { %v6528_v3 = vpop.f32.mrb[9].mxu0  ;;  %v5139_v30 = vpop.permute.xlu1 %5138  ;;  %v1952_v42 = vmax.f32 %v1852_v63, 0.0  ;;  %v603_v54 = vadd.f32 %v5774_v27, %v492_v28  ;;  %v604_v4 = vadd.f32 %v5779_v32, %v493_v37  ;;  %v601_v18 = vadd.f32 %v5774_v27, %v490_v1 }
 0x194   :  { %v6533_v56 = vpop.f32.mrb[10].mxu0  ;;  %v5141_v13 = vunpack.i.h.bf16 %v5139_v30  ;;  %v5140_v55 = vunpack.i.l.bf16 %v5139_v30  ;;  %v2013_v35 = vpack.c.bf16 %v1953_v23, %v1951_v7  ;;  %v602_v0 = vadd.f32 %v5779_v32, %v491_v22 }
 0x195   :  { %v6539_v40 = vpop.f32.mrb[11].mxu0  ;;  %v2014_v52 = vpack.c.bf16 %v1954_v10, %v1952_v42  ;;  %v1338_v36 = vmul.f32 %v5146_v12, %v5777_v29  ;;  %v5165_v58 = vunpack.i.h.bf16 %v5163_v5 }
 0x196   :  { %v921_v21 = vmul.f32 %v5141_v13, %v5787_v44  ;;  %v922_v6 = vmul.f32 %v5141_v13, %v5789_v45  ;;  %v919_v20 = vmul.f32 %v5140_v55, %v5787_v44  ;;  %v920_v2 = vmul.f32 %v5140_v55, %v5789_v45 }
 0x197   :  { %2439 = vmatprep.mubr.bf16.mxu1 %v2014_v52 }
 0x198   :  { %v1019_v19 = vadd.f32 %v919_v20, %v601_v18  ;;  %v1021_v61 = vadd.f32 %v921_v21, %v603_v54  ;;  %v1022_v16 = vadd.f32 %v922_v6, %v604_v4  ;;  %2440 = vmatmul.mubr.bf16.gmra.mrb[24].mxu1 %v2013_v35  ;;  %v5151_v15 = vpop.permute.xlu1 %5150  ;;  %v1020_v63 = vadd.f32 %v920_v2, %v602_v0 }
 0x199   :  { %v5153_v28 = vunpack.i.h.bf16 %v5151_v15  ;;  %v5152_v37 = vunpack.i.l.bf16 %v5151_v15  ;;  %v925_v35 = vmul.f32 %v5165_v58, %v5787_v44 }
 0x19a   :  { %v1439_v1 = vadd.f32 %v1339_v60, %v1021_v61  ;;  %v1440_v10 = vadd.f32 %v1340_v51, %v1022_v16  ;;  %v1437_v7 = vadd.f32 %v1337_v48, %v1019_v19  ;;  %v6549_v23 = vpop.f32.mrb[12].mxu0  ;;  %v1438_v22 = vadd.f32 %v1338_v36, %v1020_v63  ;;  %v5181_v36 = vpop.permute.xlu0 %5180 }
 0x19b   :  { %v6551_v30 = vpop.f32.mrb[13].mxu0  ;;  %v1757_v12 = vmul.f32 %v5153_v28, %v5781_v33  ;;  %v1758_v42 = vmul.f32 %v5153_v28, %v5791_v47  ;;  %v1755_v54 = vmul.f32 %v5152_v37, %v5781_v33  ;;  %v1756_v13 = vmul.f32 %v5152_v37, %v5791_v47 }
 0x19c   :  { %v6557_v55 = vpop.f32.mrb[14].mxu0  ;;  %v5164_v60 = vunpack.i.l.bf16 %v5163_v5  ;;  %v926_v19 = vmul.f32 %v5165_v58, %v5789_v45 }
 0x19d   :  { %v1855_v51 = vadd.f32 %v1755_v54, %v1437_v7  ;;  %v1857_v48 = vadd.f32 %v1757_v12, %v1439_v1  ;;  %v1858_v4 = vadd.f32 %v1758_v42, %v1440_v10  ;;  %v6562_v52 = vpop.f32.mrb[15].mxu0  ;;  %v5157_v21 = vpop.permute.xlu1 %5156  ;;  %v1856_v6 = vadd.f32 %v1756_v13, %v1438_v22 }
 0x19e   :  { %v5159_v0 = vunpack.i.h.bf16 %v5157_v21  ;;  %v5158_v2 = vunpack.i.l.bf16 %v5157_v21  ;;  %v923_v37 = vmul.f32 %v5164_v60, %v5787_v44  ;;  %v924_v10 = vmul.f32 %v5164_v60, %v5789_v45 }
 0x19f   :  { %v1958_v61 = vmax.f32 %v1858_v4, 0.0  ;;  %v1955_v5 = vmax.f32 %v1855_v51, 0.0  ;;  %v1957_v16 = vmax.f32 %v1857_v48, 0.0  ;;  %v1956_v7 = vmax.f32 %v1856_v6, 0.0 }
 0x1a0   :  { %v496_v15 = vmul.f32 %v5159_v0, %v5764_v17  ;;  %v497_v63 = vmul.f32 %v5159_v0, %v5767_v38  ;;  %v494_v28 = vmul.f32 %v5158_v2, %v5764_v17  ;;  %v495_v1 = vmul.f32 %v5158_v2, %v5767_v38 }
 0x1a1   :  { %v5183_v22 = vunpack.i.h.bf16 %v5181_v36  ;;  %v2015_v51 = vpack.c.bf16 %v1957_v16, %v1955_v5  ;;  %v2016_v2 = vpack.c.bf16 %v1958_v61, %v1956_v7  ;;  %v5182_v6 = vunpack.i.l.bf16 %v5181_v36 }
 0x1a2   :  { %v607_v12 = vadd.f32 %v5774_v27, %v496_v15  ;;  %v608_v58 = vadd.f32 %v5779_v32, %v497_v63  ;;  %v605_v42 = vadd.f32 %v5774_v27, %v494_v28  ;;  %v5169_v54 = vpop.permute.xlu1 %5168  ;;  %v6576_v13 = vpop.f32.mrb[16].mxu0  ;;  %v606_v48 = vadd.f32 %v5779_v32, %v495_v1 }
 0x1a3   :  { %7436 = vst [vmem:[#allocation2_spill] sm:$0xff] %v6576_v13  ;;  %v5171_v4 = vunpack.i.h.bf16 %v5169_v54  ;;  %v5170_v21 = vunpack.i.l.bf16 %v5169_v54  ;;  %v6579_v0 = vpop.f32.mrb[17].mxu0  ;;  %2449 = vmatprep.mubr.bf16.mxu1 %v2016_v2  ;;  %v500_v28 = vmul.f32 %v5183_v22, %v5764_v17  ;;  %v501_v20 = vmul.f32 %v5183_v22, %v5767_v38 }
 0x1a4   :  { %v6581_v60 = vpop.f32.mrb[18].mxu0  ;;  %v1025_v18 = vadd.f32 %v925_v35, %v607_v12  ;;  %v1026_v15 = vadd.f32 %v926_v19, %v608_v58  ;;  %2450 = vmatmul.mubr.bf16.gmra.mrb[28].mxu1 %v2015_v51  ;;  %v1023_v35 = vadd.f32 %v923_v37, %v605_v42  ;;  %v1024_v19 = vadd.f32 %v924_v10, %v606_v48  ;;  %v5199_v37 = vpop.permute.xlu0 %5198 }
 0x1a5   :  { %7437 = vst [vmem:[#allocation3_spill] sm:$0xff] %v6581_v60  ;;  %v6583_v63 = vpop.f32.mrb[19].mxu0  ;;  %v1343_v5 = vmul.f32 %v5171_v4, %v5771_v25  ;;  %v1344_v16 = vmul.f32 %v5171_v4, %v5777_v29  ;;  %v1341_v61 = vmul.f32 %v5170_v21, %v5771_v25  ;;  %v1342_v7 = vmul.f32 %v5170_v21, %v5777_v29 }
 0x1a6   :  { %v5399_v58 = vmov 1966171168   ;;  %v498_v4 = vmul.f32 %v5182_v6, %v5764_v17  ;;  %v611_v1 = vadd.f32 %v5774_v27, %v500_v28  ;;  %v612_v51 = vadd.f32 %v5779_v32, %v501_v20 }
 0x1a7   :  { %v5175_v12 = vpop.permute.xlu1 %5174  ;;  %v6595_v22 = vunpack.c.l.s4 %v5399_v58  ;;  %v499_v36 = vmul.f32 %v5182_v6, %v5767_v38  ;;  %v1443_v10 = vadd.f32 %v1343_v5, %v1025_v18  ;;  %v1444_v42 = vadd.f32 %v1344_v16, %v1026_v15 }
 0x1a8   :  { %v5177_v54 = vunpack.i.h.bf16 %v5175_v12  ;;  %v5176_v2 = vunpack.i.l.bf16 %v5175_v12  ;;  %v1441_v50 = vadd.f32 %v1341_v61, %v1023_v35  ;;  %v1442_v58 = vadd.f32 %v1342_v7, %v1024_v19 }
 0x1a9   :  { %v5201_v20 = vunpack.i.h.bf16 %v5199_v37  ;;  %v5200_v6 = vunpack.i.l.bf16 %v5199_v37  ;;  %v609_v35 = vadd.f32 %v5774_v27, %v498_v4  ;;  %v610_v19 = vadd.f32 %v5779_v32, %v499_v36 }
 0x1aa   :  { %v1761_v48 = vmul.f32 %v5177_v54, %v5781_v33  ;;  %v1762_v21 = vmul.f32 %v5177_v54, %v5791_v47  ;;  %v1759_v39 = vmul.f32 %v5176_v2, %v5781_v33  ;;  %v1760_v43 = vmul.f32 %v5176_v2, %v5791_v47  ;;  %v6605_v11 = vpop.f32.mrb[20].mxu0 }
 0x1ab   :  { %7438 = vst [vmem:[#allocation4_spill] sm:$0xff] %v6605_v11  ;;  %v6607_v16 = vpop.f32.mrb[21].mxu0 }
 0x1ac   :  { %v1861_v12 = vadd.f32 %v1761_v48, %v1443_v10  ;;  %v1862_v14 = vadd.f32 %v1762_v21, %v1444_v42  ;;  %v5187_v28 = vpop.permute.xlu1 %5186  ;;  %v1859_v53 = vadd.f32 %v1759_v39, %v1441_v50  ;;  %v1860_v18 = vadd.f32 %v1760_v43, %v1442_v58  ;;  %7439 = vst [vmem:[#allocation5_spill] sm:$0xff] %v6607_v16  ;;  %v6611_v61 = vpop.f32.mrb[22].mxu0 }
 0x1ad   :  { %v5189_v15 = vunpack.i.h.bf16 %v5187_v28  ;;  %v5188_v5 = vunpack.i.l.bf16 %v5187_v28  ;;  %7440 = vst [vmem:[#allocation6_spill] sm:$0xff] %v6611_v61  ;;  %v6617_v50 = vpop.f32.mrb[23].mxu0  ;;  %v1765_v48 = vmul.f32 %v5201_v20, %v5781_v33  ;;  %v1766_v21 = vmul.f32 %v5201_v20, %v5791_v47  ;;  %v5217_v16 = vpop.permute.xlu0 %5216 }
 0x1ae   :  { %v1962_v7 = vmax.f32 %v1862_v14, 0.0  ;;  %v1961_v54 = vmax.f32 %v1861_v12, 0.0  ;;  %7441 = vst [vmem:[#allocation7_spill] sm:$0xff] %v6617_v50  ;;  %v1960_v4 = vmax.f32 %v1860_v18, 0.0  ;;  %v1959_v42 = vmax.f32 %v1859_v53, 0.0 }
 0x1af   :  { %v929_v2 = vmul.f32 %v5189_v15, %v5787_v44  ;;  %v930_v10 = vmul.f32 %v5189_v15, %v5789_v45  ;;  %v927_v37 = vmul.f32 %v5188_v5, %v5787_v44  ;;  %v928_v43 = vmul.f32 %v5188_v5, %v5789_v45 }
 0x1b0   :  { %v1763_v58 = vmul.f32 %v5200_v6, %v5781_v33  ;;  %v1764_v12 = vmul.f32 %v5200_v6, %v5791_v47  ;;  %v2018_v11 = vpack.c.bf16 %v1962_v7, %v1960_v4  ;;  %v2017_v61 = vpack.c.bf16 %v1961_v54, %v1959_v42 }
 0x1b1   :  { %v5193_v14 = vpop.permute.xlu1 %5192  ;;  %v1027_v28 = vadd.f32 %v927_v37, %v609_v35  ;;  %v1028_v15 = vadd.f32 %v928_v43, %v610_v19  ;;  %v1029_v60 = vadd.f32 %v929_v2, %v611_v1  ;;  %v1030_v39 = vadd.f32 %v930_v10, %v612_v51 }
 0x1b2   :  { %v5195_v5 = vunpack.i.h.bf16 %v5193_v14  ;;  %v5194_v13 = vunpack.i.l.bf16 %v5193_v14  ;;  %v2562_v50 = vunpack.c.0.s8 %v6595_v22  ;;  %2459 = vmatprep.mubr.bf16.mxu1 %v2018_v11  ;;  %v5219_v54 = vunpack.i.h.bf16 %v5217_v16 }
 0x1b3   :  { %2460 = vmatmul.mubr.bf16.gmra.mrb[32].mxu1 %v2017_v61  ;;  %v5218_v2 = vunpack.i.l.bf16 %v5217_v16 }
 0x1b4   :  { %v1347_v18 = vmul.f32 %v5195_v5, %v5771_v25  ;;  %v1348_v53 = vmul.f32 %v5195_v5, %v5777_v29  ;;  %v1345_v36 = vmul.f32 %v5194_v13, %v5771_v25  ;;  %v1346_v20 = vmul.f32 %v5194_v13, %v5777_v29 }
 0x1b5   :  { %v1352_v16 = vmul.f32 %v5219_v54, %v5777_v29 }
 0x1b6   :  { %v1445_v6 = vadd.f32 %v1345_v36, %v1027_v28  ;;  %v1446_v35 = vadd.f32 %v1346_v20, %v1028_v15  ;;  %v1447_v19 = vadd.f32 %v1347_v18, %v1029_v60  ;;  %v1448_v37 = vadd.f32 %v1348_v53, %v1030_v39  ;;  %v5205_v1 = vpop.permute.xlu1 %5204  ;;  %v5235_v20 = vpop.permute.xlu0 %5234 }
 0x1b7   :  { %v5207_v51 = vunpack.i.h.bf16 %v5205_v1  ;;  %v5206_v7 = vunpack.i.l.bf16 %v5205_v1  ;;  %v1351_v15 = vmul.f32 %v5219_v54, %v5771_v25 }
 0x1b8   :  { %v1863_v10 = vadd.f32 %v1763_v58, %v1445_v6  ;;  %v1864_v43 = vadd.f32 %v1764_v12, %v1446_v35  ;;  %v1865_v4 = vadd.f32 %v1765_v48, %v1447_v19  ;;  %v1866_v42 = vadd.f32 %v1766_v21, %v1448_v37  ;;  %v6643_v58 = vld.sshfl [vmem:[%s7411_s4] sm:$0x11 pattern:$0x75316420] }
 0x1b9   :  { %v504_v13 = vmul.f32 %v5207_v51, %v5764_v17  ;;  %v505_v14 = vmul.f32 %v5207_v51, %v5767_v38  ;;  %v502_v11 = vmul.f32 %v5206_v7, %v5764_v17  ;;  %v503_v22 = vmul.f32 %v5206_v7, %v5767_v38 }
 0x1ba   :  { %v1964_v60 = vmax.f32 %v1864_v43, 0.0  ;;  %v1966_v39 = vmax.f32 %v1866_v42, 0.0  ;;  %v1963_v61 = vmax.f32 %v1863_v10, 0.0  ;;  %v1965_v36 = vmax.f32 %v1865_v4, 0.0 }
 0x1bb   :  { %v5211_v28 = vpop.permute.xlu1 %5210  ;;  %v1349_v48 = vmul.f32 %v5218_v2, %v5771_v25  ;;  %v1350_v21 = vmul.f32 %v5218_v2, %v5777_v29  ;;  %v615_v6 = vadd.f32 %v5774_v27, %v504_v13  ;;  %v616_v35 = vadd.f32 %v5779_v32, %v505_v14  ;;  %v6653_v2 = vpop.f32.mrb[24].mxu0 }
 0x1bc   :  { %v5213_v12 = vunpack.i.h.bf16 %v5211_v28  ;;  %v5212_v5 = vunpack.i.l.bf16 %v5211_v28  ;;  %v2020_v18 = vpack.c.bf16 %v1966_v39, %v1964_v60  ;;  %v2019_v53 = vpack.c.bf16 %v1965_v36, %v1963_v61  ;;  %v6660_v4 = vpop.f32.mrb[25].mxu0 }
 0x1bd   :  { %v613_v19 = vadd.f32 %v5774_v27, %v502_v11  ;;  %v614_v37 = vadd.f32 %v5779_v32, %v503_v22  ;;  %v6656_v10 = vsub.s32 %v2562_v50, %v5734_v57  ;;  %v2559_v43 = vcombine.high %v6643_v58, %v6643_v58  ;;  %v6662_v39 = vpop.f32.mrb[26].mxu0 }
 0x1be   :  { %v933_v1 = vmul.f32 %v5213_v12, %v5787_v44  ;;  %v934_v51 = vmul.f32 %v5213_v12, %v5789_v45  ;;  %v931_v7 = vmul.f32 %v5212_v5, %v5787_v44  ;;  %v932_v54 = vmul.f32 %v5212_v5, %v5789_v45  ;;  %2469 = vmatprep.mubr.bf16.mxu1 %v2020_v18  ;;  %v6666_v50 = vpop.f32.mrb[27].mxu0 }
 0x1bf   :  { %2470 = vmatmul.mubr.bf16.gmra.mrb[36].mxu1 %v2019_v53  ;;  %v5237_v42 = vunpack.i.h.bf16 %v5235_v20  ;;  %v5236_v28 = vunpack.i.l.bf16 %v5235_v20 }
 0x1c0   :  { %v1031_v13 = vadd.f32 %v931_v7, %v613_v19  ;;  %v1032_v14 = vadd.f32 %v932_v54, %v614_v37  ;;  %v1033_v11 = vadd.f32 %v933_v1, %v615_v6  ;;  %v1034_v22 = vadd.f32 %v934_v51, %v616_v35  ;;  %v5223_v60 = vpop.permute.xlu1 %5222 }
 0x1c1   :  { %v5225_v61 = vunpack.i.h.bf16 %v5223_v60  ;;  %v5224_v36 = vunpack.i.l.bf16 %v5223_v60  ;;  %v2573_v1 = vrot.slane %v2559_v43, %v6656_v10  ;;  %v937_v7 = vmul.f32 %v5237_v42, %v5787_v44 }
 0x1c2   :  { %v1451_v12 = vadd.f32 %v1351_v15, %v1033_v11  ;;  %v1452_v5 = vadd.f32 %v1352_v16, %v1034_v22  ;;  %v1449_v18 = vadd.f32 %v1349_v48, %v1031_v13  ;;  %v1450_v53 = vadd.f32 %v1350_v21, %v1032_v14 }
 0x1c3   :  { %v1769_v19 = vmul.f32 %v5225_v61, %v5781_v33  ;;  %v1770_v6 = vmul.f32 %v5225_v61, %v5791_v47  ;;  %v1767_v35 = vmul.f32 %v5224_v36, %v5781_v33  ;;  %v1768_v37 = vmul.f32 %v5224_v36, %v5791_v47 }
 0x1c4   :  { %v938_v15 = vmul.f32 %v5237_v42, %v5789_v45  ;;  %v935_v11 = vmul.f32 %v5236_v28, %v5787_v44  ;;  %v936_v22 = vmul.f32 %v5236_v28, %v5789_v45 }
 0x1c5   :  { %v1867_v16 = vadd.f32 %v1767_v35, %v1449_v18  ;;  %v1868_v48 = vadd.f32 %v1768_v37, %v1450_v53  ;;  %v1869_v21 = vadd.f32 %v1769_v19, %v1451_v12  ;;  %v1870_v20 = vadd.f32 %v1770_v6, %v1452_v5  ;;  %v5229_v54 = vpop.permute.xlu1 %5228 }
 0x1c6   :  { %v5231_v13 = vunpack.i.h.bf16 %v5229_v54  ;;  %v5230_v14 = vunpack.i.l.bf16 %v5229_v54  ;;  %v6679_v60 = vpop.f32.mrb[28].mxu0 }
 0x1c7   :  { %v6681_v43 = vpop.f32.mrb[29].mxu0  ;;  %v1968_v61 = vmax.f32 %v1868_v48, 0.0  ;;  %v1970_v36 = vmax.f32 %v1870_v20, 0.0  ;;  %v1967_v57 = vmax.f32 %v1867_v16, 0.0  ;;  %v1969_v51 = vmax.f32 %v1869_v21, 0.0 }
 0x1c8   :  { %v508_v42 = vmul.f32 %v5231_v13, %v5764_v17  ;;  %v509_v12 = vmul.f32 %v5231_v13, %v5767_v38  ;;  %v506_v5 = vmul.f32 %v5230_v14, %v5764_v17  ;;  %v507_v18 = vmul.f32 %v5230_v14, %v5767_v38  ;;  %v6687_v53 = vpop.f32.mrb[30].mxu0 }
 0x1c9   :  { %v2022_v44 = vpack.c.bf16 %v1970_v36, %v1968_v61  ;;  %v2514_v45 = vpack.c.bf16 %v6687_v53, %v6679_v60  ;;  %v2021_v28 = vpack.c.bf16 %v1969_v51, %v1967_v57  ;;  %v6691_v19 = vpop.f32.mrb[31].mxu0  ;;  %v2582_v48 = vpack.i.b16 %v2573_v1, %v2573_v1 }
 0x1ca   :  { %v619_v6 = vadd.f32 %v5774_v27, %v508_v42  ;;  %v620_v35 = vadd.f32 %v5779_v32, %v509_v12  ;;  %v617_v37 = vadd.f32 %v5774_v27, %v506_v5  ;;  %v618_v16 = vadd.f32 %v5779_v32, %v507_v18 }
 0x1cb   :  { %v5241_v17 = vpop.permute.xlu1 %5240  ;;  %2479 = vmatprep.mubr.bf16.mxu1 %v2022_v44  ;;  %v2515_v20 = vpack.c.bf16 %v6691_v19, %v6681_v43  ;;  %v2566_v36 = vrot.slane %v6643_v58, %v6656_v10  ;;  %v6706_v42 = vrot.slane %v2582_v48, %v5739_v31 }
 0x1cc   :  { %v5243_v38 = vunpack.i.h.bf16 %v5241_v17  ;;  %v5242_v21 = vunpack.i.l.bf16 %v5241_v17  ;;  %v1037_v54 = vadd.f32 %v937_v7, %v619_v6  ;;  %v1038_v57 = vadd.f32 %v938_v15, %v620_v35  ;;  %2480 = vmatmul.mubr.bf16.gmra.mrb[40].mxu1 %v2021_v28 }
 0x1cd   :  { %v1035_v51 = vadd.f32 %v935_v11, %v617_v37  ;;  %v1036_v13 = vadd.f32 %v936_v22, %v618_v16  ;;  %v2575_v16 = vpack.i.b16 %v2566_v36, %v2566_v36  ;;  %v7442_v17 = vpack.c.bf16 %v6483_v62, %v6472_v9 }
 0x1ce   :  { %v1355_v14 = vmul.f32 %v5243_v38, %v5771_v25  ;;  %v1356_v61 = vmul.f32 %v5243_v38, %v5777_v29  ;;  %v1353_v27 = vmul.f32 %v5242_v21, %v5771_v25  ;;  %v1354_v32 = vmul.f32 %v5242_v21, %v5777_v29 }
 0x1cf   :  { %v2589_v48 = vadd.bf16 %v6706_v42, %v7442_v17  ;;  %v6729_v62 = vrot.slane %v2575_v16, %v5739_v31  ;;  %v7444_v36 = vpack.c.bf16 %v6511_v8, %v6502_v26 }
 0x1d0   :  { %v5247_v1 = vpop.permute.xlu1 %5246  ;;  %v1453_v11 = vadd.f32 %v1353_v27, %v1035_v51  ;;  %v1454_v22 = vadd.f32 %v1354_v32, %v1036_v13  ;;  %v1455_v12 = vadd.f32 %v1355_v14, %v1037_v54  ;;  %v1456_v5 = vadd.f32 %v1356_v61, %v1038_v57 }
 0x1d1   :  { %v5249_v7 = vunpack.i.h.bf16 %v5247_v1  ;;  %v5248_v15 = vunpack.i.l.bf16 %v5247_v1  ;;  %v2639_v27 = vmax.bf16 %v7435_v41, %v2589_v48  ;;  %v7443_v32 = vpack.c.bf16 %v6475_v24, %v6469_v46 }
 0x1d2   :  { %v7445_v46 = vpack.c.bf16 %v6505_v59, %v6497_v34  ;;  %v7447_v34 = vpack.c.bf16 %v6533_v56, %v6524_v49 }
 0x1d3   :  { %v1773_v18 = vmul.f32 %v5249_v7, %v5781_v33  ;;  %v1774_v44 = vmul.f32 %v5249_v7, %v5791_v47  ;;  %v1771_v25 = vmul.f32 %v5248_v15, %v5781_v33  ;;  %v1772_v29 = vmul.f32 %v5248_v15, %v5791_v47 }
 0x1d4   :  { %v6712_v37 = vpop.f32.mrb[32].mxu0  ;;  %v2588_v1 = vadd.bf16 %v6729_v62, %v7443_v32  ;;  %v2591_v7 = vadd.bf16 %v6706_v42, %v7444_v36  ;;  %v2590_v24 = vadd.bf16 %v6729_v62, %v7445_v46  ;;  %v2592_v59 = vadd.bf16 %v6729_v62, %v7447_v34  ;;  %v7451_v32 = vld [vmem:[#allocation3_spill] sm:$0xff] }
 0x1d5   :  { %v1871_v28 = vadd.f32 %v1771_v25, %v1453_v11  ;;  %v1872_v6 = vadd.f32 %v1772_v29, %v1454_v22  ;;  %v1873_v58 = vadd.f32 %v1773_v18, %v1455_v12  ;;  %v1874_v35 = vadd.f32 %v1774_v44, %v1456_v5  ;;  %v6718_v38 = vpop.f32.mrb[33].mxu0 }
 0x1d6   :  { %v6720_v51 = vpop.f32.mrb[34].mxu0  ;;  %v2638_v15 = vmax.bf16 %v7435_v41, %v2588_v1  ;;  %v2641_v11 = vmax.bf16 %v7435_v41, %v2591_v7  ;;  %v7446_v18 = vpack.c.bf16 %v6539_v40, %v6528_v3  ;;  %v2640_v29 = vmax.bf16 %v7435_v41, %v2590_v24  ;;  %v7452_v1 = vld [vmem:[#allocation2_spill] sm:$0xff] }
 0x1d7   :  { %v1971_v21 = vmax.f32 %v1871_v28, 0.0  ;;  %v1972_v54 = vmax.f32 %v1872_v6, 0.0  ;;  %v1973_v57 = vmax.f32 %v1873_v58, 0.0  ;;  %v1974_v33 = vmax.f32 %v1874_v35, 0.0  ;;  %v6724_v13 = vpop.f32.mrb[35].mxu0 }
 0x1d8   :  { %v2516_v47 = vpack.c.bf16 %v6720_v51, %v6712_v37  ;;  %v2517_v14 = vpack.c.bf16 %v6724_v13, %v6718_v38  ;;  %v2593_v44 = vadd.bf16 %v6706_v42, %v7446_v18  ;;  %v7448_v6 = vpack.c.bf16 %v6562_v52, %v6551_v30  ;;  %v5347_v30 = vld [vmem:[%s7412_s7] ss:$8 sps:$4 sm:$0xff]   ;;  %v5349_v52 = vld [vmem:[%s7412_s7 + $0x4] ss:$8 sps:$4 sm:$0xff]   ;;  %v5368_v38 = vld [vmem:[%s7412_s7 + $0x70] ss:$8 sps:$4 sm:$0xff]  }
 0x1d9   :  { %v2024_v61 = vpack.c.bf16 %v1974_v33, %v1972_v54  ;;  %v2023_v9 = vpack.c.bf16 %v1973_v57, %v1971_v21  ;;  %v2642_v16 = vmax.bf16 %v7435_v41, %v2592_v59  ;;  %v7449_v21 = vpack.c.bf16 %v6557_v55, %v6549_v23  ;;  %3543 = vmatprep.subr.bf16.mxu0 %v5349_v52  ;;  %v5350_v57 = vld [vmem:[%s7412_s7 + $0x10] ss:$8 sps:$4 sm:$0xff]   ;;  %v5352_v33 = vld [vmem:[%s7412_s7 + $0x14] ss:$8 sps:$4 sm:$0xff]   ;;  %v5371_v51 = vld [vmem:[%s7412_s7 + $0x80] ss:$8 sps:$4 sm:$0xff]  }
 0x1da   :  { %v2643_v28 = vmax.bf16 %v7435_v41, %v2593_v44  ;;  %v2595_v3 = vadd.bf16 %v6706_v42, %v7448_v6  ;;  %3544 = vmatpush1.bf16.msra.mxu0 %v5347_v30  ;;  %v7453_v36 = vpack.c.bf16 %v7451_v32, %v7452_v1  ;;  %v7458_v30 = vld [vmem:[#allocation4_spill] sm:$0xff]  ;;  %v5359_v32 = vld [vmem:[%s7412_s7 + $0x40] ss:$8 sps:$4 sm:$0xff]   ;;  %v5361_v1 = vld [vmem:[%s7412_s7 + $0x44] ss:$8 sps:$4 sm:$0xff]  }
 0x1db   :  { %2489 = vmatprep.mubr.bf16.mxu1 %v2024_v61  ;;  %v2594_v54 = vadd.bf16 %v6729_v62, %v7449_v21  ;;  %v7450_v61 = vpack.c.bf16 %v6583_v63, %v6579_v0  ;;  %3545 = vmatprep.subr.bf16.mxu0 %v5352_v33  ;;  %v7454_v0 = vld [vmem:[#allocation7_spill] sm:$0xff]  ;;  %v7455_v63 = vld [vmem:[#allocation5_spill] sm:$0xff] }
 0x1dc   :  { %2490 = vmatmul.mubr.bf16.gmra.mrb[44].mxu1 %v2023_v9  ;;  %v2645_v49 = vmax.bf16 %v7435_v41, %v2595_v3  ;;  %v2596_v7 = vadd.bf16 %v6729_v62, %v7453_v36  ;;  %v5356_v3 = vld [vmem:[%s7412_s7 + $0x30] ss:$8 sps:$4 sm:$0xff]   ;;  %v5370_v13 = vld [vmem:[%s7412_s7 + $0x74] ss:$8 sps:$4 sm:$0xff]  }
 0x1dd   :  { %2912 = vmatprep.mubr.bf16.mxu1 %v2639_v27  ;;  %v2597_v9 = vadd.bf16 %v6706_v42, %v7450_v61  ;;  %v2644_v23 = vmax.bf16 %v7435_v41, %v2594_v54  ;;  %v7460_v54 = vpack.c.bf16 %v6666_v50, %v6660_v4  ;;  %v2603_v4 = vadd.bf16 %v6706_v42, %v2515_v20 }
 0x1de   :  { %3546 = vmatpush1.bf16.msra.mxu0 %v5350_v57  ;;  %v2646_v59 = vmax.bf16 %v7435_v41, %v2596_v7  ;;  %v5362_v7 = vld [vmem:[%s7412_s7 + $0x50] ss:$8 sps:$4 sm:$0xff]  }
 0x1df   :  { %v2647_v55 = vmax.bf16 %v7435_v41, %v2597_v9  ;;  %v2601_v57 = vadd.bf16 %v6706_v42, %v7460_v54  ;;  %v7461_v9 = vpack.c.bf16 %v6662_v39, %v6653_v2  ;;  %v5364_v39 = vld [vmem:[%s7412_s7 + $0x54] ss:$8 sps:$4 sm:$0xff]  }
 0x1e1   :  { %v6742_v22 = vpop.f32.mrb[36].mxu0  ;;  %v2651_v61 = vmax.bf16 %v7435_v41, %v2601_v57 }
 0x1e2   :  { %v6744_v12 = vpop.f32.mrb[37].mxu0 }
 0x1e3   :  { %v6746_v5 = vpop.f32.mrb[38].mxu0 }
 0x1e4   :  { %2913 = vmatmul.mubr.bf16.vlgmr.msra.gmra.mrb[48].mxu1 %v2638_v15  ;;  %v2518_v26 = vpack.c.bf16 %v6746_v5, %v6742_v22  ;;  %v6754_v8 = vpop.f32.mrb[39].mxu0 }
 0x1e5   :  { %2922 = vmatprep.mubr.bf16.mxu1 %v2641_v11  ;;  %v2519_v25 = vpack.c.bf16 %v6754_v8, %v6744_v12  ;;  %v7456_v11 = vpack.c.bf16 %v7454_v0, %v7455_v63  ;;  %v2653_v0 = vmax.bf16 %v7435_v41, %v2603_v4  ;;  %v2602_v63 = vadd.bf16 %v6729_v62, %v2514_v45  ;;  %v5376_v8 = vld [vmem:[%s7412_s7 + $0x94] ss:$8 sps:$4 sm:$0xff]   ;;  %v5380_v4 = vld [vmem:[%s7412_s7 + $0xb0] ss:$8 sps:$4 sm:$0xff]  }
 0x1e6   :  { %v2606_v12 = vadd.bf16 %v6729_v62, %v2518_v26 }
 0x1e7   :  { %v2599_v46 = vadd.bf16 %v6706_v42, %v7456_v11  ;;  %v2605_v11 = vadd.bf16 %v6706_v42, %v2517_v14  ;;  %v2604_v14 = vadd.bf16 %v6729_v62, %v2516_v47  ;;  %v5373_v47 = vld [vmem:[%s7412_s7 + $0x84] ss:$8 sps:$4 sm:$0xff]  }
 0x1e8   :  { %v2656_v26 = vmax.bf16 %v7435_v41, %v2606_v12 }
 0x1e9   :  { %v2649_v6 = vmax.bf16 %v7435_v41, %v2599_v46  ;;  %v5365_v46 = vld [vmem:[%s7412_s7 + $0x60] ss:$8 sps:$4 sm:$0xff]   ;;  %v2655_v60 = vmax.bf16 %v7435_v41, %v2605_v11 }
 0x1ec   :  { %2923 = vmatmul.mubr.bf16.gmra.mrb[52].mxu1 %v2640_v29  ;;  %v5353_v29 = vld [vmem:[%s7412_s7 + $0x20] ss:$8 sps:$4 sm:$0xff]  }
 0x1ed   :  { %2932 = vmatprep.mubr.bf16.mxu1 %v2643_v28  ;;  %v5355_v28 = vld [vmem:[%s7412_s7 + $0x24] ss:$8 sps:$4 sm:$0xff]  }
 0x1ee   :  { %v6772_v40 = vpop.f32.mrb[40].mxu0  ;;  %3547 = vmatprep.subr.bf16.mxu0 %v5355_v28  ;;  %v2652_v28 = vmax.bf16 %v7435_v41, %v2602_v63 }
 0x1ef   :  { %v6774_v58 = vpop.f32.mrb[41].mxu0  ;;  %3548 = vmatpush1.bf16.msra.mxu0 %v5353_v29  ;;  %v5367_v29 = vld [vmem:[%s7412_s7 + $0x64] ss:$8 sps:$4 sm:$0xff]  }
 0x1f0   :  { %v6776_v35 = vpop.f32.mrb[42].mxu0 }
 0x1f1   :  { %v2520_v17 = vpack.c.bf16 %v6776_v35, %v6772_v40  ;;  %v6781_v48 = vpop.f32.mrb[43].mxu0  ;;  %v5383_v40 = vld [vmem:[%s7412_s7 + $0xc0] ss:$8 sps:$4 sm:$0xff]   ;;  %v5385_v35 = vld [vmem:[%s7412_s7 + $0xc4] ss:$8 sps:$4 sm:$0xff]  }
 0x1f2   :  { %v2521_v56 = vpack.c.bf16 %v6781_v48, %v6774_v58  ;;  %v5379_v58 = vld [vmem:[%s7412_s7 + $0xa4] ss:$8 sps:$4 sm:$0xff]  }
 0x1f4   :  { %2933 = vmatmul.mubr.bf16.gmra.mrb[56].mxu1 %v2642_v16  ;;  %v5358_v16 = vld [vmem:[%s7412_s7 + $0x34] ss:$8 sps:$4 sm:$0xff]  }
 0x1f5   :  { %2942 = vmatprep.mubr.bf16.mxu1 %v2645_v49  ;;  %v7457_v49 = vld [vmem:[#allocation6_spill] sm:$0xff]  ;;  %3549 = vmatprep.subr.bf16.mxu0 %v5358_v16  ;;  %v2607_v16 = vadd.bf16 %v6706_v42, %v2519_v25  ;;  %v2609_v25 = vadd.bf16 %v6706_v42, %v2521_v56 }
 0x1f6   :  { %v7459_v52 = vpack.c.bf16 %v7457_v49, %v7458_v30  ;;  %3550 = vmatpush1.bf16.msra.mxu0 %v5356_v3  ;;  %v2654_v30 = vmax.bf16 %v7435_v41, %v2604_v14 }
 0x1f7   :  { %3551 = vmatprep.subr.bf16.mxu0 %v5361_v1  ;;  %v2657_v37 = vmax.bf16 %v7435_v41, %v2607_v16  ;;  %v2659_v54 = vmax.bf16 %v7435_v41, %v2609_v25 }
 0x1f8   :  { %v2598_v21 = vadd.bf16 %v6729_v62, %v7459_v52 }
 0x1fa   :  { %v6808_v27 = vpop.f32.mrb[44].mxu0  ;;  %v2648_v33 = vmax.bf16 %v7435_v41, %v2598_v21  ;;  %3552 = vmatpush1.bf16.msra.mxu0 %v5359_v32  ;;  %v5374_v21 = vld [vmem:[%s7412_s7 + $0x90] ss:$8 sps:$4 sm:$0xff]  }
 0x1fb   :  { %v6814_v15 = vpop.f32.mrb[45].mxu0  ;;  %3553 = vmatprep.subr.bf16.mxu0 %v5364_v39 }
 0x1fc   :  { %2943 = vmatmul.mubr.bf16.gmra.mrb[60].mxu1 %v2644_v23  ;;  %v6820_v24 = vpop.f32.mrb[46].mxu0  ;;  %v2600_v23 = vadd.bf16 %v6729_v62, %v7461_v9  ;;  %v2608_v9 = vadd.bf16 %v6729_v62, %v2520_v17 }
 0x1fd   :  { %2952 = vmatprep.mubr.bf16.mxu1 %v2647_v55  ;;  %v2522_v18 = vpack.c.bf16 %v6820_v24, %v6808_v27  ;;  %v6824_v44 = vpop.f32.mrb[47].mxu0 }
 0x1fe   :  { %v2523_v34 = vpack.c.bf16 %v6824_v44, %v6814_v15  ;;  %v2650_v36 = vmax.bf16 %v7435_v41, %v2600_v23  ;;  %3554 = vmatpush1.bf16.msra.mxu0 %v5362_v7  ;;  %v2658_v32 = vmax.bf16 %v7435_v41, %v2608_v9  ;;  %v5388_v15 = vld [vmem:[%s7412_s7 + $0xd4] ss:$8 sps:$4 sm:$0xff]  }
 0x1ff   :  { %3555 = vmatprep.subr.bf16.mxu0 %v5367_v29  ;;  %v2610_v17 = vadd.bf16 %v6729_v62, %v2522_v18 }
 0x200   :  { %v2611_v23 = vadd.bf16 %v6706_v42, %v2523_v34 }
 0x201   :  { %v2660_v7 = vmax.bf16 %v7435_v41, %v2610_v17 }
 0x202   :  { %3556 = vmatpush1.bf16.msra.mxu0 %v5365_v46  ;;  %v2661_v1 = vmax.bf16 %v7435_v41, %v2611_v23  ;;  %v5394_v46 = vld [vmem:[%s7412_s7 + $0xf4] ss:$8 sps:$4 sm:$0xff]  }
 0x203   :  { %3557 = vmatprep.subr.bf16.mxu0 %v5370_v13 }
 0x204   :  { %2953 = vmatmul.mubr.bf16.gmra.mrb[64].mxu1 %v2646_v59 }
 0x205   :  { %2962 = vmatprep.mubr.bf16.mxu1 %v2649_v6 }
 0x206   :  { %3558 = vmatpush1.bf16.msra.mxu0 %v5368_v38 }
 0x207   :  { %3559 = vmatprep.subr.bf16.mxu0 %v5373_v47 }
 0x20a   :  { %3560 = vmatpush1.bf16.msra.mxu0 %v5371_v51 }
 0x20b   :  { %3561 = vmatprep.subr.bf16.mxu0 %v5376_v8 }
 0x20c   :  { %2963 = vmatmul.mubr.bf16.gmra.mrb[68].mxu1 %v2648_v33  ;;  %v6856_v55 = vpop.f32.mrb[48].mxu0  ;;  %v5377_v33 = vld [vmem:[%s7412_s7 + $0xa0] ss:$8 sps:$4 sm:$0xff]  }
 0x20d   :  { %2972 = vmatprep.mubr.bf16.mxu1 %v2651_v61  ;;  %v6862_v50 = vpop.f32.mrb[49].mxu0  ;;  %v5382_v61 = vld [vmem:[%s7412_s7 + $0xb4] ss:$8 sps:$4 sm:$0xff]  }
 0x20e   :  { %v6870_v2 = vpop.f32.mrb[50].mxu0  ;;  %3562 = vmatpush1.bf16.msra.mxu0 %v5374_v21 }
 0x20f   :  { %v2524_v43 = vpack.c.bf16 %v6870_v2, %v6856_v55  ;;  %v6877_v19 = vpop.f32.mrb[51].mxu0  ;;  %3563 = vmatprep.subr.bf16.mxu0 %v5379_v58  ;;  %v5392_v55 = vld [vmem:[%s7412_s7 + $0xf0] ss:$8 sps:$4 sm:$0xff]  }
 0x210   :  { %v2525_v20 = vpack.c.bf16 %v6877_v19, %v6862_v50  ;;  %v5389_v19 = vld [vmem:[%s7412_s7 + $0xe0] ss:$8 sps:$4 sm:$0xff]  }
 0x211   :  { %v2612_v50 = vadd.bf16 %v6729_v62, %v2524_v43 }
 0x212   :  { %3564 = vmatpush1.bf16.msra.mxu0 %v5377_v33  ;;  %v2613_v44 = vadd.bf16 %v6706_v42, %v2525_v20  ;;  %v5391_v20 = vld [vmem:[%s7412_s7 + $0xe4] ss:$8 sps:$4 sm:$0xff]  }
 0x213   :  { %3565 = vmatprep.subr.bf16.mxu0 %v5382_v61  ;;  %v2662_v2 = vmax.bf16 %v7435_v41, %v2612_v50 }
 0x214   :  { %2973 = vmatmul.mubr.bf16.gmra.mrb[72].mxu1 %v2650_v36  ;;  %v5386_v36 = vld [vmem:[%s7412_s7 + $0xd0] ss:$8 sps:$4 sm:$0xff]   ;;  %v2663_v63 = vmax.bf16 %v7435_v41, %v2613_v44 }
 0x215   :  { %2982 = vmatprep.mubr.bf16.mxu1 %v2653_v0 }
 0x216   :  { %3566 = vmatpush1.bf16.msra.mxu0 %v5380_v4 }
 0x217   :  { %3567 = vmatprep.subr.bf16.mxu0 %v5385_v35 }
 0x21a   :  { %3568 = vmatpush1.bf16.msra.mxu0 %v5383_v40 }
 0x21b   :  { %v6901_v59 = vpop.f32.mrb[0].mxu1  ;;  %3569 = vmatprep.subr.bf16.mxu0 %v5388_v15 }
 0x21c   :  { %v6904_v53 = vpop.f32.mrb[1].mxu1  ;;  %2983 = vmatmul.mubr.bf16.gmra.mrb[76].mxu1 %v2652_v28 }
 0x21d   :  { %v6906_v45 = vpop.f32.mrb[2].mxu1  ;;  %2992 = vmatprep.mubr.bf16.mxu1 %v2655_v60 }
 0x21e   :  { %v2526_v6 = vpack.c.bf16 %v6906_v45, %v6901_v59  ;;  %v6920_v3 = vpop.f32.mrb[3].mxu1  ;;  %3570 = vmatpush1.bf16.msra.mxu0 %v5386_v36 }
 0x21f   :  { %v2527_v49 = vpack.c.bf16 %v6920_v3, %v6904_v53  ;;  %3571 = vmatprep.subr.bf16.mxu0 %v5391_v20 }
 0x220   :  { %v2614_v53 = vadd.bf16 %v6729_v62, %v2526_v6 }
 0x221   :  { %v2615_v11 = vadd.bf16 %v6706_v42, %v2527_v49 }
 0x222   :  { %3572 = vmatpush1.bf16.msra.mxu0 %v5389_v19  ;;  %v2664_v16 = vmax.bf16 %v7435_v41, %v2614_v53 }
 0x223   :  { %3573 = vmatprep.subr.bf16.mxu0 %v5394_v46  ;;  %v2665_v29 = vmax.bf16 %v7435_v41, %v2615_v11 }
 0x224   :  { %2993 = vmatmul.mubr.bf16.gmra.mrb[80].mxu1 %v2654_v30 }
 0x225   :  { %3002 = vmatprep.mubr.bf16.mxu1 %v2657_v37 }
 0x226   :  { %3574 = vmatpush1.bf16.msra.mxu0 %v5392_v55 }
 0x227   :  { %v6947_v52 = vpop.f32.mrb[4].mxu1 }
 0x228   :  { %v6952_v22 = vpop.f32.mrb[5].mxu1 }
 0x229   :  { %v6954_v5 = vpop.f32.mrb[6].mxu1 }
 0x22a   :  { %v2528_v48 = vpack.c.bf16 %v6954_v5, %v6947_v52  ;;  %v2397_v56 = vpop.f32.mrb[7].mxu1 }
 0x22b   :  { %v2529_v57 = vpack.c.bf16 %v2397_v56, %v6952_v22 }
 0x22c   :  { %3003 = vmatmul.mubr.bf16.gmra.mrb[84].mxu1 %v2656_v26  ;;  %v2616_v30 = vadd.bf16 %v6729_v62, %v2528_v48 }
 0x22d   :  { %3012 = vmatprep.mubr.bf16.mxu1 %v2659_v54  ;;  %v2617_v14 = vadd.bf16 %v6706_v42, %v2529_v57 }
 0x22e   :  { %v2666_v51 = vmax.bf16 %v7435_v41, %v2616_v30 }
 0x22f   :  { %v2667_v49 = vmax.bf16 %v7435_v41, %v2617_v14 }
 0x234   :  { %3013 = vmatmul.mubr.bf16.gmra.mrb[88].mxu1 %v2658_v32 }
 0x235   :  { %3022 = vmatprep.mubr.bf16.mxu1 %v2661_v1 }
 0x236   :  { %v2401_v34 = vpop.f32.mrb[8].mxu1 }
 0x237   :  { %v2403_v39 = vpop.f32.mrb[9].mxu1 }
 0x238   :  { %v2405_v27 = vpop.f32.mrb[10].mxu1 }
 0x239   :  { %v2530_v24 = vpack.c.bf16 %v2405_v27, %v2401_v34  ;;  %v2407_v18 = vpop.f32.mrb[11].mxu1 }
 0x23a   :  { %v2531_v0 = vpack.c.bf16 %v2407_v18, %v2403_v39 }
 0x23b   :  { %v2618_v21 = vadd.bf16 %v6729_v62, %v2530_v24 }
 0x23c   :  { %3023 = vmatmul.mubr.bf16.gmra.mrb[92].mxu1 %v2660_v7  ;;  %v2619_v59 = vadd.bf16 %v6706_v42, %v2531_v0 }
 0x23d   :  { %3032 = vmatprep.mubr.bf16.mxu1 %v2663_v63  ;;  %v2668_v22 = vmax.bf16 %v7435_v41, %v2618_v21 }
 0x23e   :  { %v2669_v8 = vmax.bf16 %v7435_v41, %v2619_v59 }
 0x242   :  { %v2411_v43 = vpop.f32.mrb[12].mxu1 }
 0x243   :  { %v2413_v28 = vpop.f32.mrb[13].mxu1 }
 0x244   :  { %3033 = vmatmul.mubr.bf16.gmra.mrb[96].mxu1 %v2662_v2  ;;  %v2415_v60 = vpop.f32.mrb[14].mxu1 }
 0x245   :  { %3042 = vmatprep.mubr.bf16.mxu1 %v2665_v29  ;;  %v2532_v38 = vpack.c.bf16 %v2415_v60, %v2411_v43  ;;  %v2417_v13 = vpop.f32.mrb[15].mxu1 }
 0x246   :  { %v2533_v3 = vpack.c.bf16 %v2417_v13, %v2413_v28 }
 0x247   :  { %v2620_v26 = vadd.bf16 %v6729_v62, %v2532_v38 }
 0x248   :  { %v2621_v52 = vadd.bf16 %v6706_v42, %v2533_v3 }
 0x249   :  { %v2670_v54 = vmax.bf16 %v7435_v41, %v2620_v26 }
 0x24a   :  { %v2671_v5 = vmax.bf16 %v7435_v41, %v2621_v52 }
 0x24c   :  { %3043 = vmatmul.mubr.bf16.gmra.mrb[100].mxu1 %v2664_v16 }
 0x24d   :  { %3052 = vmatprep.mubr.bf16.mxu1 %v2667_v49 }
 0x24f   :  { %v2421_v45 = vpop.f32.mrb[16].mxu1 }
 0x250   :  { %v2423_v6 = vpop.f32.mrb[17].mxu1 }
 0x251   :  { %v2425_v37 = vpop.f32.mrb[18].mxu1 }
 0x252   :  { %v2534_v47 = vpack.c.bf16 %v2425_v37, %v2421_v45  ;;  %v2427_v12 = vpop.f32.mrb[19].mxu1 }
 0x253   :  { %v2535_v25 = vpack.c.bf16 %v2427_v12, %v2423_v6 }
 0x254   :  { %3053 = vmatmul.mubr.bf16.gmra.mrb[104].mxu1 %v2666_v51  ;;  %v2622_v4 = vadd.bf16 %v6729_v62, %v2534_v47 }
 0x255   :  { %3062 = vmatprep.mubr.bf16.mxu1 %v2669_v8  ;;  %v2623_v58 = vadd.bf16 %v6706_v42, %v2535_v25 }
 0x256   :  { %v2672_v1 = vmax.bf16 %v7435_v41, %v2622_v4 }
 0x257   :  { %v2673_v33 = vmax.bf16 %v7435_v41, %v2623_v58 }
 0x25c   :  { %3063 = vmatmul.mubr.bf16.gmra.mrb[108].mxu1 %v2668_v22 }
 0x25d   :  { %3072 = vmatprep.mubr.bf16.mxu1 %v2671_v5 }
 0x25e   :  { %v2431_v48 = vpop.f32.mrb[20].mxu1 }
 0x25f   :  { %v2433_v56 = vpop.f32.mrb[21].mxu1 }
 0x260   :  { %v2435_v57 = vpop.f32.mrb[22].mxu1 }
 0x261   :  { %v2536_v61 = vpack.c.bf16 %v2435_v57, %v2431_v48  ;;  %v2437_v9 = vpop.f32.mrb[23].mxu1 }
 0x262   :  { %v2537_v23 = vpack.c.bf16 %v2437_v9, %v2433_v56 }
 0x263   :  { %v2624_v15 = vadd.bf16 %v6729_v62, %v2536_v61  ;;  %v4395_v61 = vld.sshfl [vmem:[%s7413_s6] sm:$0x11 pattern:$0x75316420] }
 0x264   :  { %3073 = vmatmul.mubr.bf16.gmra.mrb[112].mxu1 %v2670_v54  ;;  %v2625_v32 = vadd.bf16 %v6706_v42, %v2537_v23  ;;  %v3222_v9 = vcombine.high %v4395_v61, %v4395_v61 }
 0x265   :  { %3082 = vmatprep.mubr.bf16.mxu1 %v2673_v33  ;;  %v2674_v24 = vmax.bf16 %v7435_v41, %v2624_v15 }
 0x266   :  { %v2675_v40 = vmax.bf16 %v7435_v41, %v2625_v32  ;;  %v3229_v32 = vrot.slane %v4395_v61, %v6656_v10 }
 0x26b   :  { %v2441_v35 = vpop.f32.mrb[24].mxu1 }
 0x26c   :  { %3083 = vmatmul.mubr.bf16.gmra.mrb[116].mxu1 %v2672_v1  ;;  %v2443_v17 = vpop.f32.mrb[25].mxu1 }
 0x26d   :  { %3092 = vmatprep.mubr.bf16.mxu1 %v2675_v40  ;;  %v2445_v44 = vpop.f32.mrb[26].mxu1  ;;  %v3236_v40 = vrot.slane %v3222_v9, %v6656_v10 }
 0x26e   :  { %v2538_v34 = vpack.c.bf16 %v2445_v44, %v2441_v35  ;;  %v2447_v39 = vpop.f32.mrb[27].mxu1 }
 0x26f   :  { %v2539_v36 = vpack.c.bf16 %v2447_v39, %v2443_v17 }
 0x270   :  { %v2626_v7 = vadd.bf16 %v6729_v62, %v2538_v34  ;;  %v3238_v34 = vpack.i.b16 %v3229_v32, %v3229_v32 }
 0x271   :  { %v2627_v27 = vadd.bf16 %v6706_v42, %v2539_v36  ;;  %v3245_v36 = vpack.i.b16 %v3236_v40, %v3236_v40 }
 0x272   :  { %v2676_v63 = vmax.bf16 %v7435_v41, %v2626_v7  ;;  %v7084_v7 = vrot.slane %v3238_v34, %v5739_v31 }
 0x273   :  { %v2677_v18 = vmax.bf16 %v7435_v41, %v2627_v27 }
 0x274   :  { %3093 = vmatmul.mubr.bf16.gmra.mrb[120].mxu1 %v2674_v24 }
 0x275   :  { %3102 = vmatprep.mubr.bf16.mxu1 %v2677_v18 }
 0x277   :  { %v2451_v0 = vpop.f32.mrb[28].mxu1 }
 0x278   :  { %v2453_v50 = vpop.f32.mrb[29].mxu1 }
 0x279   :  { %v2455_v19 = vpop.f32.mrb[30].mxu1 }
 0x27a   :  { %v2540_v20 = vpack.c.bf16 %v2455_v19, %v2451_v0  ;;  %v2457_v11 = vpop.f32.mrb[31].mxu1 }
 0x27b   :  { %v2541_v46 = vpack.c.bf16 %v2457_v11, %v2453_v50  ;;  %v7088_v50 = vrot.slane %v3245_v36, %v5739_v31 }
 0x27c   :  { %3103 = vmatmul.mubr.bf16.gmra.mrb[124].mxu1 %v2676_v63  ;;  %v2628_v55 = vadd.bf16 %v6729_v62, %v2540_v20 }
 0x27d   :  { %v2629_v2 = vadd.bf16 %v6706_v42, %v2541_v46 }
 0x27e   :  { %v2678_v29 = vmax.bf16 %v7435_v41, %v2628_v55 }
 0x27f   :  { %v2679_v43 = vmax.bf16 %v7435_v41, %v2629_v2 }
 0x281   :  { %3112 = vmatprep.mubr.bf16.mxu1 %v2679_v43 }
 0x284   :  { %3113 = vmatmul.mubr.bf16.gmra.mrb[128].mxu1 %v2678_v29 }
 0x286   :  { %v2461_v28 = vpop.f32.mrb[32].mxu1 }
 0x287   :  { %v2463_v60 = vpop.f32.mrb[33].mxu1 }
 0x288   :  { %v2465_v53 = vpop.f32.mrb[34].mxu1 }
 0x289   :  { %v2542_v38 = vpack.c.bf16 %v2465_v53, %v2461_v28  ;;  %v2467_v13 = vpop.f32.mrb[35].mxu1 }
 0x28a   :  { %v2543_v14 = vpack.c.bf16 %v2467_v13, %v2463_v60 }
 0x28b   :  { %v2630_v3 = vadd.bf16 %v6729_v62, %v2542_v38 }
 0x28c   :  { %v2631_v16 = vadd.bf16 %v6706_v42, %v2543_v14 }
 0x28d   :  { %v2680_v30 = vmax.bf16 %v7435_v41, %v2630_v3 }
 0x28e   :  { %v2681_v49 = vmax.bf16 %v7435_v41, %v2631_v16 }
 0x290   :  { %3122 = vmatprep.mubr.bf16.mxu1 %v2681_v49 }
 0x291   :  { %3123 = vmatmul.mubr.bf16.gmra.mrb[132].mxu1 %v2680_v30 }
 0x292   :  { %v2471_v59 = vpop.f32.mrb[36].mxu1 }
 0x293   :  { %v2473_v45 = vpop.f32.mrb[37].mxu1 }
 0x294   :  { %v2475_v6 = vpop.f32.mrb[38].mxu1 }
 0x295   :  { %v2544_v37 = vpack.c.bf16 %v2475_v6, %v2471_v59  ;;  %v2477_v51 = vpop.f32.mrb[39].mxu1 }
 0x296   :  { %v2545_v47 = vpack.c.bf16 %v2477_v51, %v2473_v45 }
 0x297   :  { %v2632_v12 = vadd.bf16 %v6729_v62, %v2544_v37 }
 0x298   :  { %v2633_v8 = vadd.bf16 %v6706_v42, %v2545_v47 }
 0x299   :  { %v2682_v21 = vmax.bf16 %v7435_v41, %v2632_v12 }
 0x29a   :  { %v2683_v25 = vmax.bf16 %v7435_v41, %v2633_v8 }
 0x29c   :  { %3132 = vmatprep.mubr.bf16.mxu1 %v2683_v25 }
 0x29d   :  { %3133 = vmatmul.mubr.bf16.gmra.mrb[136].mxu1 %v2682_v21 }
 0x29f   :  { %v2481_v52 = vpop.f32.mrb[40].mxu1 }
 0x2a0   :  { %v2483_v22 = vpop.f32.mrb[41].mxu1 }
 0x2a1   :  { %v2485_v5 = vpop.f32.mrb[42].mxu1 }
 0x2a2   :  { %v2546_v26 = vpack.c.bf16 %v2485_v5, %v2481_v52  ;;  %v2487_v58 = vpop.f32.mrb[43].mxu1 }
 0x2a3   :  { %v2547_v48 = vpack.c.bf16 %v2487_v58, %v2483_v22 }
 0x2a4   :  { %v2634_v56 = vadd.bf16 %v6729_v62, %v2546_v26 }
 0x2a5   :  { %v2635_v54 = vadd.bf16 %v6706_v42, %v2547_v48 }
 0x2a6   :  { %v2684_v33 = vmax.bf16 %v7435_v41, %v2634_v56 }
 0x2a7   :  { %v2685_v57 = vmax.bf16 %v7435_v41, %v2635_v54 }
 0x2a9   :  { %3142 = vmatprep.mubr.bf16.mxu1 %v2685_v57 }
 0x2aa   :  { %3143 = vmatmul.mubr.bf16.gmra.mrb[140].mxu1 %v2684_v33 }
 0x2af   :  { %v2491_v23 = vpop.f32.mrb[44].mxu1 }
 0x2b0   :  { %v2493_v4 = vpop.f32.mrb[45].mxu1 }
 0x2b1   :  { %v2495_v1 = vpop.f32.mrb[46].mxu1 }
 0x2b2   :  { %v2548_v35 = vpack.c.bf16 %v2495_v1, %v2491_v23  ;;  %v2497_v17 = vpop.f32.mrb[47].mxu1 }
 0x2b3   :  { %v2549_v15 = vpack.c.bf16 %v2497_v17, %v2493_v4 }
 0x2b4   :  { %v2636_v44 = vadd.bf16 %v6729_v62, %v2548_v35 }
 0x2b5   :  { %v2637_v39 = vadd.bf16 %v6706_v42, %v2549_v15 }
 0x2b6   :  { %v2686_v0 = vmax.bf16 %v7435_v41, %v2636_v44 }
 0x2b7   :  { %v2914_v27 = vpop.f32.mrb[48].mxu1  ;;  %v2687_v24 = vmax.bf16 %v7435_v41, %v2637_v39 }
 0x2b8   :  { %v2916_v18 = vpop.f32.mrb[49].mxu1 }
 0x2b9   :  { %v2918_v63 = vpop.f32.mrb[50].mxu1  ;;  %3152 = vmatprep.mubr.bf16.mxu1 %v2687_v24 }
 0x2ba   :  { %v3163_v19 = vpack.c.bf16 %v2918_v63, %v2914_v27  ;;  %v2920_v62 = vpop.f32.mrb[51].mxu1  ;;  %3153 = vmatmul.mubr.bf16.gmra.mrb[144].mxu1 %v2686_v0 }
 0x2bb   :  { %v3164_v20 = vpack.c.bf16 %v2920_v62, %v2916_v18 }
 0x2bc   :  { %v3251_v42 = vadd.bf16 %v7084_v7, %v3163_v19 }
 0x2bd   :  { %v3252_v11 = vadd.bf16 %v7088_v50, %v3164_v20 }
 0x2be   :  { %v3301_v2 = vmax.bf16 %v7435_v41, %v3251_v42 }
 0x2bf   :  { %v2924_v46 = vpop.f32.mrb[52].mxu1  ;;  %v3302_v55 = vmax.bf16 %v7435_v41, %v3252_v11 }
 0x2c0   :  { %v2926_v43 = vpop.f32.mrb[53].mxu1 }
 0x2c1   :  { %v2928_v29 = vpop.f32.mrb[54].mxu1  ;;  %3575 = vmatprep.mubr.bf16.mxu0 %v3302_v55 }
 0x2c2   :  { %v3165_v28 = vpack.c.bf16 %v2928_v29, %v2924_v46  ;;  %v2930_v60 = vpop.f32.mrb[55].mxu1  ;;  %3576 = vmatmul.mubr.bf16.vlgmr.msra.gmra.mrb[52].mxu0 %v3301_v2 }
 0x2c3   :  { %v3166_v53 = vpack.c.bf16 %v2930_v60, %v2926_v43 }
 0x2c4   :  { %v3253_v38 = vadd.bf16 %v7084_v7, %v3165_v28 }
 0x2c5   :  { %v3254_v13 = vadd.bf16 %v7088_v50, %v3166_v53 }
 0x2c6   :  { %v3303_v49 = vmax.bf16 %v7435_v41, %v3253_v38 }
 0x2c7   :  { %v2934_v14 = vpop.f32.mrb[56].mxu1  ;;  %v3304_v3 = vmax.bf16 %v7435_v41, %v3254_v13 }
 0x2c8   :  { %v2936_v16 = vpop.f32.mrb[57].mxu1 }
 0x2c9   :  { %v2938_v30 = vpop.f32.mrb[58].mxu1  ;;  %3585 = vmatprep.mubr.bf16.mxu0 %v3304_v3 }
 0x2ca   :  { %v3167_v59 = vpack.c.bf16 %v2938_v30, %v2934_v14  ;;  %v2940_v45 = vpop.f32.mrb[59].mxu1  ;;  %3586 = vmatmul.mubr.bf16.gmra.mrb[56].mxu0 %v3303_v49 }
 0x2cb   :  { %v3168_v6 = vpack.c.bf16 %v2940_v45, %v2936_v16 }
 0x2cc   :  { %v3255_v37 = vadd.bf16 %v7084_v7, %v3167_v59 }
 0x2cd   :  { %v3256_v51 = vadd.bf16 %v7088_v50, %v3168_v6 }
 0x2ce   :  { %v3305_v25 = vmax.bf16 %v7435_v41, %v3255_v37 }
 0x2cf   :  { %v2944_v47 = vpop.f32.mrb[60].mxu1  ;;  %v3306_v12 = vmax.bf16 %v7435_v41, %v3256_v51 }
 0x2d0   :  { %v2946_v8 = vpop.f32.mrb[61].mxu1 }
 0x2d1   :  { %v2948_v21 = vpop.f32.mrb[62].mxu1  ;;  %3595 = vmatprep.mubr.bf16.mxu0 %v3306_v12 }
 0x2d2   :  { %v3169_v52 = vpack.c.bf16 %v2948_v21, %v2944_v47  ;;  %v2950_v22 = vpop.f32.mrb[63].mxu1  ;;  %3596 = vmatmul.mubr.bf16.gmra.mrb[60].mxu0 %v3305_v25 }
 0x2d3   :  { %v3170_v5 = vpack.c.bf16 %v2950_v22, %v2946_v8 }
 0x2d4   :  { %v3257_v26 = vadd.bf16 %v7084_v7, %v3169_v52 }
 0x2d5   :  { %v3258_v58 = vadd.bf16 %v7088_v50, %v3170_v5 }
 0x2d6   :  { %v3307_v57 = vmax.bf16 %v7435_v41, %v3257_v26 }
 0x2d7   :  { %v2954_v48 = vpop.f32.mrb[64].mxu1  ;;  %v3308_v56 = vmax.bf16 %v7435_v41, %v3258_v58 }
 0x2d8   :  { %v2956_v54 = vpop.f32.mrb[65].mxu1 }
 0x2d9   :  { %v2958_v33 = vpop.f32.mrb[66].mxu1  ;;  %3605 = vmatprep.mubr.bf16.mxu0 %v3308_v56 }
 0x2da   :  { %v3171_v61 = vpack.c.bf16 %v2958_v33, %v2954_v48  ;;  %v2960_v9 = vpop.f32.mrb[67].mxu1  ;;  %3606 = vmatmul.mubr.bf16.gmra.mrb[64].mxu0 %v3307_v57 }
 0x2db   :  { %v3172_v23 = vpack.c.bf16 %v2960_v9, %v2956_v54 }
 0x2dc   :  { %v3259_v4 = vadd.bf16 %v7084_v7, %v3171_v61 }
 0x2dd   :  { %v3260_v32 = vadd.bf16 %v7088_v50, %v3172_v23 }
 0x2de   :  { %v3309_v17 = vmax.bf16 %v7435_v41, %v3259_v4 }
 0x2df   :  { %v2964_v1 = vpop.f32.mrb[68].mxu1  ;;  %v3310_v40 = vmax.bf16 %v7435_v41, %v3260_v32 }
 0x2e0   :  { %v2966_v35 = vpop.f32.mrb[69].mxu1 }
 0x2e1   :  { %v2968_v15 = vpop.f32.mrb[70].mxu1  ;;  %3615 = vmatprep.mubr.bf16.mxu0 %v3310_v40 }
 0x2e2   :  { %v3173_v44 = vpack.c.bf16 %v2968_v15, %v2964_v1  ;;  %v2970_v34 = vpop.f32.mrb[71].mxu1  ;;  %3616 = vmatmul.mubr.bf16.gmra.mrb[68].mxu0 %v3309_v17 }
 0x2e3   :  { %v3174_v39 = vpack.c.bf16 %v2970_v34, %v2966_v35 }
 0x2e4   :  { %v3261_v36 = vadd.bf16 %v7084_v7, %v3173_v44 }
 0x2e5   :  { %v3262_v27 = vadd.bf16 %v7088_v50, %v3174_v39 }
 0x2e6   :  { %v3311_v63 = vmax.bf16 %v7435_v41, %v3261_v36 }
 0x2e7   :  { %v2974_v24 = vpop.f32.mrb[72].mxu1  ;;  %v3312_v18 = vmax.bf16 %v7435_v41, %v3262_v27 }
 0x2e8   :  { %v2976_v0 = vpop.f32.mrb[73].mxu1 }
 0x2e9   :  { %v2978_v19 = vpop.f32.mrb[74].mxu1  ;;  %3625 = vmatprep.mubr.bf16.mxu0 %v3312_v18 }
 0x2ea   :  { %v3175_v62 = vpack.c.bf16 %v2978_v19, %v2974_v24  ;;  %v2980_v20 = vpop.f32.mrb[75].mxu1  ;;  %3626 = vmatmul.mubr.bf16.gmra.mrb[72].mxu0 %v3311_v63 }
 0x2eb   :  { %v3176_v42 = vpack.c.bf16 %v2980_v20, %v2976_v0 }
 0x2ec   :  { %v3263_v11 = vadd.bf16 %v7084_v7, %v3175_v62 }
 0x2ed   :  { %v3264_v46 = vadd.bf16 %v7088_v50, %v3176_v42 }
 0x2ee   :  { %v3313_v29 = vmax.bf16 %v7435_v41, %v3263_v11 }
 0x2ef   :  { %v2984_v55 = vpop.f32.mrb[76].mxu1  ;;  %v3314_v2 = vmax.bf16 %v7435_v41, %v3264_v46 }
 0x2f0   :  { %v2986_v43 = vpop.f32.mrb[77].mxu1 }
 0x2f1   :  { %v2988_v28 = vpop.f32.mrb[78].mxu1  ;;  %3635 = vmatprep.mubr.bf16.mxu0 %v3314_v2 }
 0x2f2   :  { %v3177_v60 = vpack.c.bf16 %v2988_v28, %v2984_v55  ;;  %v2990_v53 = vpop.f32.mrb[79].mxu1  ;;  %3636 = vmatmul.mubr.bf16.gmra.mrb[76].mxu0 %v3313_v29 }
 0x2f3   :  { %v3178_v38 = vpack.c.bf16 %v2990_v53, %v2986_v43 }
 0x2f4   :  { %v3265_v13 = vadd.bf16 %v7084_v7, %v3177_v60 }
 0x2f5   :  { %v3266_v14 = vadd.bf16 %v7088_v50, %v3178_v38 }
 0x2f6   :  { %v3315_v30 = vmax.bf16 %v7435_v41, %v3265_v13 }
 0x2f7   :  { %v2994_v3 = vpop.f32.mrb[80].mxu1  ;;  %v3316_v16 = vmax.bf16 %v7435_v41, %v3266_v14 }
 0x2f8   :  { %v2996_v49 = vpop.f32.mrb[81].mxu1 }
 0x2f9   :  { %v2998_v59 = vpop.f32.mrb[82].mxu1  ;;  %3645 = vmatprep.mubr.bf16.mxu0 %v3316_v16 }
 0x2fa   :  { %v3179_v45 = vpack.c.bf16 %v2998_v59, %v2994_v3  ;;  %v3000_v6 = vpop.f32.mrb[83].mxu1  ;;  %3646 = vmatmul.mubr.bf16.gmra.mrb[80].mxu0 %v3315_v30 }
 0x2fb   :  { %v3180_v37 = vpack.c.bf16 %v3000_v6, %v2996_v49 }
 0x2fc   :  { %v3267_v51 = vadd.bf16 %v7084_v7, %v3179_v45 }
 0x2fd   :  { %v3268_v47 = vadd.bf16 %v7088_v50, %v3180_v37 }
 0x2fe   :  { %v3317_v21 = vmax.bf16 %v7435_v41, %v3267_v51 }
 0x2ff   :  { %v3004_v12 = vpop.f32.mrb[84].mxu1  ;;  %v3318_v8 = vmax.bf16 %v7435_v41, %v3268_v47 }
 0x300   :  { %v3006_v25 = vpop.f32.mrb[85].mxu1 }
 0x301   :  { %v3008_v52 = vpop.f32.mrb[86].mxu1  ;;  %3655 = vmatprep.mubr.bf16.mxu0 %v3318_v8 }
 0x302   :  { %v3181_v22 = vpack.c.bf16 %v3008_v52, %v3004_v12  ;;  %v3010_v5 = vpop.f32.mrb[87].mxu1  ;;  %3656 = vmatmul.mubr.bf16.gmra.mrb[84].mxu0 %v3317_v21 }
 0x303   :  { %v3182_v26 = vpack.c.bf16 %v3010_v5, %v3006_v25 }
 0x304   :  { %v3269_v58 = vadd.bf16 %v7084_v7, %v3181_v22 }
 0x305   :  { %v3270_v48 = vadd.bf16 %v7088_v50, %v3182_v26 }
 0x306   :  { %v3319_v33 = vmax.bf16 %v7435_v41, %v3269_v58 }
 0x307   :  { %v3014_v56 = vpop.f32.mrb[88].mxu1  ;;  %v3320_v54 = vmax.bf16 %v7435_v41, %v3270_v48 }
 0x308   :  { %v3016_v57 = vpop.f32.mrb[89].mxu1 }
 0x309   :  { %v3018_v61 = vpop.f32.mrb[90].mxu1  ;;  %3665 = vmatprep.mubr.bf16.mxu0 %v3320_v54 }
 0x30a   :  { %v3183_v9 = vpack.c.bf16 %v3018_v61, %v3014_v56  ;;  %v3020_v23 = vpop.f32.mrb[91].mxu1  ;;  %3666 = vmatmul.mubr.bf16.gmra.mrb[88].mxu0 %v3319_v33 }
 0x30b   :  { %v3184_v4 = vpack.c.bf16 %v3020_v23, %v3016_v57 }
 0x30c   :  { %v3271_v32 = vadd.bf16 %v7084_v7, %v3183_v9 }
 0x30d   :  { %v3272_v1 = vadd.bf16 %v7088_v50, %v3184_v4 }
 0x30e   :  { %v3321_v15 = vmax.bf16 %v7435_v41, %v3271_v32  ;;  %v4226_v32 = vld [vmem:[%s7414_s9 + $0x80] sm:$0xff] }
 0x30f   :  { %v3024_v40 = vpop.f32.mrb[92].mxu1  ;;  %v3322_v35 = vmax.bf16 %v7435_v41, %v3272_v1  ;;  %v4227_v1 = vld [vmem:[%s7414_s9 + $0x88] sm:$0xff] }
 0x310   :  { %v3026_v17 = vpop.f32.mrb[93].mxu1 }
 0x311   :  { %v3028_v44 = vpop.f32.mrb[94].mxu1  ;;  %3675 = vmatprep.mubr.bf16.mxu0 %v3322_v35 }
 0x312   :  { %v3185_v34 = vpack.c.bf16 %v3028_v44, %v3024_v40  ;;  %v3030_v39 = vpop.f32.mrb[95].mxu1  ;;  %3676 = vmatmul.mubr.bf16.gmra.mrb[92].mxu0 %v3321_v15  ;;  %v4210_v40 = vld [vmem:[%s7414_s9] sm:$0xff]  ;;  %v4211_v15 = vld [vmem:[%s7414_s9 + $0x8] sm:$0xff] }
 0x313   :  { %v3186_v36 = vpack.c.bf16 %v3030_v39, %v3026_v17  ;;  %v4592_v17 = vpack.c.bf16 %v4227_v1, %v4226_v32  ;;  %v4230_v32 = vld [vmem:[%s7414_s9 + $0xa0] sm:$0xff]  ;;  %v4231_v1 = vld [vmem:[%s7414_s9 + $0xa8] sm:$0xff] }
 0x314   :  { %v3273_v27 = vadd.bf16 %v7084_v7, %v3185_v34  ;;  %v4594_v34 = vpack.c.bf16 %v4211_v15, %v4210_v40  ;;  %v4214_v40 = vld [vmem:[%s7414_s9 + $0x20] sm:$0xff]  ;;  %v4215_v15 = vld [vmem:[%s7414_s9 + $0x28] sm:$0xff] }
 0x315   :  { %v3274_v24 = vadd.bf16 %v7088_v50, %v3186_v36  ;;  %4593 = vmatprep.subr.bf16.mxu1 %v4592_v17  ;;  %v4600_v17 = vpack.c.bf16 %v4231_v1, %v4230_v32 }
 0x316   :  { %v3323_v19 = vmax.bf16 %v7435_v41, %v3273_v27  ;;  %4595 = vmatpush3.bf16.msra.mxu1 %v4594_v34 }
 0x317   :  { %v3034_v18 = vpop.f32.mrb[96].mxu1  ;;  %v3324_v0 = vmax.bf16 %v7435_v41, %v3274_v24 }
 0x318   :  { %v3036_v63 = vpop.f32.mrb[97].mxu1 }
 0x319   :  { %v3038_v62 = vpop.f32.mrb[98].mxu1  ;;  %3685 = vmatprep.mubr.bf16.mxu0 %v3324_v0 }
 0x31a   :  { %v3187_v20 = vpack.c.bf16 %v3038_v62, %v3034_v18  ;;  %v3040_v42 = vpop.f32.mrb[99].mxu1  ;;  %3686 = vmatmul.mubr.bf16.gmra.mrb[96].mxu0 %v3323_v19 }
 0x31b   :  { %v3188_v11 = vpack.c.bf16 %v3040_v42, %v3036_v63 }
 0x31c   :  { %v3275_v46 = vadd.bf16 %v7084_v7, %v3187_v20 }
 0x31d   :  { %v3276_v55 = vadd.bf16 %v7088_v50, %v3188_v11 }
 0x31e   :  { %v3325_v28 = vmax.bf16 %v7435_v41, %v3275_v46 }
 0x31f   :  { %v3044_v2 = vpop.f32.mrb[100].mxu1  ;;  %v3326_v43 = vmax.bf16 %v7435_v41, %v3276_v55 }
 0x320   :  { %v3046_v29 = vpop.f32.mrb[101].mxu1 }
 0x321   :  { %v3048_v60 = vpop.f32.mrb[102].mxu1  ;;  %3695 = vmatprep.mubr.bf16.mxu0 %v3326_v43 }
 0x322   :  { %v3189_v53 = vpack.c.bf16 %v3048_v60, %v3044_v2  ;;  %v3050_v38 = vpop.f32.mrb[103].mxu1  ;;  %3696 = vmatmul.mubr.bf16.gmra.mrb[100].mxu0 %v3325_v28 }
 0x323   :  { %v3190_v13 = vpack.c.bf16 %v3050_v38, %v3046_v29 }
 0x324   :  { %v3277_v14 = vadd.bf16 %v7084_v7, %v3189_v53 }
 0x325   :  { %v3278_v3 = vadd.bf16 %v7088_v50, %v3190_v13 }
 0x326   :  { %v3327_v59 = vmax.bf16 %v7435_v41, %v3277_v14 }
 0x327   :  { %v3054_v16 = vpop.f32.mrb[104].mxu1  ;;  %v3328_v49 = vmax.bf16 %v7435_v41, %v3278_v3 }
 0x328   :  { %v3056_v30 = vpop.f32.mrb[105].mxu1 }
 0x329   :  { %v3058_v45 = vpop.f32.mrb[106].mxu1  ;;  %3705 = vmatprep.mubr.bf16.mxu0 %v3328_v49 }
 0x32a   :  { %v3191_v6 = vpack.c.bf16 %v3058_v45, %v3054_v16  ;;  %v3060_v37 = vpop.f32.mrb[107].mxu1  ;;  %3706 = vmatmul.mubr.bf16.gmra.mrb[104].mxu0 %v3327_v59  ;;  %v4229_v59 = vld [vmem:[%s7414_s9 + $0x98] sm:$0xff]  ;;  %v4212_v45 = vld [vmem:[%s7414_s9 + $0x10] sm:$0xff] }
 0x32b   :  { %v3192_v51 = vpack.c.bf16 %v3060_v37, %v3056_v30  ;;  %v4228_v30 = vld [vmem:[%s7414_s9 + $0x90] sm:$0xff] }
 0x32c   :  { %v3279_v47 = vadd.bf16 %v7084_v7, %v3191_v6 }
 0x32d   :  { %v3280_v12 = vadd.bf16 %v7088_v50, %v3192_v51  ;;  %v4596_v51 = vpack.c.bf16 %v4229_v59, %v4228_v30  ;;  %v4217_v30 = vld [vmem:[%s7414_s9 + $0x38] sm:$0xff] }
 0x32e   :  { %v3329_v52 = vmax.bf16 %v7435_v41, %v3279_v47  ;;  %v4213_v47 = vld [vmem:[%s7414_s9 + $0x18] sm:$0xff] }
 0x32f   :  { %v3064_v8 = vpop.f32.mrb[108].mxu1  ;;  %v3330_v25 = vmax.bf16 %v7435_v41, %v3280_v12  ;;  %4597 = vmatprep.subr.bf16.mxu1 %v4596_v51 }
 0x330   :  { %v3066_v21 = vpop.f32.mrb[109].mxu1 }
 0x331   :  { %v3068_v22 = vpop.f32.mrb[110].mxu1  ;;  %3715 = vmatprep.mubr.bf16.mxu0 %v3330_v25 }
 0x332   :  { %v3193_v5 = vpack.c.bf16 %v3068_v22, %v3064_v8  ;;  %v3070_v26 = vpop.f32.mrb[111].mxu1  ;;  %3716 = vmatmul.mubr.bf16.gmra.mrb[108].mxu0 %v3329_v52  ;;  %v4598_v8 = vpack.c.bf16 %v4213_v47, %v4212_v45  ;;  %v4428_v47 = vld.sshfl [vmem:[%s7415_s8] sm:$0x11 pattern:$0x75316420] }
 0x333   :  { %v3194_v58 = vpack.c.bf16 %v3070_v26, %v3066_v21 }
 0x334   :  { %v3281_v48 = vadd.bf16 %v7084_v7, %v3193_v5  ;;  %4599 = vmatpush3.bf16.msra.mxu1 %v4598_v8 }
 0x335   :  { %v3282_v56 = vadd.bf16 %v7088_v50, %v3194_v58  ;;  %4601 = vmatprep.subr.bf16.mxu1 %v4600_v17 }
 0x336   :  { %v3331_v61 = vmax.bf16 %v7435_v41, %v3281_v48 }
 0x337   :  { %v3074_v54 = vpop.f32.mrb[112].mxu1  ;;  %v3332_v57 = vmax.bf16 %v7435_v41, %v3282_v56 }
 0x338   :  { %v3076_v33 = vpop.f32.mrb[113].mxu1 }
 0x339   :  { %v3078_v9 = vpop.f32.mrb[114].mxu1  ;;  %3725 = vmatprep.mubr.bf16.mxu0 %v3332_v57 }
 0x33a   :  { %v3195_v23 = vpack.c.bf16 %v3078_v9, %v3074_v54  ;;  %v3080_v4 = vpop.f32.mrb[115].mxu1  ;;  %3726 = vmatmul.mubr.bf16.gmra.mrb[112].mxu0 %v3331_v61 }
 0x33b   :  { %v3196_v35 = vpack.c.bf16 %v3080_v4, %v3076_v33 }
 0x33c   :  { %v3283_v44 = vadd.bf16 %v7084_v7, %v3195_v23 }
 0x33d   :  { %v3284_v39 = vadd.bf16 %v7088_v50, %v3196_v35 }
 0x33e   :  { %v3333_v18 = vmax.bf16 %v7435_v41, %v3283_v44 }
 0x33f   :  { %v3084_v36 = vpop.f32.mrb[116].mxu1  ;;  %v3334_v27 = vmax.bf16 %v7435_v41, %v3284_v39  ;;  %v4602_v39 = vpack.c.bf16 %v4215_v15, %v4214_v40  ;;  %v4218_v40 = vld [vmem:[%s7414_s9 + $0x40] sm:$0xff]  ;;  %v4219_v15 = vld [vmem:[%s7414_s9 + $0x48] sm:$0xff] }
 0x340   :  { %v3086_v24 = vpop.f32.mrb[117].mxu1 }
 0x341   :  { %v3088_v0 = vpop.f32.mrb[118].mxu1  ;;  %3735 = vmatprep.mubr.bf16.mxu0 %v3334_v27  ;;  %4603 = vmatpush3.bf16.msra.mxu1 %v4602_v39 }
 0x342   :  { %v3197_v63 = vpack.c.bf16 %v3088_v0, %v3084_v36  ;;  %v3090_v19 = vpop.f32.mrb[119].mxu1  ;;  %3736 = vmatmul.mubr.bf16.gmra.mrb[116].mxu0 %v3333_v18 }
 0x343   :  { %v3198_v62 = vpack.c.bf16 %v3090_v19, %v3086_v24 }
 0x344   :  { %v3285_v20 = vadd.bf16 %v7084_v7, %v3197_v63 }
 0x345   :  { %v3286_v42 = vadd.bf16 %v7088_v50, %v3198_v62 }
 0x346   :  { %v3335_v2 = vmax.bf16 %v7435_v41, %v3285_v20 }
 0x347   :  { %v3094_v11 = vpop.f32.mrb[120].mxu1  ;;  %v3336_v46 = vmax.bf16 %v7435_v41, %v3286_v42 }
 0x348   :  { %v3096_v55 = vpop.f32.mrb[121].mxu1 }
 0x349   :  { %v3098_v43 = vpop.f32.mrb[122].mxu1  ;;  %3745 = vmatprep.mubr.bf16.mxu0 %v3336_v46 }
 0x34a   :  { %v3199_v29 = vpack.c.bf16 %v3098_v43, %v3094_v11  ;;  %v3100_v28 = vpop.f32.mrb[123].mxu1  ;;  %3746 = vmatmul.mubr.bf16.gmra.mrb[120].mxu0 %v3335_v2 }
 0x34b   :  { %v3200_v60 = vpack.c.bf16 %v3100_v28, %v3096_v55 }
 0x34c   :  { %v3287_v53 = vadd.bf16 %v7084_v7, %v3199_v29 }
 0x34d   :  { %v3288_v38 = vadd.bf16 %v7088_v50, %v3200_v60 }
 0x34e   :  { %v3337_v16 = vmax.bf16 %v7435_v41, %v3287_v53 }
 0x34f   :  { %v3104_v13 = vpop.f32.mrb[124].mxu1  ;;  %v3338_v14 = vmax.bf16 %v7435_v41, %v3288_v38 }
 0x350   :  { %v3106_v3 = vpop.f32.mrb[125].mxu1 }
 0x351   :  { %v3108_v49 = vpop.f32.mrb[126].mxu1  ;;  %3755 = vmatprep.mubr.bf16.mxu0 %v3338_v14  ;;  %v4233_v14 = vld [vmem:[%s7414_s9 + $0xb8] sm:$0xff] }
 0x352   :  { %v3201_v6 = vpack.c.bf16 %v3108_v49, %v3104_v13  ;;  %v3110_v37 = vpop.f32.mrb[127].mxu1  ;;  %3756 = vmatmul.mubr.bf16.gmra.mrb[124].mxu0 %v3337_v16  ;;  %v4232_v13 = vld [vmem:[%s7414_s9 + $0xb0] sm:$0xff] }
 0x353   :  { %v3202_v12 = vpack.c.bf16 %v3110_v37, %v3106_v3  ;;  %v4216_v3 = vld [vmem:[%s7414_s9 + $0x30] sm:$0xff]  ;;  %v4604_v49 = vpack.c.bf16 %v4233_v14, %v4232_v13 }
 0x354   :  { %v3289_v25 = vadd.bf16 %v7084_v7, %v3201_v6  ;;  %v4606_v45 = vpack.c.bf16 %v4217_v30, %v4216_v3 }
 0x355   :  { %v3290_v21 = vadd.bf16 %v7088_v50, %v3202_v12  ;;  %4605 = vmatprep.subr.bf16.mxu1 %v4604_v49 }
 0x356   :  { %v3339_v5 = vmax.bf16 %v7435_v41, %v3289_v25  ;;  %4607 = vmatpush3.bf16.msra.mxu1 %v4606_v45 }
 0x357   :  { %v3340_v52 = vmax.bf16 %v7435_v41, %v3290_v21  ;;  %v3114_v22 = vpop.f32.mrb[128].mxu1  ;;  %v3885_v21 = vcombine.high %v4428_v47, %v4428_v47 }
 0x358   :  { %v3116_v26 = vpop.f32.mrb[129].mxu1 }
 0x359   :  { %3765 = vmatprep.mubr.bf16.mxu0 %v3340_v52  ;;  %v3118_v58 = vpop.f32.mrb[130].mxu1 }
 0x35a   :  { %3766 = vmatmul.mubr.bf16.gmra.mrb[128].mxu0 %v3339_v5  ;;  %v3203_v48 = vpack.c.bf16 %v3118_v58, %v3114_v22  ;;  %v3120_v56 = vpop.f32.mrb[131].mxu1  ;;  %v3892_v58 = vrot.slane %v4428_v47, %v6656_v10 }
 0x35b   :  { %v3204_v54 = vpack.c.bf16 %v3120_v56, %v3116_v26  ;;  %v3899_v56 = vrot.slane %v3885_v21, %v6656_v10  ;;  %v4235_v10 = vld [vmem:[%s7414_s9 + $0xc8] sm:$0xff] }
 0x35c   :  { %v3291_v57 = vadd.bf16 %v7084_v7, %v3203_v48 }
 0x35d   :  { %v3292_v33 = vadd.bf16 %v7088_v50, %v3204_v54 }
 0x35e   :  { %v3341_v9 = vmax.bf16 %v7435_v41, %v3291_v57 }
 0x35f   :  { %v3342_v61 = vmax.bf16 %v7435_v41, %v3292_v33 }
 0x361   :  { %3775 = vmatprep.mubr.bf16.mxu0 %v3342_v61  ;;  %v3901_v61 = vpack.i.b16 %v3892_v58, %v3892_v58 }
 0x362   :  { %3776 = vmatmul.mubr.bf16.gmra.mrb[132].mxu0 %v3341_v9 }
 0x364   :  { %v3124_v23 = vpop.f32.mrb[132].mxu1 }
 0x365   :  { %v3126_v4 = vpop.f32.mrb[133].mxu1 }
 0x366   :  { %v3128_v35 = vpop.f32.mrb[134].mxu1 }
 0x367   :  { %v3205_v44 = vpack.c.bf16 %v3128_v35, %v3124_v23  ;;  %v3130_v34 = vpop.f32.mrb[135].mxu1  ;;  %v7253_v35 = vrot.slane %v3901_v61, %v5739_v31 }
 0x368   :  { %v3206_v36 = vpack.c.bf16 %v3130_v34, %v3126_v4  ;;  %v3908_v4 = vpack.i.b16 %v3899_v56, %v3899_v56  ;;  %v4610_v34 = vpack.c.bf16 %v4219_v15, %v4218_v40 }
 0x369   :  { %v3293_v27 = vadd.bf16 %v7084_v7, %v3205_v44 }
 0x36a   :  { %v3294_v24 = vadd.bf16 %v7088_v50, %v3206_v36  ;;  %v7259_v44 = vrot.slane %v3908_v4, %v5739_v31  ;;  %v4237_v4 = vld [vmem:[%s7414_s9 + $0xd8] sm:$0xff] }
 0x36b   :  { %v3343_v0 = vmax.bf16 %v7435_v41, %v3293_v27 }
 0x36c   :  { %v3344_v18 = vmax.bf16 %v7435_v41, %v3294_v24 }
 0x36e   :  { %3785 = vmatprep.mubr.bf16.mxu0 %v3344_v18 }
 0x36f   :  { %3786 = vmatmul.mubr.bf16.gmra.mrb[136].mxu0 %v3343_v0 }
 0x370   :  { %v3134_v63 = vpop.f32.mrb[136].mxu1 }
 0x371   :  { %v3136_v19 = vpop.f32.mrb[137].mxu1 }
 0x372   :  { %v3138_v62 = vpop.f32.mrb[138].mxu1 }
 0x373   :  { %v3207_v20 = vpack.c.bf16 %v3138_v62, %v3134_v63  ;;  %v3140_v42 = vpop.f32.mrb[139].mxu1 }
 0x374   :  { %v3208_v11 = vpack.c.bf16 %v3140_v42, %v3136_v19 }
 0x375   :  { %v3295_v46 = vadd.bf16 %v7084_v7, %v3207_v20 }
 0x376   :  { %v3296_v55 = vadd.bf16 %v7088_v50, %v3208_v11 }
 0x377   :  { %v3345_v43 = vmax.bf16 %v7435_v41, %v3295_v46 }
 0x378   :  { %v3346_v2 = vmax.bf16 %v7435_v41, %v3296_v55 }
 0x37a   :  { %3795 = vmatprep.mubr.bf16.mxu0 %v3346_v2 }
 0x37b   :  { %3796 = vmatmul.mubr.bf16.gmra.mrb[140].mxu0 %v3345_v43 }
 0x37d   :  { %v3144_v29 = vpop.f32.mrb[140].mxu1 }
 0x37e   :  { %v3146_v28 = vpop.f32.mrb[141].mxu1 }
 0x37f   :  { %v3148_v60 = vpop.f32.mrb[142].mxu1 }
 0x380   :  { %v3209_v53 = vpack.c.bf16 %v3148_v60, %v3144_v29  ;;  %v3150_v38 = vpop.f32.mrb[143].mxu1 }
 0x381   :  { %v3210_v16 = vpack.c.bf16 %v3150_v38, %v3146_v28 }
 0x382   :  { %v3297_v59 = vadd.bf16 %v7084_v7, %v3209_v53 }
 0x383   :  { %v3298_v6 = vadd.bf16 %v7088_v50, %v3210_v16 }
 0x384   :  { %v3347_v51 = vmax.bf16 %v7435_v41, %v3297_v59 }
 0x385   :  { %v3348_v37 = vmax.bf16 %v7435_v41, %v3298_v6 }
 0x387   :  { %3805 = vmatprep.mubr.bf16.mxu0 %v3348_v37 }
 0x388   :  { %3806 = vmatmul.mubr.bf16.gmra.mrb[144].mxu0 %v3347_v51 }
 0x38d   :  { %v3154_v12 = vpop.f32.mrb[144].mxu1 }
 0x38e   :  { %v3156_v8 = vpop.f32.mrb[145].mxu1 }
 0x38f   :  { %v3158_v25 = vpop.f32.mrb[146].mxu1 }
 0x390   :  { %v3211_v52 = vpack.c.bf16 %v3158_v25, %v3154_v12  ;;  %v3160_v22 = vpop.f32.mrb[147].mxu1 }
 0x391   :  { %v3212_v5 = vpack.c.bf16 %v3160_v22, %v3156_v8 }
 0x392   :  { %v3299_v26 = vadd.bf16 %v7084_v7, %v3211_v52 }
 0x393   :  { %v3300_v48 = vadd.bf16 %v7088_v50, %v3212_v5  ;;  %v4234_v50 = vld [vmem:[%s7414_s9 + $0xc0] sm:$0xff] }
 0x394   :  { %v3349_v9 = vmax.bf16 %v7435_v41, %v3299_v26  ;;  %v4608_v17 = vpack.c.bf16 %v4235_v10, %v4234_v50 }
 0x395   :  { %v3577_v54 = vpop.f32.mrb[52].mxu0  ;;  %v3350_v57 = vmax.bf16 %v7435_v41, %v3300_v48 }
 0x396   :  { %v3579_v33 = vpop.f32.mrb[53].mxu0  ;;  %4609 = vmatprep.subr.bf16.mxu1 %v4608_v17 }
 0x397   :  { %v3581_v23 = vpop.f32.mrb[54].mxu0  ;;  %3815 = vmatprep.mubr.bf16.mxu0 %v3350_v57  ;;  %4611 = vmatpush3.bf16.msra.mxu1 %v4610_v34 }
 0x398   :  { %v3826_v32 = vpack.c.bf16 %v3581_v23, %v3577_v54  ;;  %v3583_v1 = vpop.f32.mrb[55].mxu0  ;;  %3816 = vmatmul.mubr.bf16.gmra.mrb[148].mxu0 %v3349_v9  ;;  %v4236_v23 = vld [vmem:[%s7414_s9 + $0xd0] sm:$0xff] }
 0x399   :  { %v3827_v7 = vpack.c.bf16 %v3583_v1, %v3579_v33  ;;  %v4612_v1 = vpack.c.bf16 %v4237_v4, %v4236_v23 }
 0x39a   :  { %v3914_v36 = vadd.bf16 %v7253_v35, %v3826_v32 }
 0x39b   :  { %v3915_v24 = vadd.bf16 %v7259_v44, %v3827_v7  ;;  %4613 = vmatprep.subr.bf16.mxu1 %v4612_v1 }
 0x39c   :  { %v3964_v62 = vmax.bf16 %v7435_v41, %v3914_v36 }
 0x39d   :  { %v3587_v39 = vpop.f32.mrb[56].mxu0  ;;  %v3965_v31 = vmax.bf16 %v7435_v41, %v3915_v24 }
 0x39e   :  { %v3589_v27 = vpop.f32.mrb[57].mxu0  ;;  %v4014_v2 = vunpack.c.l.bf16 %v3964_v62  ;;  %v4016_v43 = vunpack.c.h.bf16 %v3964_v62  ;;  %v4221_v62 = vld [vmem:[%s7414_s9 + $0x58] sm:$0xff] }
 0x39f   :  { %v3591_v18 = vpop.f32.mrb[58].mxu0  ;;  %v4015_v53 = vunpack.c.l.bf16 %v3965_v31  ;;  %v4017_v38 = vunpack.c.h.bf16 %v3965_v31 }
 0x3a0   :  { %v3828_v0 = vpack.c.bf16 %v3591_v18, %v3587_v39  ;;  %v3593_v63 = vpop.f32.mrb[59].mxu0 }
 0x3a1   :  { %v3829_v19 = vpack.c.bf16 %v3593_v63, %v3589_v27 }
 0x3a2   :  { %v3916_v20 = vadd.bf16 %v7253_v35, %v3828_v0 }
 0x3a3   :  { %v3917_v42 = vadd.bf16 %v7259_v44, %v3829_v19  ;;  %v4220_v19 = vld [vmem:[%s7414_s9 + $0x50] sm:$0xff] }
 0x3a4   :  { %v3966_v11 = vmax.bf16 %v7435_v41, %v3916_v20 }
 0x3a5   :  { %v3967_v46 = vmax.bf16 %v7435_v41, %v3917_v42  ;;  %v3597_v55 = vpop.f32.mrb[60].mxu0 }
 0x3a6   :  { %v4018_v29 = vunpack.c.l.bf16 %v3966_v11  ;;  %v4020_v28 = vunpack.c.h.bf16 %v3966_v11  ;;  %v3599_v60 = vpop.f32.mrb[61].mxu0  ;;  %v4614_v11 = vpack.c.bf16 %v4221_v62, %v4220_v19  ;;  %v4238_v19 = vld [vmem:[%s7414_s9 + $0xe0] sm:$0xff]  ;;  %v4239_v62 = vld [vmem:[%s7414_s9 + $0xe8] sm:$0xff] }
 0x3a7   :  { %v4019_v13 = vunpack.c.l.bf16 %v3967_v46  ;;  %v4021_v14 = vunpack.c.h.bf16 %v3967_v46  ;;  %v3601_v3 = vpop.f32.mrb[62].mxu0 }
 0x3a8   :  { %v4114_v16 = vadd.f32 %v4018_v29, %v4014_v2  ;;  %v4162_v49 = vadd.f32 %v4020_v28, %v4016_v43  ;;  %v3830_v30 = vpack.c.bf16 %v3601_v3, %v3597_v55  ;;  %v3603_v59 = vpop.f32.mrb[63].mxu0  ;;  %4615 = vmatpush3.bf16.msra.mxu1 %v4614_v11  ;;  %v4223_v11 = vld [vmem:[%s7414_s9 + $0x68] sm:$0xff] }
 0x3a9   :  { %v4138_v45 = vadd.f32 %v4019_v13, %v4015_v53  ;;  %v4186_v6 = vadd.f32 %v4021_v14, %v4017_v38  ;;  %v3831_v37 = vpack.c.bf16 %v3603_v59, %v3599_v60 }
 0x3aa   :  { %v3918_v51 = vadd.bf16 %v7253_v35, %v3830_v30 }
 0x3ab   :  { %v3919_v47 = vadd.bf16 %v7259_v44, %v3831_v37 }
 0x3ac   :  { %v3968_v12 = vmax.bf16 %v7435_v41, %v3918_v51 }
 0x3ad   :  { %v3969_v8 = vmax.bf16 %v7435_v41, %v3919_v47  ;;  %v3607_v25 = vpop.f32.mrb[64].mxu0 }
 0x3ae   :  { %v4022_v21 = vunpack.c.l.bf16 %v3968_v12  ;;  %v4024_v52 = vunpack.c.h.bf16 %v3968_v12  ;;  %v3609_v22 = vpop.f32.mrb[65].mxu0 }
 0x3af   :  { %v4023_v5 = vunpack.c.l.bf16 %v3969_v8  ;;  %v4025_v26 = vunpack.c.h.bf16 %v3969_v8  ;;  %v3611_v58 = vpop.f32.mrb[66].mxu0 }
 0x3b0   :  { %v4115_v48 = vadd.f32 %v4114_v16, %v4022_v21  ;;  %v4163_v56 = vadd.f32 %v4162_v49, %v4024_v52  ;;  %v3832_v54 = vpack.c.bf16 %v3611_v58, %v3607_v25  ;;  %v3613_v57 = vpop.f32.mrb[67].mxu0 }
 0x3b1   :  { %v4139_v33 = vadd.f32 %v4138_v45, %v4023_v5  ;;  %v4187_v61 = vadd.f32 %v4186_v6, %v4025_v26  ;;  %v3833_v9 = vpack.c.bf16 %v3613_v57, %v3609_v22 }
 0x3b2   :  { %v3920_v32 = vadd.bf16 %v7253_v35, %v3832_v54 }
 0x3b3   :  { %v3921_v7 = vadd.bf16 %v7259_v44, %v3833_v9 }
 0x3b4   :  { %v3970_v50 = vmax.bf16 %v7435_v41, %v3920_v32 }
 0x3b5   :  { %v3971_v10 = vmax.bf16 %v7435_v41, %v3921_v7  ;;  %v3617_v40 = vpop.f32.mrb[68].mxu0 }
 0x3b6   :  { %v4026_v17 = vunpack.c.l.bf16 %v3970_v50  ;;  %v4028_v15 = vunpack.c.h.bf16 %v3970_v50  ;;  %v3619_v34 = vpop.f32.mrb[69].mxu0 }
 0x3b7   :  { %v4027_v39 = vunpack.c.l.bf16 %v3971_v10  ;;  %v4029_v36 = vunpack.c.h.bf16 %v3971_v10  ;;  %v3621_v27 = vpop.f32.mrb[70].mxu0 }
 0x3b8   :  { %v4116_v24 = vadd.f32 %v4115_v48, %v4026_v17  ;;  %v4164_v18 = vadd.f32 %v4163_v56, %v4028_v15  ;;  %v3834_v0 = vpack.c.bf16 %v3621_v27, %v3617_v40  ;;  %v3623_v63 = vpop.f32.mrb[71].mxu0 }
 0x3b9   :  { %v4140_v20 = vadd.f32 %v4139_v33, %v4027_v39  ;;  %v4188_v31 = vadd.f32 %v4187_v61, %v4029_v36  ;;  %v3835_v42 = vpack.c.bf16 %v3623_v63, %v3619_v34 }
 0x3ba   :  { %v3922_v46 = vadd.bf16 %v7253_v35, %v3834_v0 }
 0x3bb   :  { %v3923_v55 = vadd.bf16 %v7259_v44, %v3835_v42  ;;  %v4616_v42 = vpack.c.bf16 %v4239_v62, %v4238_v19 }
 0x3bc   :  { %v3972_v2 = vmax.bf16 %v7435_v41, %v3922_v46 }
 0x3bd   :  { %v3973_v43 = vmax.bf16 %v7435_v41, %v3923_v55  ;;  %v3627_v29 = vpop.f32.mrb[72].mxu0  ;;  %4617 = vmatprep.subr.bf16.mxu1 %v4616_v42 }
 0x3be   :  { %v4030_v28 = vunpack.c.l.bf16 %v3972_v2  ;;  %v4032_v60 = vunpack.c.h.bf16 %v3972_v2  ;;  %v3629_v53 = vpop.f32.mrb[73].mxu0 }
 0x3bf   :  { %v4031_v38 = vunpack.c.l.bf16 %v3973_v43  ;;  %v4033_v13 = vunpack.c.h.bf16 %v3973_v43  ;;  %v3631_v14 = vpop.f32.mrb[74].mxu0 }
 0x3c0   :  { %v4117_v3 = vadd.f32 %v4116_v24, %v4030_v28  ;;  %v4165_v16 = vadd.f32 %v4164_v18, %v4032_v60  ;;  %v3836_v49 = vpack.c.bf16 %v3631_v14, %v3627_v29  ;;  %v3633_v30 = vpop.f32.mrb[75].mxu0 }
 0x3c1   :  { %v4141_v59 = vadd.f32 %v4140_v20, %v4031_v38  ;;  %v4189_v45 = vadd.f32 %v4188_v31, %v4033_v13  ;;  %v3837_v6 = vpack.c.bf16 %v3633_v30, %v3629_v53  ;;  %v4222_v20 = vld [vmem:[%s7414_s9 + $0x60] sm:$0xff] }
 0x3c2   :  { %v3924_v37 = vadd.bf16 %v7253_v35, %v3836_v49  ;;  %v4618_v55 = vpack.c.bf16 %v4223_v11, %v4222_v20 }
 0x3c3   :  { %v3925_v51 = vadd.bf16 %v7259_v44, %v3837_v6 }
 0x3c4   :  { %v3974_v47 = vmax.bf16 %v7435_v41, %v3924_v37  ;;  %4619 = vmatpush3.bf16.msra.mxu1 %v4618_v55 }
 0x3c5   :  { %v3975_v12 = vmax.bf16 %v7435_v41, %v3925_v51  ;;  %v3637_v8 = vpop.f32.mrb[76].mxu0 }
 0x3c6   :  { %v4034_v25 = vunpack.c.l.bf16 %v3974_v47  ;;  %v4036_v21 = vunpack.c.h.bf16 %v3974_v47  ;;  %v3639_v52 = vpop.f32.mrb[77].mxu0 }
 0x3c7   :  { %v4035_v22 = vunpack.c.l.bf16 %v3975_v12  ;;  %v4037_v5 = vunpack.c.h.bf16 %v3975_v12  ;;  %v3641_v26 = vpop.f32.mrb[78].mxu0 }
 0x3c8   :  { %v4118_v58 = vadd.f32 %v4117_v3, %v4034_v25  ;;  %v4166_v48 = vadd.f32 %v4165_v16, %v4036_v21  ;;  %v3838_v56 = vpack.c.bf16 %v3641_v26, %v3637_v8  ;;  %v3643_v54 = vpop.f32.mrb[79].mxu0 }
 0x3c9   :  { %v4142_v57 = vadd.f32 %v4141_v59, %v4035_v22  ;;  %v4190_v33 = vadd.f32 %v4189_v45, %v4037_v5  ;;  %v3839_v61 = vpack.c.bf16 %v3643_v54, %v3639_v52 }
 0x3ca   :  { %v3926_v9 = vadd.bf16 %v7253_v35, %v3838_v56 }
 0x3cb   :  { %v3927_v23 = vadd.bf16 %v7259_v44, %v3839_v61 }
 0x3cc   :  { %v3976_v4 = vmax.bf16 %v7435_v41, %v3926_v9 }
 0x3cd   :  { %v3977_v32 = vmax.bf16 %v7435_v41, %v3927_v23  ;;  %v3647_v1 = vpop.f32.mrb[80].mxu0 }
 0x3ce   :  { %v4038_v7 = vunpack.c.l.bf16 %v3976_v4  ;;  %v4040_v50 = vunpack.c.h.bf16 %v3976_v4  ;;  %v3649_v10 = vpop.f32.mrb[81].mxu0 }
 0x3cf   :  { %v4039_v40 = vunpack.c.l.bf16 %v3977_v32  ;;  %v4041_v17 = vunpack.c.h.bf16 %v3977_v32  ;;  %v3651_v15 = vpop.f32.mrb[82].mxu0 }
 0x3d0   :  { %v4119_v34 = vadd.f32 %v4118_v58, %v4038_v7  ;;  %v4167_v39 = vadd.f32 %v4166_v48, %v4040_v50  ;;  %v3840_v36 = vpack.c.bf16 %v3651_v15, %v3647_v1  ;;  %v3653_v27 = vpop.f32.mrb[83].mxu0  ;;  %v4240_v15 = vld [vmem:[%s7414_s9 + $0xf0] sm:$0xff] }
 0x3d1   :  { %v4143_v24 = vadd.f32 %v4142_v57, %v4039_v40  ;;  %v4191_v18 = vadd.f32 %v4190_v33, %v4041_v17  ;;  %v3841_v0 = vpack.c.bf16 %v3653_v27, %v3649_v10 }
 0x3d2   :  { %v3928_v63 = vadd.bf16 %v7253_v35, %v3840_v36 }
 0x3d3   :  { %v3929_v31 = vadd.bf16 %v7259_v44, %v3841_v0 }
 0x3d4   :  { %v3978_v46 = vmax.bf16 %v7435_v41, %v3928_v63  ;;  %v4225_v63 = vld [vmem:[%s7414_s9 + $0x78] sm:$0xff] }
 0x3d5   :  { %v3979_v2 = vmax.bf16 %v7435_v41, %v3929_v31  ;;  %v3657_v43 = vpop.f32.mrb[84].mxu0 }
 0x3d6   :  { %v4042_v29 = vunpack.c.l.bf16 %v3978_v46  ;;  %v4044_v28 = vunpack.c.h.bf16 %v3978_v46  ;;  %v3659_v60 = vpop.f32.mrb[85].mxu0 }
 0x3d7   :  { %v4043_v53 = vunpack.c.l.bf16 %v3979_v2  ;;  %v4045_v38 = vunpack.c.h.bf16 %v3979_v2  ;;  %v3661_v13 = vpop.f32.mrb[86].mxu0 }
 0x3d8   :  { %v4120_v14 = vadd.f32 %v4119_v34, %v4042_v29  ;;  %v4168_v3 = vadd.f32 %v4167_v39, %v4044_v28  ;;  %v3842_v16 = vpack.c.bf16 %v3661_v13, %v3657_v43  ;;  %v3663_v49 = vpop.f32.mrb[87].mxu0  ;;  %v4241_v34 = vld [vmem:[%s7414_s9 + $0xf8] sm:$0xff]  ;;  %v4224_v39 = vld [vmem:[%s7414_s9 + $0x70] sm:$0xff] }
 0x3d9   :  { %v4144_v30 = vadd.f32 %v4143_v24, %v4043_v53  ;;  %v4192_v59 = vadd.f32 %v4191_v18, %v4045_v38  ;;  %v3843_v45 = vpack.c.bf16 %v3663_v49, %v3659_v60  ;;  %v4620_v0 = vpack.c.bf16 %v4241_v34, %v4240_v15 }
 0x3da   :  { %v3930_v6 = vadd.bf16 %v7253_v35, %v3842_v16  ;;  %v4622_v31 = vpack.c.bf16 %v4225_v63, %v4224_v39 }
 0x3db   :  { %v3931_v37 = vadd.bf16 %v7259_v44, %v3843_v45  ;;  %4621 = vmatprep.subr.bf16.mxu1 %v4620_v0 }
 0x3dc   :  { %v3980_v51 = vmax.bf16 %v7435_v41, %v3930_v6  ;;  %4623 = vmatpush3.bf16.msra.mxu1 %v4622_v31 }
 0x3dd   :  { %v3981_v47 = vmax.bf16 %v7435_v41, %v3931_v37  ;;  %v3667_v12 = vpop.f32.mrb[88].mxu0 }
 0x3de   :  { %v4046_v8 = vunpack.c.l.bf16 %v3980_v51  ;;  %v4048_v25 = vunpack.c.h.bf16 %v3980_v51  ;;  %v3669_v21 = vpop.f32.mrb[89].mxu0 }
 0x3df   :  { %v4047_v52 = vunpack.c.l.bf16 %v3981_v47  ;;  %v4049_v22 = vunpack.c.h.bf16 %v3981_v47  ;;  %v3671_v5 = vpop.f32.mrb[90].mxu0 }
 0x3e0   :  { %v4121_v26 = vadd.f32 %v4120_v14, %v4046_v8  ;;  %v4169_v58 = vadd.f32 %v4168_v3, %v4048_v25  ;;  %v3844_v48 = vpack.c.bf16 %v3671_v5, %v3667_v12  ;;  %v3673_v56 = vpop.f32.mrb[91].mxu0 }
 0x3e1   :  { %v4145_v54 = vadd.f32 %v4144_v30, %v4047_v52  ;;  %v4193_v57 = vadd.f32 %v4192_v59, %v4049_v22  ;;  %v3845_v33 = vpack.c.bf16 %v3673_v56, %v3669_v21 }
 0x3e2   :  { %v3932_v61 = vadd.bf16 %v7253_v35, %v3844_v48 }
 0x3e3   :  { %v3933_v9 = vadd.bf16 %v7259_v44, %v3845_v33 }
 0x3e4   :  { %v3982_v23 = vmax.bf16 %v7435_v41, %v3932_v61 }
 0x3e5   :  { %v3983_v4 = vmax.bf16 %v7435_v41, %v3933_v9  ;;  %v3677_v32 = vpop.f32.mrb[92].mxu0 }
 0x3e6   :  { %v4050_v1 = vunpack.c.l.bf16 %v3982_v23  ;;  %v4052_v7 = vunpack.c.h.bf16 %v3982_v23  ;;  %v3679_v50 = vpop.f32.mrb[93].mxu0 }
 0x3e7   :  { %v4051_v10 = vunpack.c.l.bf16 %v3983_v4  ;;  %v4053_v40 = vunpack.c.h.bf16 %v3983_v4  ;;  %v3681_v17 = vpop.f32.mrb[94].mxu0 }
 0x3e8   :  { %v4122_v36 = vadd.f32 %v4121_v26, %v4050_v1  ;;  %v4170_v27 = vadd.f32 %v4169_v58, %v4052_v7  ;;  %v3846_v24 = vpack.c.bf16 %v3681_v17, %v3677_v32  ;;  %v3683_v18 = vpop.f32.mrb[95].mxu0 }
 0x3e9   :  { %v4146_v19 = vadd.f32 %v4145_v54, %v4051_v10  ;;  %v4194_v62 = vadd.f32 %v4193_v57, %v4053_v40  ;;  %v3847_v20 = vpack.c.bf16 %v3683_v18, %v3679_v50 }
 0x3ea   :  { %v3934_v42 = vadd.bf16 %v7253_v35, %v3846_v24 }
 0x3eb   :  { %v3935_v11 = vadd.bf16 %v7259_v44, %v3847_v20 }
 0x3ec   :  { %v3984_v46 = vmax.bf16 %v7435_v41, %v3934_v42 }
 0x3ed   :  { %v3985_v55 = vmax.bf16 %v7435_v41, %v3935_v11  ;;  %v3687_v2 = vpop.f32.mrb[96].mxu0 }
 0x3ee   :  { %v4054_v43 = vunpack.c.l.bf16 %v3984_v46  ;;  %v4056_v29 = vunpack.c.h.bf16 %v3984_v46  ;;  %v3689_v28 = vpop.f32.mrb[97].mxu0 }
 0x3ef   :  { %v4055_v60 = vunpack.c.l.bf16 %v3985_v55  ;;  %v4057_v53 = vunpack.c.h.bf16 %v3985_v55  ;;  %v3691_v38 = vpop.f32.mrb[98].mxu0 }
 0x3f0   :  { %v4123_v13 = vadd.f32 %v4122_v36, %v4054_v43  ;;  %v4171_v14 = vadd.f32 %v4170_v27, %v4056_v29  ;;  %v3848_v3 = vpack.c.bf16 %v3691_v38, %v3687_v2  ;;  %v3693_v16 = vpop.f32.mrb[99].mxu0 }
 0x3f1   :  { %v4147_v49 = vadd.f32 %v4146_v19, %v4055_v60  ;;  %v4195_v30 = vadd.f32 %v4194_v62, %v4057_v53  ;;  %v3849_v59 = vpack.c.bf16 %v3693_v16, %v3689_v28 }
 0x3f2   :  { %v3936_v45 = vadd.bf16 %v7253_v35, %v3848_v3 }
 0x3f3   :  { %v3937_v6 = vadd.bf16 %v7259_v44, %v3849_v59 }
 0x3f4   :  { %v3986_v37 = vmax.bf16 %v7435_v41, %v3936_v45 }
 0x3f5   :  { %v3987_v51 = vmax.bf16 %v7435_v41, %v3937_v6  ;;  %v3697_v47 = vpop.f32.mrb[100].mxu0 }
 0x3f6   :  { %v4058_v12 = vunpack.c.l.bf16 %v3986_v37  ;;  %v4060_v8 = vunpack.c.h.bf16 %v3986_v37  ;;  %v3699_v25 = vpop.f32.mrb[101].mxu0 }
 0x3f7   :  { %v4059_v21 = vunpack.c.l.bf16 %v3987_v51  ;;  %v4061_v52 = vunpack.c.h.bf16 %v3987_v51  ;;  %v3701_v22 = vpop.f32.mrb[102].mxu0 }
 0x3f8   :  { %v4124_v5 = vadd.f32 %v4123_v13, %v4058_v12  ;;  %v4172_v26 = vadd.f32 %v4171_v14, %v4060_v8  ;;  %v3850_v58 = vpack.c.bf16 %v3701_v22, %v3697_v47  ;;  %v3703_v48 = vpop.f32.mrb[103].mxu0 }
 0x3f9   :  { %v4148_v56 = vadd.f32 %v4147_v49, %v4059_v21  ;;  %v4196_v54 = vadd.f32 %v4195_v30, %v4061_v52  ;;  %v3851_v57 = vpack.c.bf16 %v3703_v48, %v3699_v25 }
 0x3fa   :  { %v3938_v33 = vadd.bf16 %v7253_v35, %v3850_v58 }
 0x3fb   :  { %v3939_v61 = vadd.bf16 %v7259_v44, %v3851_v57 }
 0x3fc   :  { %v3988_v9 = vmax.bf16 %v7435_v41, %v3938_v33 }
 0x3fd   :  { %v3989_v23 = vmax.bf16 %v7435_v41, %v3939_v61  ;;  %v3707_v4 = vpop.f32.mrb[104].mxu0 }
 0x3fe   :  { %v4062_v32 = vunpack.c.l.bf16 %v3988_v9  ;;  %v4064_v1 = vunpack.c.h.bf16 %v3988_v9  ;;  %v3709_v7 = vpop.f32.mrb[105].mxu0 }
 0x3ff   :  { %v4063_v50 = vunpack.c.l.bf16 %v3989_v23  ;;  %v4065_v10 = vunpack.c.h.bf16 %v3989_v23  ;;  %v3711_v40 = vpop.f32.mrb[106].mxu0 }
 0x400   :  { %v4125_v17 = vadd.f32 %v4124_v5, %v4062_v32  ;;  %v4173_v15 = vadd.f32 %v4172_v26, %v4064_v1  ;;  %v3852_v34 = vpack.c.bf16 %v3711_v40, %v3707_v4  ;;  %v3713_v39 = vpop.f32.mrb[107].mxu0 }
 0x401   :  { %v4149_v36 = vadd.f32 %v4148_v56, %v4063_v50  ;;  %v4197_v27 = vadd.f32 %v4196_v54, %v4065_v10  ;;  %v3853_v24 = vpack.c.bf16 %v3713_v39, %v3709_v7 }
 0x402   :  { %v3940_v18 = vadd.bf16 %v7253_v35, %v3852_v34 }
 0x403   :  { %v3941_v0 = vadd.bf16 %v7259_v44, %v3853_v24 }
 0x404   :  { %v3990_v63 = vmax.bf16 %v7435_v41, %v3940_v18 }
 0x405   :  { %v3991_v19 = vmax.bf16 %v7435_v41, %v3941_v0  ;;  %v3717_v62 = vpop.f32.mrb[108].mxu0 }
 0x406   :  { %v4066_v20 = vunpack.c.l.bf16 %v3990_v63  ;;  %v4068_v31 = vunpack.c.h.bf16 %v3990_v63  ;;  %v3719_v42 = vpop.f32.mrb[109].mxu0 }
 0x407   :  { %v4067_v11 = vunpack.c.l.bf16 %v3991_v19  ;;  %v4069_v46 = vunpack.c.h.bf16 %v3991_v19  ;;  %v3721_v55 = vpop.f32.mrb[110].mxu0 }
 0x408   :  { %v4126_v2 = vadd.f32 %v4125_v17, %v4066_v20  ;;  %v4174_v43 = vadd.f32 %v4173_v15, %v4068_v31  ;;  %v3854_v29 = vpack.c.bf16 %v3721_v55, %v3717_v62  ;;  %v3723_v28 = vpop.f32.mrb[111].mxu0 }
 0x409   :  { %v4150_v60 = vadd.f32 %v4149_v36, %v4067_v11  ;;  %v4198_v53 = vadd.f32 %v4197_v27, %v4069_v46  ;;  %v3855_v38 = vpack.c.bf16 %v3723_v28, %v3719_v42 }
 0x40a   :  { %v3942_v13 = vadd.bf16 %v7253_v35, %v3854_v29 }
 0x40b   :  { %v3943_v14 = vadd.bf16 %v7259_v44, %v3855_v38 }
 0x40c   :  { %v3992_v3 = vmax.bf16 %v7435_v41, %v3942_v13 }
 0x40d   :  { %v3993_v16 = vmax.bf16 %v7435_v41, %v3943_v14  ;;  %v3727_v49 = vpop.f32.mrb[112].mxu0 }
 0x40e   :  { %v4070_v30 = vunpack.c.l.bf16 %v3992_v3  ;;  %v4072_v59 = vunpack.c.h.bf16 %v3992_v3  ;;  %v3729_v45 = vpop.f32.mrb[113].mxu0 }
 0x40f   :  { %v4071_v6 = vunpack.c.l.bf16 %v3993_v16  ;;  %v4073_v37 = vunpack.c.h.bf16 %v3993_v16  ;;  %v3731_v51 = vpop.f32.mrb[114].mxu0 }
 0x410   :  { %v4127_v47 = vadd.f32 %v4126_v2, %v4070_v30  ;;  %v4175_v12 = vadd.f32 %v4174_v43, %v4072_v59  ;;  %v3856_v8 = vpack.c.bf16 %v3731_v51, %v3727_v49  ;;  %v3733_v25 = vpop.f32.mrb[115].mxu0 }
 0x411   :  { %v4151_v21 = vadd.f32 %v4150_v60, %v4071_v6  ;;  %v4199_v52 = vadd.f32 %v4198_v53, %v4073_v37  ;;  %v3857_v22 = vpack.c.bf16 %v3733_v25, %v3729_v45 }
 0x412   :  { %v3944_v5 = vadd.bf16 %v7253_v35, %v3856_v8 }
 0x413   :  { %v3945_v26 = vadd.bf16 %v7259_v44, %v3857_v22 }
 0x414   :  { %v3994_v58 = vmax.bf16 %v7435_v41, %v3944_v5 }
 0x415   :  { %v3995_v48 = vmax.bf16 %v7435_v41, %v3945_v26  ;;  %v3737_v56 = vpop.f32.mrb[116].mxu0 }
 0x416   :  { %v4074_v54 = vunpack.c.l.bf16 %v3994_v58  ;;  %v4076_v57 = vunpack.c.h.bf16 %v3994_v58  ;;  %v3739_v33 = vpop.f32.mrb[117].mxu0 }
 0x417   :  { %v4075_v61 = vunpack.c.l.bf16 %v3995_v48  ;;  %v4077_v9 = vunpack.c.h.bf16 %v3995_v48  ;;  %v3741_v23 = vpop.f32.mrb[118].mxu0 }
 0x418   :  { %v4128_v4 = vadd.f32 %v4127_v47, %v4074_v54  ;;  %v4176_v32 = vadd.f32 %v4175_v12, %v4076_v57  ;;  %v3858_v1 = vpack.c.bf16 %v3741_v23, %v3737_v56  ;;  %v3743_v7 = vpop.f32.mrb[119].mxu0 }
 0x419   :  { %v4152_v50 = vadd.f32 %v4151_v21, %v4075_v61  ;;  %v4200_v10 = vadd.f32 %v4199_v52, %v4077_v9  ;;  %v3859_v40 = vpack.c.bf16 %v3743_v7, %v3739_v33 }
 0x41a   :  { %v3946_v17 = vadd.bf16 %v7253_v35, %v3858_v1 }
 0x41b   :  { %v3947_v15 = vadd.bf16 %v7259_v44, %v3859_v40 }
 0x41c   :  { %v3996_v34 = vmax.bf16 %v7435_v41, %v3946_v17 }
 0x41d   :  { %v3997_v39 = vmax.bf16 %v7435_v41, %v3947_v15  ;;  %v3747_v36 = vpop.f32.mrb[120].mxu0 }
 0x41e   :  { %v4078_v27 = vunpack.c.l.bf16 %v3996_v34  ;;  %v4080_v24 = vunpack.c.h.bf16 %v3996_v34  ;;  %v3749_v18 = vpop.f32.mrb[121].mxu0 }
 0x41f   :  { %v4079_v0 = vunpack.c.l.bf16 %v3997_v39  ;;  %v4081_v63 = vunpack.c.h.bf16 %v3997_v39  ;;  %v3751_v19 = vpop.f32.mrb[122].mxu0 }
 0x420   :  { %v4129_v62 = vadd.f32 %v4128_v4, %v4078_v27  ;;  %v4177_v20 = vadd.f32 %v4176_v32, %v4080_v24  ;;  %v3860_v31 = vpack.c.bf16 %v3751_v19, %v3747_v36  ;;  %v3753_v42 = vpop.f32.mrb[123].mxu0 }
 0x421   :  { %v4153_v11 = vadd.f32 %v4152_v50, %v4079_v0  ;;  %v4201_v46 = vadd.f32 %v4200_v10, %v4081_v63  ;;  %v3861_v55 = vpack.c.bf16 %v3753_v42, %v3749_v18 }
 0x422   :  { %v3948_v2 = vadd.bf16 %v7253_v35, %v3860_v31 }
 0x423   :  { %v3949_v43 = vadd.bf16 %v7259_v44, %v3861_v55 }
 0x424   :  { %v3998_v29 = vmax.bf16 %v7435_v41, %v3948_v2 }
 0x425   :  { %v3999_v28 = vmax.bf16 %v7435_v41, %v3949_v43  ;;  %v3757_v60 = vpop.f32.mrb[124].mxu0 }
 0x426   :  { %v4082_v53 = vunpack.c.l.bf16 %v3998_v29  ;;  %v4084_v38 = vunpack.c.h.bf16 %v3998_v29  ;;  %v3759_v13 = vpop.f32.mrb[125].mxu0 }
 0x427   :  { %v4083_v14 = vunpack.c.l.bf16 %v3999_v28  ;;  %v4085_v3 = vunpack.c.h.bf16 %v3999_v28  ;;  %v3761_v16 = vpop.f32.mrb[126].mxu0 }
 0x428   :  { %v4130_v49 = vadd.f32 %v4129_v62, %v4082_v53  ;;  %v4178_v30 = vadd.f32 %v4177_v20, %v4084_v38  ;;  %v3862_v59 = vpack.c.bf16 %v3761_v16, %v3757_v60  ;;  %v3763_v45 = vpop.f32.mrb[127].mxu0 }
 0x429   :  { %v4154_v6 = vadd.f32 %v4153_v11, %v4083_v14  ;;  %v4202_v37 = vadd.f32 %v4201_v46, %v4085_v3  ;;  %v3863_v51 = vpack.c.bf16 %v3763_v45, %v3759_v13 }
 0x42a   :  { %v3950_v47 = vadd.bf16 %v7253_v35, %v3862_v59 }
 0x42b   :  { %v3951_v12 = vadd.bf16 %v7259_v44, %v3863_v51 }
 0x42c   :  { %v4000_v8 = vmax.bf16 %v7435_v41, %v3950_v47 }
 0x42d   :  { %v4001_v25 = vmax.bf16 %v7435_v41, %v3951_v12  ;;  %v3767_v21 = vpop.f32.mrb[128].mxu0 }
 0x42e   :  { %v4086_v52 = vunpack.c.l.bf16 %v4000_v8  ;;  %v4088_v22 = vunpack.c.h.bf16 %v4000_v8  ;;  %v3769_v5 = vpop.f32.mrb[129].mxu0 }
 0x42f   :  { %v4087_v26 = vunpack.c.l.bf16 %v4001_v25  ;;  %v4089_v58 = vunpack.c.h.bf16 %v4001_v25  ;;  %v3771_v48 = vpop.f32.mrb[130].mxu0 }
 0x430   :  { %v4131_v56 = vadd.f32 %v4130_v49, %v4086_v52  ;;  %v4179_v54 = vadd.f32 %v4178_v30, %v4088_v22  ;;  %v3864_v57 = vpack.c.bf16 %v3771_v48, %v3767_v21  ;;  %v3773_v33 = vpop.f32.mrb[131].mxu0 }
 0x431   :  { %v4155_v61 = vadd.f32 %v4154_v6, %v4087_v26  ;;  %v4203_v9 = vadd.f32 %v4202_v37, %v4089_v58  ;;  %v3865_v23 = vpack.c.bf16 %v3773_v33, %v3769_v5 }
 0x432   :  { %v3952_v4 = vadd.bf16 %v7253_v35, %v3864_v57 }
 0x433   :  { %v3953_v32 = vadd.bf16 %v7259_v44, %v3865_v23 }
 0x434   :  { %v4002_v1 = vmax.bf16 %v7435_v41, %v3952_v4 }
 0x435   :  { %v4003_v7 = vmax.bf16 %v7435_v41, %v3953_v32  ;;  %v3777_v40 = vpop.f32.mrb[132].mxu0 }
 0x436   :  { %v4090_v50 = vunpack.c.l.bf16 %v4002_v1  ;;  %v4092_v10 = vunpack.c.h.bf16 %v4002_v1  ;;  %v3779_v34 = vpop.f32.mrb[133].mxu0 }
 0x437   :  { %v4091_v17 = vunpack.c.l.bf16 %v4003_v7  ;;  %v4093_v15 = vunpack.c.h.bf16 %v4003_v7  ;;  %v3781_v27 = vpop.f32.mrb[134].mxu0 }
 0x438   :  { %v4132_v39 = vadd.f32 %v4131_v56, %v4090_v50  ;;  %v4180_v36 = vadd.f32 %v4179_v54, %v4092_v10  ;;  %v3866_v0 = vpack.c.bf16 %v3781_v27, %v3777_v40  ;;  %v3783_v63 = vpop.f32.mrb[135].mxu0 }
 0x439   :  { %v4156_v24 = vadd.f32 %v4155_v61, %v4091_v17  ;;  %v4204_v18 = vadd.f32 %v4203_v9, %v4093_v15  ;;  %v3867_v19 = vpack.c.bf16 %v3783_v63, %v3779_v34 }
 0x43a   :  { %v3954_v62 = vadd.bf16 %v7253_v35, %v3866_v0 }
 0x43b   :  { %v3955_v20 = vadd.bf16 %v7259_v44, %v3867_v19 }
 0x43c   :  { %v4004_v31 = vmax.bf16 %v7435_v41, %v3954_v62 }
 0x43d   :  { %v4005_v42 = vmax.bf16 %v7435_v41, %v3955_v20 }
 0x43e   :  { %v4094_v11 = vunpack.c.l.bf16 %v4004_v31  ;;  %v4096_v46 = vunpack.c.h.bf16 %v4004_v31 }
 0x43f   :  { %v4095_v55 = vunpack.c.l.bf16 %v4005_v42  ;;  %v4097_v2 = vunpack.c.h.bf16 %v4005_v42 }
 0x440   :  { %v4133_v43 = vadd.f32 %v4132_v39, %v4094_v11  ;;  %v4181_v29 = vadd.f32 %v4180_v36, %v4096_v46 }
 0x441   :  { %v4157_v28 = vadd.f32 %v4156_v24, %v4095_v55  ;;  %v4205_v60 = vadd.f32 %v4204_v18, %v4097_v2 }
 0x442   :  { %v3787_v53 = vpop.f32.mrb[136].mxu0 }
 0x443   :  { %v3789_v38 = vpop.f32.mrb[137].mxu0 }
 0x444   :  { %v3791_v13 = vpop.f32.mrb[138].mxu0 }
 0x445   :  { %v3868_v14 = vpack.c.bf16 %v3791_v13, %v3787_v53  ;;  %v3793_v3 = vpop.f32.mrb[139].mxu0 }
 0x446   :  { %v3869_v16 = vpack.c.bf16 %v3793_v3, %v3789_v38 }
 0x447   :  { %v3956_v49 = vadd.bf16 %v7253_v35, %v3868_v14 }
 0x448   :  { %v3957_v30 = vadd.bf16 %v7259_v44, %v3869_v16 }
 0x449   :  { %v4006_v59 = vmax.bf16 %v7435_v41, %v3956_v49 }
 0x44a   :  { %v4007_v45 = vmax.bf16 %v7435_v41, %v3957_v30 }
 0x44b   :  { %v4098_v6 = vunpack.c.l.bf16 %v4006_v59  ;;  %v4100_v37 = vunpack.c.h.bf16 %v4006_v59 }
 0x44c   :  { %v4099_v47 = vunpack.c.l.bf16 %v4007_v45  ;;  %v4101_v12 = vunpack.c.h.bf16 %v4007_v45 }
 0x44d   :  { %v4134_v25 = vadd.f32 %v4133_v43, %v4098_v6  ;;  %v4182_v21 = vadd.f32 %v4181_v29, %v4100_v37 }
 0x44e   :  { %v3797_v51 = vpop.f32.mrb[140].mxu0  ;;  %v4158_v22 = vadd.f32 %v4157_v28, %v4099_v47  ;;  %v4206_v5 = vadd.f32 %v4205_v60, %v4101_v12 }
 0x44f   :  { %v3799_v8 = vpop.f32.mrb[141].mxu0 }
 0x450   :  { %v3801_v52 = vpop.f32.mrb[142].mxu0 }
 0x451   :  { %v3870_v26 = vpack.c.bf16 %v3801_v52, %v3797_v51  ;;  %v3803_v58 = vpop.f32.mrb[143].mxu0 }
 0x452   :  { %v3871_v48 = vpack.c.bf16 %v3803_v58, %v3799_v8 }
 0x453   :  { %v3958_v56 = vadd.bf16 %v7253_v35, %v3870_v26 }
 0x454   :  { %v3959_v54 = vadd.bf16 %v7259_v44, %v3871_v48 }
 0x455   :  { %v4008_v57 = vmax.bf16 %v7435_v41, %v3958_v56 }
 0x456   :  { %v4009_v33 = vmax.bf16 %v7435_v41, %v3959_v54 }
 0x457   :  { %v4102_v61 = vunpack.c.l.bf16 %v4008_v57  ;;  %v4104_v9 = vunpack.c.h.bf16 %v4008_v57 }
 0x458   :  { %v4103_v23 = vunpack.c.l.bf16 %v4009_v33  ;;  %v4105_v4 = vunpack.c.h.bf16 %v4009_v33 }
 0x459   :  { %v4135_v32 = vadd.f32 %v4134_v25, %v4102_v61  ;;  %v4183_v1 = vadd.f32 %v4182_v21, %v4104_v9 }
 0x45a   :  { %v4159_v7 = vadd.f32 %v4158_v22, %v4103_v23  ;;  %v4207_v50 = vadd.f32 %v4206_v5, %v4105_v4 }
 0x45b   :  { %v3807_v10 = vpop.f32.mrb[144].mxu0 }
 0x45c   :  { %v3809_v40 = vpop.f32.mrb[145].mxu0 }
 0x45d   :  { %v3811_v17 = vpop.f32.mrb[146].mxu0 }
 0x45e   :  { %v3872_v15 = vpack.c.bf16 %v3811_v17, %v3807_v10  ;;  %v3813_v34 = vpop.f32.mrb[147].mxu0 }
 0x45f   :  { %v3873_v39 = vpack.c.bf16 %v3813_v34, %v3809_v40 }
 0x460   :  { %v3960_v36 = vadd.bf16 %v7253_v35, %v3872_v15 }
 0x461   :  { %v3961_v27 = vadd.bf16 %v7259_v44, %v3873_v39 }
 0x462   :  { %v4010_v24 = vmax.bf16 %v7435_v41, %v3960_v36 }
 0x463   :  { %v4011_v18 = vmax.bf16 %v7435_v41, %v3961_v27 }
 0x464   :  { %v4106_v0 = vunpack.c.l.bf16 %v4010_v24  ;;  %v4108_v63 = vunpack.c.h.bf16 %v4010_v24 }
 0x465   :  { %v4107_v19 = vunpack.c.l.bf16 %v4011_v18  ;;  %v4109_v62 = vunpack.c.h.bf16 %v4011_v18 }
 0x466   :  { %v4136_v20 = vadd.f32 %v4135_v32, %v4106_v0  ;;  %v4184_v31 = vadd.f32 %v4183_v1, %v4108_v63 }
 0x467   :  { %v4160_v42 = vadd.f32 %v4159_v7, %v4107_v19  ;;  %v4208_v11 = vadd.f32 %v4207_v50, %v4109_v62 }
 0x46b   :  { %v3817_v46 = vpop.f32.mrb[148].mxu0 }
 0x46c   :  { %v3819_v55 = vpop.f32.mrb[149].mxu0 }
 0x46d   :  { %v3821_v2 = vpop.f32.mrb[150].mxu0 }
 0x46e   :  { %v3874_v43 = vpack.c.bf16 %v3821_v2, %v3817_v46  ;;  %v3823_v29 = vpop.f32.mrb[151].mxu0 }
 0x46f   :  { %v3875_v28 = vpack.c.bf16 %v3823_v29, %v3819_v55 }
 0x470   :  { %v3962_v60 = vadd.bf16 %v7253_v35, %v3874_v43  ;;  %v4429_v35 = vld [vmem:[%s7416_s10] ss:$0 sm:$0xff] }
 0x471   :  { %v3963_v53 = vadd.bf16 %v7259_v44, %v3875_v28 }
 0x472   :  { %v4012_v38 = vmax.bf16 %v7435_v41, %v3962_v60 }
 0x473   :  { %v4013_v13 = vmax.bf16 %v7435_v41, %v3963_v53 }
 0x474   :  { %v4110_v14 = vunpack.c.l.bf16 %v4012_v38  ;;  %v4112_v3 = vunpack.c.h.bf16 %v4012_v38 }
 0x475   :  { %v4111_v16 = vunpack.c.l.bf16 %v4013_v13  ;;  %v4113_v49 = vunpack.c.h.bf16 %v4013_v13 }
 0x476   :  { %v4137_v30 = vadd.f32 %v4136_v20, %v4110_v14  ;;  %v4185_v59 = vadd.f32 %v4184_v31, %v4112_v3 }
 0x477   :  { %v4161_v45 = vadd.f32 %v4160_v42, %v4111_v16  ;;  %v4209_v6 = vadd.f32 %v4208_v11, %v4113_v49 }
 0x479   :  { %4313 = vmatprep.mubr.f32.mxu1 %v4161_v45 }
 0x47a   :  { %4314 = vmatmul.mubr.f32.vlgmr.msra.gmra.mrb[148].mxu1 %v4137_v30 }
 0x47b   :  { %4318 = vmatprep.mubr.f32.mxu1 %v4209_v6 }
 0x47e   :  { %4319 = vmatmul.mubr.f32.gmra.mrb[150].mxu1 %v4185_v59 }
 0x54d   :  { %v4586_v37 = vpop.f32.mrb[148].mxu1 }
 0x54e   :  { %v4587_v44 = vpop.f32.mrb[149].mxu1 }
 0x54f   :  { %v4588_v51 = vadd.f32 %v4587_v44, %v4586_v37 }
 0x551   :  { %v4316_v41 = vadd.f32 %v4588_v51, %v4429_v35  ;;  %v4589_v47 = vpop.f32.mrb[150].mxu1 }
 0x552   :  { %v4590_v12 = vpop.f32.mrb[151].mxu1 }
 0x553   :  { %4324 = vst [vmem:[%s7417_s11] sm:$0xff] %v4316_v41  ;;  %v4591_v8 = vadd.f32 %v4590_v12, %v4589_v47 }
 0x555   :  { %v4321_v25 = vadd.f32 %v4591_v8, %v4429_v35 }
 0x557   :  { %4325 = vst [vmem:[%s7417_s11 + $0x8] sm:$0xff] %v4321_v25 }

</bundles_post_ra>
